<compile_context>
chip_gen: v5e
topology: v5e:2x2
jax: 0.10.0
libtpu: 0.0.40
codegen_flags: <defaults>
</compile_context>

<pallas_src>
import functools
import math

import jax
import jax.numpy as jnp
from jax.experimental import pallas as pl
from jax.experimental.pallas import tpu as pltpu


# ----------------------------------------------------------------------------
# Pallas kernel: rows of unfolded patches -> rows of log-mapped outputs
# ----------------------------------------------------------------------------
def _poincare_fc_kernel(x_ref, zhat_ref, params_ref, o_ref, *, c, beta_scale):
    sc = float(math.sqrt(c))
    f32 = jnp.float32

    x = x_ref[...].astype(f32) * f32(beta_scale)        # (TM, Din_p)

    p = params_ref[...]                                 # (3, Dout_p) f32
    sc_cosh = p[0:1, :]                                 # sc * cosh(2*sc*r)
    sinh_r = p[1:2, :]                                  # sinh(2*sc*r)
    two_zn = p[2:3, :]                                  # 2 * ||z_col||

    # ---- expmap0 along the feature dim --------------------------------------
    xn = jnp.maximum(jnp.sqrt(jnp.sum(x * x, axis=-1, keepdims=True)), 1e-15)
    t = jnp.tanh(sc * xn)                               # (TM, 1)
    xb = (t * pl.reciprocal(sc * xn, approx=True)) * x  # (TM, Din_p)

    # lambda_0(xb) = 2 / (1 - c ||xb||^2);  c*||xb||^2 == tanh^2(sc*xn)
    lam = 2.0 * pl.reciprocal(jnp.maximum(1.0 - t * t, 1e-15), approx=True)

    # ---- Poincare FC inner products on the MXU (bf16 in, f32 accumulate) ----
    # weight columns are pre-normalized in the wrapper, so this is <xb,z>/||z||
    inner = jnp.dot(xb.astype(jnp.bfloat16), zhat_ref[...],
                    preferred_element_type=f32)         # (TM, Dout_p)

    # arg = sc*lam*<xb,z>/||z||*cosh(2 sc r) - (lam - 1)*sinh(2 sc r)
    arg = lam * (inner * sc_cosh - sinh_r) + sinh_r

    # numerically stable asinh: sign(arg) * log(|arg| + sqrt(arg^2 + 1))
    a = jnp.abs(arg)
    asinh_a = jnp.log(a + jnp.sqrt(a * a + 1.0))
    asinh_arg = jnp.where(arg < 0.0, -asinh_a, asinh_a)

    # u = sc * w = sinh(2 ||z|| * asinh_arg)
    scv = two_zn * asinh_arg
    u = 0.5 * (jnp.exp(scv) - jnp.exp(-scv))

    # fused ball projection + logmap0:
    #   log_0( w / (1 + sqrt(1 + c ||w||^2)) ) = asinh(||u||) * u / (2 sc ||u||)
    un = jnp.maximum(jnp.sqrt(jnp.sum(u * u, axis=-1, keepdims=True)), 1e-15)
    scale = jnp.log(un + jnp.sqrt(un * un + 1.0)) * pl.reciprocal(
        (2.0 * sc) * un, approx=True)
    o_ref[...] = (scale * u).astype(o_ref.dtype)


# ----------------------------------------------------------------------------
# Wrapper
# ----------------------------------------------------------------------------
def poincare_conv2d(x, weights, bias, *, kernel_dims, stride=1, padding=0,
                    c=1.0, row_tile=512):
    B, C, H, W = x.shape
    kh, kw = kernel_dims
    d_in, d_out = weights.shape
    assert d_in == C * kh * kw

    # The module's own output-size formula (identical to the standard conv
    # formula for stride == 1, which is the common Poincare-ResNet case).
    # TODO(synk): for some stride>1 shapes this formula disagrees with
    # nn.Unfold's patch count and the original PyTorch module itself would
    # fail at the reshape; we reproduce the module's behavior for valid cases.
    oh = (H - kh + 1 + 2 * padding) // stride
    ow = (W - kw + 1 + 2 * padding) // stride

    # Euler beta-function scaling (matches scipy.special.beta in the module).
    def _beta(a, b):
        return math.exp(math.lgamma(a) + math.lgamma(b) - math.lgamma(a + b))
    beta_scale = _beta(C * kh * kw / 2.0, 0.5) / _beta(C / 2.0, 0.5)
    sc = math.sqrt(c)

    # ---- unfold (torch.nn.Unfold ordering: channel-major, kernel-pos minor) -
    # TODO(synk): the unfold itself stays as XLA glue; doing the strided patch
    # gather inside the kernel would need a manual-DMA gather.
    xp = jnp.pad(x, ((0, 0), (0, 0), (padding, padding), (padding, padding)))
    patches = [xp[:, :,
                  i:i + (oh - 1) * stride + 1:stride,
                  j:j + (ow - 1) * stride + 1:stride]
               for i in range(kh) for j in range(kw)]
    cols = jnp.stack(patches, axis=-1)                      # (B, C, oh, ow, kh*kw)
    rows = cols.transpose(0, 2, 3, 1, 4).reshape(B * oh * ow, d_in)

    # ---- lane-dense padding of both feature dims -----------------------------
    d_in_p = max(128, pl.cdiv(d_in, 128) * 128)
    d_out_p = max(128, pl.cdiv(d_out, 128) * 128)

    n_rows = rows.shape[0]
    tm = int(row_tile)
    while tm > 128 and n_rows <= tm:    # keep >= 2 grid steps (v7x megacore)
        tm //= 2
    n_pad = pl.cdiv(n_rows, tm) * tm

    rows = jnp.pad(rows.astype(jnp.float32),
                   ((0, n_pad - n_rows), (0, d_in_p - d_in)))

    # ---- hoisted row-independent parameters ----------------------------------
    w32 = weights.astype(jnp.float32)
    zn = jnp.maximum(jnp.sqrt(jnp.sum(w32 * w32, axis=0, keepdims=True)), 1e-15)
    z_hat = jnp.pad(w32 / zn, ((0, d_in_p - d_in), (0, d_out_p - d_out)))
    z_hat = z_hat.astype(jnp.bfloat16)                       # (Din_p, Dout_p)

    two_scr = 2.0 * sc * bias.astype(jnp.float32).reshape(1, d_out)
    params = jnp.concatenate([sc * jnp.cosh(two_scr),        # sc*cosh(2 sc r)
                              jnp.sinh(two_scr),             # sinh(2 sc r)
                              2.0 * zn], axis=0)             # 2*||z_col||
    params = jnp.pad(params, ((0, 0), (0, d_out_p - d_out)))  # (3, Dout_p)
    # (zero padding keeps padded output columns exactly 0 inside the kernel)

    kernel = functools.partial(_poincare_fc_kernel, c=c, beta_scale=beta_scale)

    # Explicit VMEM budget: double-buffered row/out tiles + resident weights.
    vmem_bytes = (2 * (tm * d_in_p * 4 + tm * d_out_p * 4)    # 2x buffered tiles
                  + d_in_p * d_out_p * 2 + 3 * d_out_p * 4    # resident params
                  + (8 << 20))                                # headroom
    vmem_bytes = int(min(max(vmem_bytes, 16 << 20), 48 << 20))

    out_rows = pl.pallas_call(
        kernel,
        out_shape=jax.ShapeDtypeStruct((n_pad, d_out_p), jnp.float32),
        grid_spec=pltpu.PrefetchScalarGridSpec(
            num_scalar_prefetch=0,
            grid=(n_pad // tm,),
            in_specs=[
                pl.BlockSpec((tm, d_in_p), lambda i: (i, 0)),
                pl.BlockSpec((d_in_p, d_out_p), lambda i: (0, 0)),
                pl.BlockSpec((3, d_out_p), lambda i: (0, 0)),
            ],
            out_specs=pl.BlockSpec((tm, d_out_p), lambda i: (i, 0)),
        ),
        compiler_params=pltpu.CompilerParams(
            dimension_semantics=("parallel",),
            vmem_limit_bytes=vmem_bytes),
    )(rows, z_hat, params)

    out_rows = out_rows[:n_rows, :d_out]                          # (N, D_out)
    out = out_rows.reshape(B, oh * ow, d_out).transpose(0, 2, 1)  # (B, D_out, L)
    return out.reshape(B, d_out, oh, ow)                          # NCHW


# ----------------------------------------------------------------------------
# Pure-JAX reference (full f32, un-fused math) for a quick sanity check.
# ----------------------------------------------------------------------------
def _reference(x, weights, bias, *, kernel_dims, stride, padding, c):
    B, C, H, W = x.shape
    kh, kw = kernel_dims
    d_in, d_out = weights.shape
    oh = (H - kh + 1 + 2 * padding) // stride
    ow = (W - kw + 1 + 2 * padding) // stride

    def _beta(a, b):
        return math.exp(math.lgamma(a) + math.lgamma(b) - math.lgamma(a + b))
    beta_scale = _beta(C * kh * kw / 2.0, 0.5) / _beta(C / 2.0, 0.5)
    sc = math.sqrt(c)

    xp = jnp.pad(x, ((0, 0), (0, 0), (padding, padding), (padding, padding)))
    patches = [xp[:, :, i:i + (oh - 1) * stride + 1:stride,
                  j:j + (ow - 1) * stride + 1:stride]
               for i in range(kh) for j in range(kw)]
    cols = jnp.stack(patches, axis=2).reshape(B, d_in, oh * ow)
    r = cols.transpose(0, 2, 1).reshape(-1, d_in) * beta_scale

    xn = jnp.maximum(jnp.linalg.norm(r, axis=-1, keepdims=True), 1e-15)
    xb = jnp.tanh(sc * xn) * r / (sc * xn)
    lam = 2.0 / (1.0 - c * jnp.sum(xb * xb, axis=-1, keepdims=True))
    zn = jnp.maximum(jnp.linalg.norm(weights, axis=0, keepdims=True), 1e-15)
    inner = xb @ weights
    two_scr = 2.0 * sc * bias.reshape(1, -1)
    arg = sc * lam * inner / zn * jnp.cosh(two_scr) - (lam - 1.0) * jnp.sinh(two_scr)
    v = (2.0 * zn / sc) * jnp.arcsinh(arg)
    w = jnp.sinh(sc * v) / sc
    y = w / (1.0 + jnp.sqrt(1.0 + c * jnp.sum(w * w, axis=-1, keepdims=True)))
    yn = jnp.maximum(jnp.linalg.norm(y, axis=-1, keepdims=True), 1e-15)
    scy = jnp.minimum(sc * yn, 1.0 - 1e-5)
    out = jnp.arctanh(scy) * y / (sc * yn)
    return out.reshape(B, oh * ow, d_out).transpose(0, 2, 1).reshape(B, d_out, oh, ow)


if __name__ == "__main__":
    # Small shapes consistent with the module: NCHW input, 3x3 kernel.
    B, C_in, H, W = 2, 4, 16, 16
    C_out = 8
    kernel_dims = (3, 3)
    stride, padding = 1, 0
    kernel_size = kernel_dims[0] * kernel_dims[1]
    d_in = kernel_size * C_in

    key = jax.random.PRNGKey(0)
    x = jax.random.normal(key, (B, C_in, H, W), dtype=jnp.float32) * 0.1

    # Deterministic parameter init, matching reset_parameters(id_init=True):
    # weights = 0.5 * eye(kernel_size*in_channels, out_channels), bias = 0.
    weights = 0.5 * jnp.eye(d_in, C_out, dtype=jnp.float32)
    bias = jnp.zeros((C_out,), dtype=jnp.float32)

    out = poincare_conv2d(x, weights, bias, kernel_dims=kernel_dims,
                          stride=stride, padding=padding, c=1.0)
    out = jax.block_until_ready(out)

    ref = _reference(x, weights, bias, kernel_dims=kernel_dims,
                     stride=stride, padding=padding, c=1.0)
    assert out.shape == (B, C_out, H - 2, W - 2), out.shape
    # tolerance accounts for the bf16 MXU operands and approx reciprocals
    assert jnp.allclose(out, ref, rtol=2e-2, atol=1e-3), "mismatch vs reference"

    print("KERNEL_OK")
</pallas_src>

<mosaic_0001>
module attributes {stable_mosaic.version = 11 : i64} {
  func.func @_poincare_fc_kernel(%arg0: i32, %arg1: memref<256x128xf32, #tpu.memory_space<vmem>>, %arg2: memref<128x128xbf16, #tpu.memory_space<vmem>>, %arg3: memref<3x128xf32, #tpu.memory_space<vmem>>, %arg4: memref<256x128xf32, #tpu.memory_space<vmem>>) attributes {dimension_semantics = [#tpu.dimension_semantics<parallel>], iteration_bounds = array<i64: 2>, scalar_prefetch = 0 : i64, scratch_operands = 0 : i64, tpu.core_type = #tpu.core_type<tc>, window_params = [{transform_indices = @transform_0, window_bounds = array<i64: 256, 128>}, {pipeline_mode = #tpu.pipeline_mode<synchronous>, transform_indices = @transform_1, window_bounds = array<i64: 128, 128>}, {pipeline_mode = #tpu.pipeline_mode<synchronous>, transform_indices = @transform_2, window_bounds = array<i64: 3, 128>}, {transform_indices = @transform_3, window_bounds = array<i64: 256, 128>}]} {
    %c0 = arith.constant 0 : index
    %c0_0 = arith.constant 0 : index
    %0 = vector.load %arg1[%c0, %c0_0] : memref<256x128xf32, #tpu.memory_space<vmem>>, vector<256x128xf32>
    %cst = arith.constant 0.315511703 : f32
    %1 = vector.broadcast %cst : f32 to vector<256x128xf32>
    %2 = arith.mulf %0, %1 : vector<256x128xf32>
    %c0_1 = arith.constant 0 : index
    %c0_2 = arith.constant 0 : index
    %3 = vector.load %arg3[%c0_1, %c0_2] : memref<3x128xf32, #tpu.memory_space<vmem>>, vector<3x128xf32>
    %4 = vector.extract_strided_slice %3 {offsets = [0, 0], sizes = [1, 128], strides = [1, 1]} : vector<3x128xf32> to vector<1x128xf32>
    %5 = vector.extract_strided_slice %3 {offsets = [1, 0], sizes = [1, 128], strides = [1, 1]} : vector<3x128xf32> to vector<1x128xf32>
    %6 = vector.extract_strided_slice %3 {offsets = [2, 0], sizes = [1, 128], strides = [1, 1]} : vector<3x128xf32> to vector<1x128xf32>
    %7 = arith.mulf %2, %2 : vector<256x128xf32>
    %cst_3 = arith.constant dense<0.000000e+00> : vector<256xf32>
    %8 = vector.multi_reduction <add>, %7, %cst_3 [1] : vector<256x128xf32> to vector<256xf32>
    %9 = vector.shape_cast %8 : vector<256xf32> to vector<256x1xf32>
    %10 = math.sqrt %9 : vector<256x1xf32>
    %cst_4 = arith.constant 1.000000e-15 : f32
    %11 = vector.broadcast %cst_4 : f32 to vector<256x1xf32>
    %12 = arith.maximumf %10, %11 : vector<256x1xf32>
    %cst_5 = arith.constant 1.000000e+00 : f32
    %13 = vector.broadcast %cst_5 : f32 to vector<256x1xf32>
    %14 = arith.mulf %13, %12 : vector<256x1xf32>
    %15 = math.tanh %14 : vector<256x1xf32>
    %cst_6 = arith.constant 1.000000e+00 : f32
    %16 = vector.broadcast %cst_6 : f32 to vector<256x1xf32>
    %17 = arith.mulf %16, %12 : vector<256x1xf32>
    %18 = tpu.reciprocal %17 {approx = true} : vector<256x1xf32> -> vector<256x1xf32>
    %19 = arith.mulf %15, %18 : vector<256x1xf32>
    %20 = vector.broadcast %19 : vector<256x1xf32> to vector<256x128xf32>
    %21 = arith.mulf %20, %2 : vector<256x128xf32>
    %22 = arith.mulf %15, %15 : vector<256x1xf32>
    %cst_7 = arith.constant 1.000000e+00 : f32
    %23 = vector.broadcast %cst_7 : f32 to vector<256x1xf32>
    %24 = arith.subf %23, %22 : vector<256x1xf32>
    %cst_8 = arith.constant 1.000000e-15 : f32
    %25 = vector.broadcast %cst_8 : f32 to vector<256x1xf32>
    %26 = arith.maximumf %24, %25 : vector<256x1xf32>
    %27 = tpu.reciprocal %26 {approx = true} : vector<256x1xf32> -> vector<256x1xf32>
    %cst_9 = arith.constant 2.000000e+00 : f32
    %28 = vector.broadcast %cst_9 : f32 to vector<256x1xf32>
    %29 = arith.mulf %28, %27 : vector<256x1xf32>
    %30 = arith.truncf %21 : vector<256x128xf32> to vector<256x128xbf16>
    %c0_10 = arith.constant 0 : index
    %c0_11 = arith.constant 0 : index
    %31 = vector.load %arg2[%c0_10, %c0_11] : memref<128x128xbf16, #tpu.memory_space<vmem>>, vector<128x128xbf16>
    %cst_12 = arith.constant dense<0.000000e+00> : vector<256x128xf32>
    %32 = tpu.matmul %30, %31, %cst_12 {dimension_numbers = #tpu.dot_dimension_numbers<[1], [0], [0], [1], [0, 0, 1, 1], [], []>} : vector<256x128xbf16>, vector<128x128xbf16>, vector<256x128xf32> -> vector<256x128xf32>
    %33 = vector.broadcast %4 : vector<1x128xf32> to vector<256x128xf32>
    %34 = arith.mulf %32, %33 : vector<256x128xf32>
    %35 = vector.broadcast %5 : vector<1x128xf32> to vector<256x128xf32>
    %36 = arith.subf %34, %35 : vector<256x128xf32>
    %37 = vector.broadcast %29 : vector<256x1xf32> to vector<256x128xf32>
    %38 = arith.mulf %37, %36 : vector<256x128xf32>
    %39 = vector.broadcast %5 : vector<1x128xf32> to vector<256x128xf32>
    %40 = arith.addf %38, %39 : vector<256x128xf32>
    %41 = math.absf %40 : vector<256x128xf32>
    %42 = arith.mulf %41, %41 : vector<256x128xf32>
    %cst_13 = arith.constant 1.000000e+00 : f32
    %43 = vector.broadcast %cst_13 : f32 to vector<256x128xf32>
    %44 = arith.addf %42, %43 : vector<256x128xf32>
    %45 = math.sqrt %44 : vector<256x128xf32>
    %46 = arith.addf %41, %45 : vector<256x128xf32>
    %47 = math.log %46 : vector<256x128xf32>
    %cst_14 = arith.constant 0.000000e+00 : f32
    %48 = vector.broadcast %cst_14 : f32 to vector<256x128xf32>
    %49 = arith.cmpf olt, %40, %48 : vector<256x128xf32>
    %cst_15 = arith.constant 0.000000e+00 : f32
    %50 = vector.broadcast %cst_15 : f32 to vector<256x128xf32>
    %51 = arith.subf %50, %47 : vector<256x128xf32>
    %52 = arith.select %49, %51, %47 : vector<256x128xi1>, vector<256x128xf32>
    %53 = vector.broadcast %6 : vector<1x128xf32> to vector<256x128xf32>
    %54 = arith.mulf %53, %52 : vector<256x128xf32>
    %55 = math.exp %54 : vector<256x128xf32>
    %cst_16 = arith.constant 0.000000e+00 : f32
    %56 = vector.broadcast %cst_16 : f32 to vector<256x128xf32>
    %57 = arith.subf %56, %54 : vector<256x128xf32>
    %58 = math.exp %57 : vector<256x128xf32>
    %59 = arith.subf %55, %58 : vector<256x128xf32>
    %cst_17 = arith.constant 5.000000e-01 : f32
    %60 = vector.broadcast %cst_17 : f32 to vector<256x128xf32>
    %61 = arith.mulf %60, %59 : vector<256x128xf32>
    %62 = arith.mulf %61, %61 : vector<256x128xf32>
    %cst_18 = arith.constant dense<0.000000e+00> : vector<256xf32>
    %63 = vector.multi_reduction <add>, %62, %cst_18 [1] : vector<256x128xf32> to vector<256xf32>
    %64 = vector.shape_cast %63 : vector<256xf32> to vector<256x1xf32>
    %65 = math.sqrt %64 : vector<256x1xf32>
    %cst_19 = arith.constant 1.000000e-15 : f32
    %66 = vector.broadcast %cst_19 : f32 to vector<256x1xf32>
    %67 = arith.maximumf %65, %66 : vector<256x1xf32>
    %68 = arith.mulf %67, %67 : vector<256x1xf32>
    %cst_20 = arith.constant 1.000000e+00 : f32
    %69 = vector.broadcast %cst_20 : f32 to vector<256x1xf32>
    %70 = arith.addf %68, %69 : vector<256x1xf32>
    %71 = math.sqrt %70 : vector<256x1xf32>
    %72 = arith.addf %67, %71 : vector<256x1xf32>
    %73 = math.log %72 : vector<256x1xf32>
    %cst_21 = arith.constant 2.000000e+00 : f32
    %74 = vector.broadcast %cst_21 : f32 to vector<256x1xf32>
    %75 = arith.mulf %74, %67 : vector<256x1xf32>
    %76 = tpu.reciprocal %75 {approx = true} : vector<256x1xf32> -> vector<256x1xf32>
    %77 = arith.mulf %73, %76 : vector<256x1xf32>
    %78 = vector.broadcast %77 : vector<256x1xf32> to vector<256x128xf32>
    %79 = arith.mulf %78, %61 : vector<256x128xf32>
    %c0_22 = arith.constant 0 : index
    %c0_23 = arith.constant 0 : index
    %80 = vector.load %arg4[%c0_22, %c0_23] : memref<256x128xf32, #tpu.memory_space<vmem>>, vector<256x128xf32>
    tpu.vector_store %arg4[%c0_22, %c0_23], %79 {strides = array<i32>} : memref<256x128xf32, #tpu.memory_space<vmem>>, vector<256x128xf32>,
    return
  }
  func.func @transform_0(%arg0: i32) -> (i32, i32) {
    %c0_i32 = arith.constant 0 : i32
    %c0_i32_0 = arith.constant 0 : i32
    return %arg0, %c0_i32 : i32, i32
  }
  func.func @transform_1(%arg0: i32) -> (i32, i32) {
    %c0_i32 = arith.constant 0 : i32
    %c0_i32_0 = arith.constant 0 : i32
    %c0_i32_1 = arith.constant 0 : i32
    return %c0_i32, %c0_i32_0 : i32, i32
  }
  func.func @transform_2(%arg0: i32) -> (i32, i32) {
    %c0_i32 = arith.constant 0 : i32
    %c0_i32_0 = arith.constant 0 : i32
    %c0_i32_1 = arith.constant 0 : i32
    return %c0_i32, %c0_i32_0 : i32, i32
  }
  func.func @transform_3(%arg0: i32) -> (i32, i32) {
    %c0_i32 = arith.constant 0 : i32
    %c0_i32_0 = arith.constant 0 : i32
    return %arg0, %c0_i32 : i32, i32
  }
}

</mosaic_0001>

<bundles_post_ra>
// kernel: tpu_custom_call.1
= control target key start
LH: loop header
LB: loop body
LE: loop exit
PB: predicated region body
PF: predicated region fallthrough
CT: control target
= control target key end

     0   :  { %8 = vsyncpa [#allocation3], 0  ;;  %s8267_s0 = inlined_call_operand.hbm [shape: f32[512,128], index: 0, kind: input, shape index: {}]   ;;  %s8268_s1 = inlined_call_operand.hbm [shape: bf16[128,128], index: 1, kind: input, shape index: {}]   ;;  %s8269_s2 = inlined_call_operand.hbm [shape: f32[3,128], index: 2, kind: input, shape index: {}]   ;;  %s8270_s3 = inlined_call_operand.hbm [shape: f32[512,128], index: 3, kind: output, shape index: {}]  }
   0x1   :  { %10 = vsyncpa [#allocation3 + $0x1], 0 }
   0x2   :  { %11 = vsyncpa [#allocation6], 0 }
   0x3   :  { %12 = vsyncpa [#allocation4], 0 }
   0x4   :  { %14 = vsyncpa [#allocation4 + $0x1], 0  ;;  %s4756_s12 = smov 0   ;;  %s4758_s13 = smov 0  }
   0x5   :  { %s4760_s14 = smov 0   ;;  %s4762_s15 = smov 0  }
   0x6 LB: > { %s4777_s16 = sadd.s32 4294967295, %s4726_s15   ;;  %s3641_s17 = sadd.s32 4294967294, %s4726_s15   ;;  %s4726_s15 = sphi %s4762_s15, %s8471_s15   ;;  %s4722_s14 = sphi %s4760_s14, %s8470_s14   ;;  %s4718_s13 = sphi %s4758_s13, %s8469_s13   ;;  %s4714_s12 = sphi %s4756_s12, %s8468_s12  }
   0x7   : > { %p40_p0 = scmp.ne.s32.totalorder %s4718_s13, %s4714_s12  ;;  %p41_p1 = scmp.eq.s32.totalorder %s4777_s16, 0 }
   0x8   : > { %p106_p2 = scmp.eq.s32.totalorder %s4777_s16, 1  ;;  %p112_p3 = scmp.eq.s32.totalorder %s3641_s17, 1 }
   0x9   : > { %p4786_p4 = por %p41_p1, %p40_p0  ;;  %p3642_p5 = scmp.ge.s32.totalorder %s4726_s15, 1 }
   0xa   : > { %p4791_p6 = por %p112_p3, %p40_p0  ;;  %p119_p7 = scmp.lt.s32.totalorder %s4726_s15, 3 }
   0xb   : > { %s130_s22 = sshll.u32 %s8268_s1, 4  ;;  %s4728_s24 = smov [#allocation5]   ;;  %s131_s22 = int_to_ptr.hbm [resolvable:$true] %s130_s22 }
   0xc   : > { %p4799_p8 = pnand %p3642_p5, %p119_p7  ;;  %s132_s25 = sshll.u32 %s4728_s24, 4  ;;  %s133_s25 = int_to_ptr.vmem [resolvable:$true] %s132_s25 }
   0xd   : > { %s145_s28 = sshll.u32 %s8269_s2, 4  ;;  %s4729_s29 = smov 64   ;;  %s146_s28 = int_to_ptr.hbm [resolvable:$true] %s145_s28 }
   0xe   : > { %p3737_p9 = pneg %p4799_p8  ;;  %s4730_s30 = smov 4  }
   0xf   : > { %s4731_s4 = smov [#allocation7]   ;;  %s4812_s6 = sadd.s32 1, %s4726_s15  }
  0x10   : > { %p3738_p10 = pnand %p3737_p9, %p41_p1  ;;  %s147_s5 = sshll.u32 %s4731_s4, 4  ;;  %s148_s5 = int_to_ptr.vmem [resolvable:$true] %s147_s5 }
  0x11   : > { %s27_s7 = sadd.s32 1, %s4722_s14  ;;  %s24_s8 = ssub.s32 %s4726_s15, %s4812_s6 }
  0x12   : > { %3740 = dma.hbm_to_vmem [thread:$0]  (!%p3738_p10), %s131_s22, 1024, %s133_s25, [#allocation6], %s4729_s29, %s4729_s29, %s4730_s30  }
  0x13   : > { %3743 = dma.hbm_to_vmem [thread:$0]  (!%p3738_p10), %s146_s28, 64, %s148_s5, [#allocation6]  }
  0x14   : > { %p34_p12 = scmp.ne.s32.totalorder %s4722_s14, %s4718_s13  ;;  %p25_p13 = scmp.eq.s32.totalorder %s24_s8, 0 }
  0x15   : > { %p35_p0 = scmp.eq.s32.totalorder %s4726_s15, 0  ;;  %p3754_p5 = scmp.lt.s32.totalorder %s4726_s15, 2 }
  0x16   : > { %p4822_p3 = por %p106_p2, %p34_p12  ;;  %s158_s11 = sand.u32 1, %s4722_s14  }
  0x17   : > { %s4828_s10 = scalar_select %p25_p13, %s4722_s14, %s27_s7  }
  0x18   : > { %p36_p7 = por %p35_p0, %p34_p12  ;;  %s3646_s17 = sshll.u32 %s158_s11, 8 }
  0x19   : > { %s3691_s20 = sshll.u32 %s4726_s15, 8  ;;  %s162_s25 = scalar_lea.vmem [#allocation2], %s3646_s17 }
  0x1a   : > { %s167_s24 = scalar_lea.hbm %s8267_s0, %s3691_s20  ;;  %s170_s26 = sshll.u32 %s162_s25, 4  ;;  %s171_s26 = int_to_ptr.vmem [resolvable:$true] %s170_s26 }
  0x1b   : > { %s168_s27 = sshll.u32 %s167_s24, 4  ;;  %p4835_p2 = pnand %p3754_p5, %p36_p7  ;;  %s169_s27 = int_to_ptr.hbm [resolvable:$true] %s168_s27 }
  0x1c   : > { %s159_s29 = scalar_lea.sflag [#allocation3], %s158_s11  ;;  %s4626_s30 = sshra.s32 %s169_s27, 4  ;;  %s4627_s30 = int_to_ptr.hbm [resolvable:$true] %s4626_s30 }
  0x1d   : > { %s4628_s4 = scalar_lea.hbm %s4627_s30, 256  ;;  %p4630_p10 = pneg %p4835_p2 }
  0x1e   : > { %p4629_p9 = scmp.ne.s32.totalorder %s4627_s30, %s4628_s4  ;;  %s4633_s8 = scalar_lea.hbm %s8267_s0, 512 }
  0x1f   : > { %p4634_p0 = scmp.lt.s32.totalorder %s4627_s30, %s8267_s0  ;;  %p4635_p5 = scmp.lt.s32.totalorder %s4633_s8, %s4628_s4 }
  0x20   : > { %p4631_p12 = pnand %p4630_p10, %p4629_p9 }
  0x21   : > { %p4636_p7 = por %p4635_p5, %p4634_p0 }
  0x22   : > { %p4632_p13 = pneg %p4631_p12 }
  0x24   : > { %p4637_p11 = pnand %p4636_p7, %p4632_p13 }
  0x26   : > { %4640 = shalt.err (!%p4637_p11)
}
  0x27   : > { %s4732_s11 = smov 128   ;;  %s4733_s21 = smov 8  }
  0x28   : > { %3747 = dma.hbm_to_vmem [thread:$0]  (!%p4835_p2), %s169_s27, 4096, %s171_s26, %s159_s29, %s4732_s11, %s4732_s11, %s4733_s21  }
  0x29   : > { %182 = sbr.rel (%p4799_p8) target bundleno = 1051 (0x41b), region = 32 }
  0x2e   : > { %s4852_s22 = sand.u32 1, %s4718_s13  }
  0x2f   : > { %s3650_s24 = sshll.u32 %s4852_s22, 8  ;;  %s185_s25 = scalar_lea.sflag [#allocation3], %s4852_s22 }
  0x30   : > { %s4858_s30 = scalar_lea.vmem [#allocation2], %s3650_s24 }
  0x31   : > { %4701 = dma.done.wait (%p4786_p4), %s185_s25, 4096  }
  0x32   : > { %4703 = vsyncadd (%p4786_p4), %s185_s25, 4294963200 }
  0x33   : > { %4705 = dma.done.wait (%p41_p1), [#allocation6], 1088  }
  0x34   : > { %4707 = vsyncadd (%p41_p1), [#allocation6], 4294966208  ;;  %v248_v0 = vld [vmem:[%s4858_s30 + $0xc0] sm:$0xff]  ;;  %v249_v6 = vld [vmem:[%s4858_s30 + $0xc8] sm:$0xff]  ;;  %s7271_s18 = scalar_lea.vmem [#allocation8], %s3650_s24  ;;  %s3700_s23 = sshll.u32 %s4777_s16, 8 }
  0x35   : > { %v240_v1 = vld [vmem:[%s4858_s30 + $0x80] sm:$0xff]  ;;  %v4871_v3 = vmul.f32 0.3155117, %v248_v0  ;;  %v241_v7 = vld [vmem:[%s4858_s30 + $0x88] sm:$0xff]  ;;  %v4886_v12 = vmul.f32 0.3155117, %v249_v6  ;;  %s3545_s28 = scalar_lea.hbm %s8270_s3, %s3700_s23 }
  0x36   : > { %v224_v2 = vld [vmem:[%s4858_s30] sm:$0xff]  ;;  %v4873_v4 = vmul.f32 0.3155117, %v240_v1  ;;  %v225_v11 = vld [vmem:[%s4858_s30 + $0x8] sm:$0xff]  ;;  %v4888_v13 = vmul.f32 0.3155117, %v241_v7 }
  0x37   : > { %v4875_v5 = vmul.f32 0.3155117, %v224_v2  ;;  %v313_v8 = vmul.f32 %v4871_v3, %v4871_v3  ;;  %v4890_v14 = vmul.f32 0.3155117, %v225_v11  ;;  %v314_v15 = vmul.f32 %v4886_v12, %v4886_v12  ;;  %v233_v18 = vld [vmem:[%s4858_s30 + $0x48] sm:$0xff]  ;;  %v232_v19 = vld [vmem:[%s4858_s30 + $0x40] sm:$0xff] }
  0x38   : > { %v305_v9 = vmul.f32 %v4873_v4, %v4873_v4  ;;  %v306_v16 = vmul.f32 %v4888_v13, %v4888_v13  ;;  %v242_v20 = vld [vmem:[%s4858_s30 + $0x90] sm:$0xff]  ;;  %v4901_v21 = vmul.f32 0.3155117, %v233_v18  ;;  %v4903_v22 = vmul.f32 0.3155117, %v232_v19  ;;  %v243_v28 = vld [vmem:[%s4858_s30 + $0x98] sm:$0xff] }
  0x39   : > { %v289_v10 = vmul.f32 %v4875_v5, %v4875_v5  ;;  %369 = vadd.xlane.f32.xlu1 %v313_v8  ;;  %v290_v17 = vmul.f32 %v4890_v14, %v4890_v14  ;;  %v4905_v23 = vmul.f32 0.3155117, %v242_v20  ;;  %v250_v27 = vld [vmem:[%s4858_s30 + $0xd0] sm:$0xff]  ;;  %v251_v29 = vld [vmem:[%s4858_s30 + $0xd8] sm:$0xff]  ;;  %v4918_v31 = vmul.f32 0.3155117, %v243_v28 }
  0x3a   : > { %353 = vadd.xlane.f32.xlu0 %v305_v9  ;;  %v298_v24 = vmul.f32 %v4901_v21, %v4901_v21  ;;  %v297_v25 = vmul.f32 %v4903_v22, %v4903_v22  ;;  %v4916_v30 = vmul.f32 0.3155117, %v250_v27  ;;  %v4920_v32 = vmul.f32 0.3155117, %v251_v29  ;;  %v227_v36 = vld [vmem:[%s4858_s30 + $0x18] sm:$0xff]  ;;  %v226_v37 = vld [vmem:[%s4858_s30 + $0x10] sm:$0xff] }
  0x3b   : > { %321 = vadd.xlane.f32.xlu2 %v289_v10  ;;  %v307_v26 = vmul.f32 %v4905_v23, %v4905_v23  ;;  %v308_v34 = vmul.f32 %v4918_v31, %v4918_v31  ;;  %v234_v38 = vld [vmem:[%s4858_s30 + $0x50] sm:$0xff]  ;;  %v4931_v39 = vmul.f32 0.3155117, %v227_v36  ;;  %v4933_v40 = vmul.f32 0.3155117, %v226_v37  ;;  %v244_v45 = vld [vmem:[%s4858_s30 + $0xa0] sm:$0xff] }
  0x3c   : > { %v315_v33 = vmul.f32 %v4916_v30, %v4916_v30  ;;  %v316_v35 = vmul.f32 %v4920_v32, %v4920_v32  ;;  %v4935_v41 = vmul.f32 0.3155117, %v234_v38  ;;  %v235_v46 = vld [vmem:[%s4858_s30 + $0x58] sm:$0xff]  ;;  %v245_v47 = vld [vmem:[%s4858_s30 + $0xa8] sm:$0xff]  ;;  %v4946_v48 = vmul.f32 0.3155117, %v244_v45 }
  0x3d   : > { %v292_v42 = vmul.f32 %v4931_v39, %v4931_v39  ;;  %v291_v43 = vmul.f32 %v4933_v40, %v4933_v40  ;;  %v4948_v49 = vmul.f32 0.3155117, %v235_v46  ;;  %v4950_v50 = vmul.f32 0.3155117, %v245_v47  ;;  %v253_v54 = vld [vmem:[%s4858_s30 + $0xe8] sm:$0xff]  ;;  %v252_v55 = vld [vmem:[%s4858_s30 + $0xe0] sm:$0xff] }
  0x3e   : > { %v299_v44 = vmul.f32 %v4935_v41, %v4935_v41  ;;  %v309_v51 = vmul.f32 %v4946_v48, %v4946_v48  ;;  %v228_v56 = vld [vmem:[%s4858_s30 + $0x20] sm:$0xff]  ;;  %v4961_v57 = vmul.f32 0.3155117, %v253_v54  ;;  %v4963_v58 = vmul.f32 0.3155117, %v252_v55  ;;  %v229_v0 = vld [vmem:[%s4858_s30 + $0x28] sm:$0xff] }
  0x3f   : > { %v300_v52 = vmul.f32 %v4948_v49, %v4948_v49  ;;  %v310_v53 = vmul.f32 %v4950_v50, %v4950_v50  ;;  %v4965_v59 = vmul.f32 0.3155117, %v228_v56  ;;  %v236_v63 = vld [vmem:[%s4858_s30 + $0x60] sm:$0xff]  ;;  %v237_v1 = vld [vmem:[%s4858_s30 + $0x68] sm:$0xff]  ;;  %v4978_v6 = vmul.f32 0.3155117, %v229_v0 }
  0x40   : > { %8332 = vst [vmem:[#allocation12_spill] sm:$0xff] %v4961_v57  ;;  %v318_v60 = vmul.f32 %v4961_v57, %v4961_v57  ;;  %v317_v61 = vmul.f32 %v4963_v58, %v4963_v58  ;;  %v4976_v2 = vmul.f32 0.3155117, %v236_v63  ;;  %v4980_v7 = vmul.f32 0.3155117, %v237_v1  ;;  %v247_v11 = vld [vmem:[%s4858_s30 + $0xb8] sm:$0xff] }
  0x41   : > { %371 = vadd.xlane.f32.xlu1 %v314_v15  ;;  %8333 = vst [vmem:[#allocation13_spill] sm:$0xff] %v4965_v59  ;;  %v293_v62 = vmul.f32 %v4965_v59, %v4965_v59  ;;  %v294_v9 = vmul.f32 %v4978_v6, %v4978_v6  ;;  %v246_v15 = vld [vmem:[%s4858_s30 + $0xb0] sm:$0xff]  ;;  %v255_v27 = vld [vmem:[%s4858_s30 + $0xf8] sm:$0xff]  ;;  %v3693_v1 = vld [vmem:[#allocation5 + $0x8] sm:$0xff]  ;;  %s3546_s29 = sshll.u32 %s7271_s18, 4  ;;  %s3548_s4 = sshll.u32 %s3545_s28, 4  ;;  %s3547_s29 = int_to_ptr.vmem [resolvable:$true] %s3546_s29  ;;  %s3549_s4 = int_to_ptr.hbm [resolvable:$true] %s3548_s4 }
  0x42   : > { %355 = vadd.xlane.f32.xlu0 %v306_v16  ;;  %8334 = vst [vmem:[#allocation14_spill] sm:$0xff] %v4976_v2  ;;  %v301_v8 = vmul.f32 %v4976_v2, %v4976_v2  ;;  %v302_v10 = vmul.f32 %v4980_v7, %v4980_v7  ;;  %v254_v16 = vld [vmem:[%s4858_s30 + $0xf0] sm:$0xff]  ;;  %v4993_v18 = vmul.f32 0.3155117, %v246_v15  ;;  %v231_v28 = vld [vmem:[%s4858_s30 + $0x38] sm:$0xff]  ;;  %s3534_s16 = scalar_lea.sflag [#allocation4], %s4852_s22 }
  0x43   : > { %323 = vadd.xlane.f32.xlu2 %v290_v17  ;;  %8335 = vst [vmem:[#allocation15_spill] sm:$0xff] %v4978_v6  ;;  %v4991_v17 = vmul.f32 0.3155117, %v247_v11  ;;  %v4995_v19 = vmul.f32 0.3155117, %v254_v16  ;;  %v239_v38 = vld [vmem:[%s4858_s30 + $0x78] sm:$0xff] }
  0x44   : > { %8336 = vst [vmem:[#allocation16_spill] sm:$0xff] %v4980_v7  ;;  %v3699_v47 = vld [vmem:[#allocation5 + $0x38] sm:$0xff]  ;;  %s4670_s5 = sshra.s32 %s3549_s4, 4  ;;  %s4676_s20 = scalar_lea.hbm %s8270_s3, 512  ;;  %s4671_s5 = int_to_ptr.hbm [resolvable:$true] %s4670_s5 }
  0x45   : > { %8337 = vst [vmem:[#allocation17_spill] sm:$0xff] %v4991_v17  ;;  %v312_v20 = vmul.f32 %v4991_v17, %v4991_v17  ;;  %1169 = vmatpush.bf16.msra.mxu0 %v3699_v47  ;;  %3702 = vmatpush.bf16.msra.mxu2 %v3699_v47  ;;  %s4672_s7 = scalar_lea.hbm %s4671_s5, 256  ;;  %p4677_p11 = scmp.lt.s32.totalorder %s4671_s5, %s8270_s3 }
  0x46   : > { %8338 = vst [vmem:[#allocation18_spill] sm:$0xff] %v4993_v18  ;;  %3703 = vmatpush.bf16.msra.mxu3 %v3699_v47  ;;  %3701 = vmatpush.bf16.msra.mxu1 %v3699_v47  ;;  %p4673_p1 = scmp.ne.s32.totalorder %s4671_s5, %s4672_s7  ;;  %p4678_p2 = scmp.lt.s32.totalorder %s4676_s20, %s4672_s7 }
  0x47   : > { %8339 = vst [vmem:[#allocation19_spill] sm:$0xff] %v4995_v19 }
  0x48   : > { %p4674_p4 = pnand %p4673_p1, %p4822_p3  ;;  %p4679_p9 = por %p4678_p2, %p4677_p11 }
  0x49   : > { %339 = vadd.xlane.f32.xlu1 %v298_v24  ;;  %v311_v24 = vmul.f32 %v4993_v18, %v4993_v18 }
  0x4a   : > { %337 = vadd.xlane.f32.xlu0 %v297_v25  ;;  %v319_v25 = vmul.f32 %v4995_v19, %v4995_v19  ;;  %p4675_p8 = pneg %p4674_p4 }
  0x4b   : > { %357 = vadd.xlane.f32.xlu2 %v307_v26  ;;  %v230_v26 = vld [vmem:[%s4858_s30 + $0x30] sm:$0xff] }
  0x4c   : > { %v5006_v29 = vmul.f32 0.3155117, %v230_v26  ;;  %p4680_p10 = pnand %p4679_p9, %p4675_p8 }
  0x4e   : > { %8340 = vst [vmem:[#allocation20_spill] sm:$0xff] %v5006_v29 }
  0x51   : > { %373 = vadd.xlane.f32.xlu1 %v315_v33  ;;  %v5008_v33 = vmul.f32 0.3155117, %v255_v27 }
  0x52   : > { %359 = vadd.xlane.f32.xlu0 %v308_v34  ;;  %v5010_v34 = vmul.f32 0.3155117, %v231_v28 }
  0x53   : > { %375 = vadd.xlane.f32.xlu2 %v316_v35  ;;  %8341 = vst [vmem:[#allocation21_spill] sm:$0xff] %v5008_v33  ;;  %v295_v35 = vmul.f32 %v5006_v29, %v5006_v29  ;;  %v320_v36 = vmul.f32 %v5008_v33, %v5008_v33 }
  0x54   : > { %8342 = vst [vmem:[#allocation22_spill] sm:$0xff] %v5010_v34  ;;  %v296_v37 = vmul.f32 %v5010_v34, %v5010_v34 }
  0x59   : > { %327 = vadd.xlane.f32.xlu1 %v292_v42  ;;  %v238_v42 = vld [vmem:[%s4858_s30 + $0x70] sm:$0xff] }
  0x5a   : > { %325 = vadd.xlane.f32.xlu0 %v291_v43  ;;  %v5020_v43 = vmul.f32 0.3155117, %v239_v38 }
  0x5b   : > { %341 = vadd.xlane.f32.xlu2 %v299_v44  ;;  %v5022_v44 = vmul.f32 0.3155117, %v238_v42 }
  0x5c   : > { %8343 = vst [vmem:[#allocation23_spill] sm:$0xff] %v5020_v43  ;;  %v304_v45 = vmul.f32 %v5020_v43, %v5020_v43 }
  0x5d   : > { %8344 = vst [vmem:[#allocation24_spill] sm:$0xff] %v5022_v44  ;;  %v303_v46 = vmul.f32 %v5022_v44, %v5022_v44 }
  0x61   : > { %361 = vadd.xlane.f32.xlu1 %v309_v51  ;;  %v3698_v51 = vld [vmem:[#allocation5 + $0x30] sm:$0xff] }
  0x62   : > { %343 = vadd.xlane.f32.xlu0 %v300_v52  ;;  %1170 = vmatpush.bf16.msra.mxu0 %v3698_v51  ;;  %v3697_v52 = vld [vmem:[#allocation5 + $0x28] sm:$0xff] }
  0x63   : > { %363 = vadd.xlane.f32.xlu2 %v310_v53  ;;  %3705 = vmatpush.bf16.msra.mxu2 %v3698_v51  ;;  %v3696_v53 = vld [vmem:[#allocation5 + $0x20] sm:$0xff] }
  0x64   : > { %3706 = vmatpush.bf16.msra.mxu3 %v3698_v51  ;;  %3704 = vmatpush.bf16.msra.mxu1 %v3698_v51 }
  0x66   : > { %1171 = vmatpush.bf16.msra.mxu0 %v3697_v52 }
  0x67   : > { %3708 = vmatpush.bf16.msra.mxu2 %v3697_v52 }
  0x68   : > { %3709 = vmatpush.bf16.msra.mxu3 %v3697_v52  ;;  %3707 = vmatpush.bf16.msra.mxu1 %v3697_v52 }
  0x69   : > { %379 = vadd.xlane.f32.xlu1 %v318_v60  ;;  %v3695_v60 = vld [vmem:[#allocation5 + $0x18] sm:$0xff] }
  0x6a   : > { %377 = vadd.xlane.f32.xlu0 %v317_v61  ;;  %1172 = vmatpush.bf16.msra.mxu0 %v3696_v53  ;;  %v3694_v61 = vld [vmem:[#allocation5 + $0x10] sm:$0xff] }
  0x6b   : > { %329 = vadd.xlane.f32.xlu2 %v293_v62  ;;  %3711 = vmatpush.bf16.msra.mxu2 %v3696_v53 }
  0x6c   : > { %3712 = vmatpush.bf16.msra.mxu3 %v3696_v53  ;;  %3710 = vmatpush.bf16.msra.mxu1 %v3696_v53 }
  0x6e   : > { %1173 = vmatpush.bf16.msra.mxu0 %v3695_v60 }
  0x6f   : > { %3714 = vmatpush.bf16.msra.mxu2 %v3695_v60 }
  0x70   : > { %3715 = vmatpush.bf16.msra.mxu3 %v3695_v60  ;;  %3713 = vmatpush.bf16.msra.mxu1 %v3695_v60 }
  0x71   : > { %345 = vadd.xlane.f32.xlu1 %v301_v8 }
  0x72   : > { %331 = vadd.xlane.f32.xlu0 %v294_v9  ;;  %1174 = vmatpush.bf16.msra.mxu0 %v3694_v61 }
  0x73   : > { %347 = vadd.xlane.f32.xlu2 %v302_v10  ;;  %3717 = vmatpush.bf16.msra.mxu2 %v3694_v61  ;;  %v3692_v10 = vld [vmem:[#allocation5] sm:$0xff] }
  0x74   : > { %3718 = vmatpush.bf16.msra.mxu3 %v3694_v61  ;;  %3716 = vmatpush.bf16.msra.mxu1 %v3694_v61 }
  0x76   : > { %1175 = vmatpush.bf16.msra.mxu0 %v3693_v1 }
  0x77   : > { %3720 = vmatpush.bf16.msra.mxu2 %v3693_v1 }
  0x78   : > { %3721 = vmatpush.bf16.msra.mxu3 %v3693_v1  ;;  %3719 = vmatpush.bf16.msra.mxu1 %v3693_v1 }
  0x79   : > { %367 = vadd.xlane.f32.xlu1 %v312_v20 }
  0x7a   : > { %365 = vadd.xlane.f32.xlu0 %v311_v24  ;;  %1176 = vmatpush.bf16.msra.mxu0 %v3692_v10 }
  0x7b   : > { %381 = vadd.xlane.f32.xlu2 %v319_v25  ;;  %3723 = vmatpush.bf16.msra.mxu2 %v3692_v10 }
  0x7c   : > { %3724 = vmatpush.bf16.msra.mxu3 %v3692_v10  ;;  %3722 = vmatpush.bf16.msra.mxu1 %v3692_v10 }
  0x81   : > { %333 = vadd.xlane.f32.xlu1 %v295_v35 }
  0x82   : > { %383 = vadd.xlane.f32.xlu0 %v320_v36 }
  0x83   : > { %335 = vadd.xlane.f32.xlu2 %v296_v37 }
  0x89   : > { %351 = vadd.xlane.f32.xlu1 %v304_v45 }
  0x8a   : > { %349 = vadd.xlane.f32.xlu0 %v303_v46 }
  0xac   : > { %v5028_v54 = vpop.xlane.xlu1 %369 }
  0xad   : > { %v5030_v55 = vpop.xlane.xlu0 %353  ;;  %3798 = vrsqrt.f32 %v5028_v54  ;;  %vm680_vm0 = vcmp.eq.f32.partialorder %v5028_v54, inf  ;;  %vm682_vm13 = vcmp.eq.f32.partialorder %v5028_v54, 0.0 }
  0xae   : > { %v5032_v56 = vpop.xlane.xlu2 %321  ;;  %3800 = vrsqrt.f32 %v5030_v55  ;;  %vm584_vm1 = vcmp.eq.f32.partialorder %v5030_v55, inf  ;;  %vm586_vm10 = vcmp.eq.f32.partialorder %v5030_v55, 0.0 }
  0xaf   : > { %3802 = vrsqrt.f32 %v5032_v56  ;;  %vm392_vm2 = vcmp.eq.f32.partialorder %v5032_v56, inf  ;;  %vm394_vm4 = vcmp.eq.f32.partialorder %v5032_v56, 0.0 }
  0xb3   : > { %v3799_v8 = vpop.eup %3798 }
  0xb4   : > { %v5036_v62 = vpop.xlane.xlu1 %371  ;;  %v3801_v9 = vpop.eup %3800  ;;  %v674_v20 = vmul.f32 %v3799_v8, %v5028_v54 }
  0xb5   : > { %v5038_v63 = vpop.xlane.xlu0 %355  ;;  %3804 = vrsqrt.f32 %v5036_v62  ;;  %v3803_v11 = vpop.eup %3802  ;;  %v578_v24 = vmul.f32 %v3801_v9, %v5030_v55  ;;  %vm692_vm3 = vcmp.eq.f32.partialorder %v5036_v62, inf  ;;  %vm694_vm14 = vcmp.eq.f32.partialorder %v5036_v62, 0.0 }
  0xb6   : > { %v5040_v0 = vpop.xlane.xlu2 %323  ;;  %v386_v27 = vmul.f32 %v3803_v11, %v5032_v56  ;;  %v675_v36 = vmul.f32 %v3799_v8, %v674_v20  ;;  %vm596_vm5 = vcmp.eq.f32.partialorder %v5038_v63, inf  ;;  %vm598_vm11 = vcmp.eq.f32.partialorder %v5038_v63, 0.0 }
  0xb7   : > { %3806 = vrsqrt.f32 %v5040_v0  ;;  %v579_v37 = vmul.f32 %v3801_v9, %v578_v24  ;;  %vm404_vm6 = vcmp.eq.f32.partialorder %v5040_v0, inf  ;;  %vm406_vm7 = vcmp.eq.f32.partialorder %v5040_v0, 0.0 }
  0xb8   : > { %3808 = vrsqrt.f32 %v5038_v63  ;;  %v387_v45 = vmul.f32 %v3803_v11, %v386_v27  ;;  %v676_v52 = vmul.f32 0.5, %v675_v36 }
  0xb9   : > { %v580_v53 = vmul.f32 0.5, %v579_v37 }
  0xba   : > { %v388_v20 = vmul.f32 0.5, %v387_v45  ;;  %v677_v44 = vsub.f32 1.5, %v676_v52 }
  0xbb   : > { %v5055_v26 = vpop.eup %3804  ;;  %v581_v33 = vsub.f32 1.5, %v580_v53 }
  0xbc   : > { %v5046_v15 = vpop.xlane.xlu1 %339  ;;  %v686_v38 = vmul.f32 %v5055_v26, %v5036_v62  ;;  %v389_v19 = vsub.f32 1.5, %v388_v20  ;;  %v678_v53 = vmul.f32 %v3799_v8, %v677_v44 }
  0xbd   : > { %v5048_v16 = vpop.xlane.xlu0 %337  ;;  %3810 = vrsqrt.f32 %v5046_v15  ;;  %v5058_v28 = vpop.eup %3806  ;;  %vm500_vm8 = vcmp.eq.f32.partialorder %v5046_v15, inf }
  0xbe   : > { %v5053_v25 = vpop.xlane.xlu2 %357  ;;  %3812 = vrsqrt.f32 %v5048_v16  ;;  %v5061_v35 = vpop.eup %3808  ;;  %v398_v46 = vmul.f32 %v5058_v28, %v5040_v0  ;;  %v687_v1 = vmul.f32 %v5055_v26, %v686_v38  ;;  %vm488_vm9 = vcmp.eq.f32.partialorder %v5048_v16, inf }
  0xbf   : > { %3814 = vrsqrt.f32 %v5053_v25  ;;  %v590_v47 = vmul.f32 %v5061_v35, %v5038_v63  ;;  %vm608_vm12 = vcmp.eq.f32.partialorder %v5053_v25, inf }
  0xc0   : > { %v399_v24 = vmul.f32 %v5058_v28, %v398_v46  ;;  %v688_v45 = vmul.f32 0.5, %v687_v1  ;;  %v582_v1 = vmul.f32 %v3801_v9, %v581_v33 }
  0xc1   : > { %v591_v43 = vmul.f32 %v5061_v35, %v590_v47 }
  0xc2   : > { %v400_v34 = vmul.f32 0.5, %v399_v24  ;;  %v689_v20 = vsub.f32 1.5, %v688_v45  ;;  %v679_v45 = vmul.f32 %v678_v53, %v5028_v54 }
  0xc3   : > { %v5065_v42 = vpop.eup %3810  ;;  %v592_v47 = vmul.f32 0.5, %v591_v43  ;;  %v390_v43 = vmul.f32 %v3803_v11, %v389_v19 }
  0xc4   : > { %v5072_v51 = vpop.xlane.xlu1 %373  ;;  %v494_v60 = vmul.f32 %v5065_v42, %v5046_v15  ;;  %v5076_v61 = vpop.eup %3812  ;;  %v401_v6 = vsub.f32 1.5, %v400_v34  ;;  %v690_v34 = vmul.f32 %v5055_v26, %v689_v20  ;;  %v407_v20 = vand.u32 2147483648, %v5040_v0 }
  0xc5   : > { %v5079_v10 = vpop.xlane.xlu0 %359  ;;  %3816 = vrsqrt.f32 %v5072_v51  ;;  %v482_v36 = vmul.f32 %v5076_v61, %v5048_v16  ;;  %v5088_v37 = vpop.eup %3814  ;;  %v593_v8 = vsub.f32 1.5, %v592_v47  ;;  %v391_v53 = vmul.f32 %v390_v43, %v5032_v56 }
  0xc6   : > { %v5083_v27 = vpop.xlane.xlu2 %375  ;;  %v495_v38 = vmul.f32 %v5065_v42, %v494_v60  ;;  %3818 = vrsqrt.f32 %v5079_v10  ;;  %v602_v46 = vmul.f32 %v5088_v37, %v5053_v25  ;;  %v5137_v43 = vsel %vm680_vm0, %v5028_v54, %v679_v45 }
  0xc7   : > { %3820 = vrsqrt.f32 %v5083_v27  ;;  %v483_v29 = vmul.f32 %v5076_v61, %v482_v36  ;;  %v395_v36 = vand.u32 2147483648, %v5032_v56  ;;  %v594_v26 = vmul.f32 %v5061_v35, %v593_v8 }
  0xc8   : > { %v496_v18 = vmul.f32 0.5, %v495_v38  ;;  %v603_v24 = vmul.f32 %v5088_v37, %v602_v46  ;;  %v583_v46 = vmul.f32 %v582_v1, %v5030_v55  ;;  %v402_v1 = vmul.f32 %v5058_v28, %v401_v6 }
  0xc9   : > { %v484_v9 = vmul.f32 0.5, %v483_v29  ;;  %v691_v8 = vmul.f32 %v690_v34, %v5036_v62  ;;  %vm704_vm15 = vcmp.eq.f32.partialorder %v5072_v51, inf  ;;  %vm620_vm0 = vcmp.eq.f32.partialorder %v5079_v10, inf }
  0xca   : > { %v497_v11 = vsub.f32 1.5, %v496_v18  ;;  %v604_v60 = vmul.f32 0.5, %v603_v24  ;;  %v5148_v35 = vsel %vm584_vm1, %v5030_v55, %v583_v46  ;;  %vm716_vm1 = vcmp.eq.f32.partialorder %v5083_v27, inf }
  0xcb   : > { %v5099_v52 = vpop.eup %3816  ;;  %v485_v24 = vsub.f32 1.5, %v484_v9  ;;  %v693_v7 = vsel %vm692_vm3, %v5036_v62, %v691_v8  ;;  %vm502_vm3 = vcmp.eq.f32.partialorder %v5046_v15, 0.0 }
  0xcc   : > { %v5097_v17 = vpop.xlane.xlu1 %327  ;;  %v5105_v2 = vpop.eup %3818  ;;  %v698_v38 = vmul.f32 %v5099_v52, %v5072_v51  ;;  %v498_v6 = vmul.f32 %v5065_v42, %v497_v11  ;;  %v605_v9 = vsub.f32 1.5, %v604_v60  ;;  %v393_v42 = vsel %vm392_vm2, %v5032_v56, %v391_v53 }
  0xcd   : > { %v5109_v44 = vpop.eup %3820  ;;  %v614_v29 = vmul.f32 %v5105_v2, %v5079_v10  ;;  %3822 = vrsqrt.f32 %v5097_v17  ;;  %v5123_v47 = vpop.xlane.xlu0 %325  ;;  %v403_v11 = vmul.f32 %v402_v1, %v5040_v0  ;;  %v595_v60 = vmul.f32 %v594_v26, %v5038_v63 }
  0xce   : > { %v710_v18 = vmul.f32 %v5109_v44, %v5083_v27  ;;  %v699_v33 = vmul.f32 %v5099_v52, %v698_v38  ;;  %v5143_v19 = vpop.xlane.xlu2 %341  ;;  %3824 = vrsqrt.f32 %v5123_v47  ;;  %v486_v34 = vmul.f32 %v5076_v61, %v485_v24 }
  0xcf   : > { %v615_v38 = vmul.f32 %v5105_v2, %v614_v29  ;;  %3826 = vrsqrt.f32 %v5143_v19  ;;  %v499_v53 = vmul.f32 %v498_v6, %v5046_v15  ;;  %v606_v26 = vmul.f32 %v5088_v37, %v605_v9 }
  0xd0   : > { %v711_v28 = vmul.f32 %v5109_v44, %v710_v18  ;;  %v700_v29 = vmul.f32 0.5, %v699_v33  ;;  %v405_v24 = vsel %vm404_vm6, %v5040_v0, %v403_v11  ;;  %v396_v8 = vsel %vm394_vm4, %v395_v36, %v393_v42 }
  0xd1   : > { %v616_v33 = vmul.f32 0.5, %v615_v38  ;;  %v597_v37 = vsel %vm596_vm5, %v5038_v63, %v595_v60  ;;  %v487_v9 = vmul.f32 %v486_v34, %v5048_v16  ;;  %v5201_v56 = vsel %vm500_vm8, %v5046_v15, %v499_v53 }
  0xd2   : > { %v712_v6 = vmul.f32 0.5, %v711_v28  ;;  %v701_v38 = vsub.f32 1.5, %v700_v29  ;;  %v607_v34 = vmul.f32 %v606_v26, %v5053_v25  ;;  %v408_v28 = vsel %vm406_vm7, %v407_v20, %v405_v24 }
  0xd3   : > { %v5161_v46 = vpop.eup %3822  ;;  %v617_v29 = vsub.f32 1.5, %v616_v33  ;;  %v769_v59 = vmax.f32 %v396_v8, 1e-15  ;;  %v770_v42 = vmax.f32 %v408_v28, 1e-15  ;;  %v5219_v60 = vsel %vm488_vm9, %v5048_v16, %v487_v9 }
  0xd4   : > { %v5152_v45 = vpop.xlane.xlu1 %361  ;;  %v422_v18 = vmul.f32 %v5161_v46, %v5097_v17  ;;  %v5196_v61 = vpop.eup %3824  ;;  %v713_v53 = vsub.f32 1.5, %v712_v6  ;;  %v702_v26 = vmul.f32 %v5099_v52, %v701_v38  ;;  %v8345_v24 = vand.u32 2147483648, %v5030_v55 }
  0xd5   : > { %3828 = vrsqrt.f32 %v5152_v45  ;;  %v5194_v11 = vpop.xlane.xlu0 %343  ;;  %v5206_v1 = vpop.eup %3826  ;;  %v618_v6 = vmul.f32 %v5105_v2, %v617_v29  ;;  %v8346_v9 = vand.u32 2147483648, %v5038_v63  ;;  %v5246_v28 = vsel %vm608_vm12, %v5053_v25, %v607_v34 }
  0xd6   : > { %v423_v36 = vmul.f32 %v5161_v46, %v422_v18  ;;  %3830 = vrsqrt.f32 %v5194_v11  ;;  %v5223_v20 = vpop.xlane.xlu2 %363  ;;  %v410_v18 = vmul.f32 %v5196_v61, %v5123_v47  ;;  %v506_v33 = vmul.f32 %v5206_v1, %v5143_v19 }
  0xd7   : > { %3832 = vtanh.f32 %v769_v59  ;;  %v588_v52 = vsel %vm586_vm10, %v8345_v24, %v5148_v35  ;;  %v600_v38 = vsel %vm598_vm11, %v8346_v9, %v597_v37  ;;  %v714_v55 = vmul.f32 %v5109_v44, %v713_v53 }
  0xd8   : > { %3834 = vtanh.f32 %v770_v42  ;;  %v424_v35 = vmul.f32 0.5, %v423_v36  ;;  %v703_v2 = vmul.f32 %v702_v26, %v5072_v51  ;;  %v785_v29 = vmax.f32 %v588_v52, 1e-15 }
  0xd9   : > { %3836 = vrcp.f32 %v769_v59  ;;  %v786_v59 = vmax.f32 %v600_v38, 1e-15  ;;  %vm490_vm2 = vcmp.eq.f32.partialorder %v5048_v16, 0.0  ;;  %v411_v63 = vmul.f32 %v5196_v61, %v410_v18 }
  0xda   : > { %3838 = vrcp.f32 %v770_v42  ;;  %v507_v37 = vmul.f32 %v5206_v1, %v506_v33  ;;  %v8347_v34 = vand.u32 2147483648, %v5028_v54  ;;  %v8348_v36 = vand.u32 2147483648, %v5036_v62 }
  0xdb   : > { %v5211_v57 = vpop.eup %3828  ;;  %3840 = vrsqrt.f32 %v5223_v20  ;;  %v619_v26 = vmul.f32 %v618_v6, %v5079_v10  ;;  %v715_v54 = vmul.f32 %v714_v55, %v5083_v27  ;;  %vm610_vm4 = vcmp.eq.f32.partialorder %v5053_v25, 0.0 }
  0xdc   : > { %v626_v8 = vmul.f32 %v5211_v57, %v5152_v45  ;;  %v5251_v24 = vpop.eup %3830  ;;  %v684_v44 = vsel %vm682_vm13, %v8347_v34, %v5137_v43  ;;  %v696_v42 = vsel %vm694_vm14, %v8348_v36, %v693_v7  ;;  %3842 = vtanh.f32 %v785_v29 }
  0xdd   : > { %v5265_v53 = vpop.eup %3832  ;;  %v793_v33 = vmax.f32 %v684_v44, 1e-15  ;;  %v425_v43 = vsub.f32 1.5, %v424_v35  ;;  %3844 = vtanh.f32 %v786_v59  ;;  %v794_v9 = vmax.f32 %v696_v42, 1e-15  ;;  %v5284_v36 = vpop.xlane.xlu0 %377 }
  0xde   : > { %8349 = vst [vmem:[#allocation25_spill] sm:$0xff] %v5265_v53  ;;  %v627_v18 = vmul.f32 %v5211_v57, %v626_v8  ;;  %v5270_v52 = vpop.eup %3834  ;;  %v5276_v7 = vsel %vm704_vm15, %v5072_v51, %v703_v2  ;;  %v518_v6 = vmul.f32 %v5251_v24, %v5194_v11  ;;  %3846 = vrcp.f32 %v785_v29  ;;  %v5281_v8 = vpop.xlane.xlu1 %379 }
  0xdf   : > { %8350 = vst [vmem:[#allocation26_spill] sm:$0xff] %v5270_v52  ;;  %v3837_v38 = vpop.eup %3836  ;;  %v412_v44 = vmul.f32 0.5, %v411_v63  ;;  %v508_v55 = vmul.f32 0.5, %v507_v37  ;;  %3848 = vrcp.f32 %v786_v59  ;;  %v5291_v2 = vsel %vm620_vm0, %v5079_v10, %v619_v26  ;;  %v5294_v0 = vpop.xlane.xlu2 %329 }
  0xe0   : > { %v3839_v34 = vpop.eup %3838  ;;  %v865_v35 = vmul.f32 %v3837_v38, %v5265_v53  ;;  %v628_v62 = vmul.f32 0.5, %v627_v18  ;;  %3850 = vtanh.f32 %v793_v33  ;;  %v5299_v63 = vsel %vm716_vm1, %v5083_v27, %v715_v54 }
  0xe1   : > { %v5286_v42 = vpop.eup %3840  ;;  %v866_v29 = vmul.f32 %v3839_v34, %v5270_v52  ;;  %v426_v59 = vmul.f32 %v5161_v46, %v425_v43  ;;  %3852 = vtanh.f32 %v794_v9  ;;  %v519_v26 = vmul.f32 %v5251_v24, %v518_v6 }
  0xe2   : > { %v5303_v38 = vpop.eup %3842  ;;  %v897_v18 = vmul.f32 %v865_v35, %v4875_v5  ;;  %3854 = vrcp.f32 %v793_v33  ;;  %v413_v54 = vsub.f32 1.5, %v412_v44  ;;  %v509_v53 = vsub.f32 1.5, %v508_v55 }
  0xe3   : > { %v898_v34 = vmul.f32 %v866_v29, %v4890_v14  ;;  %v5308_v52 = vpop.eup %3844  ;;  %v638_v46 = vmul.f32 %v5286_v42, %v5223_v20  ;;  %3856 = vrcp.f32 %v794_v9  ;;  %vm622_vm5 = vcmp.eq.f32.partialorder %v5079_v10, 0.0 }
  0xe4   : > { %v3847_v43 = vpop.eup %3846  ;;  %v629_v37 = vsub.f32 1.5, %v628_v62  ;;  %3858 = vrsqrt.f32 %v5281_v8  ;;  %v8351_v5 = vand.u32 2147483648, %v5048_v16  ;;  %v8352_v9 = vand.u32 2147483648, %v5046_v15 }
  0xe5   : > { %v1089_v6 = vpack.c.bf16 %v898_v34, %v897_v18  ;;  %v3849_v33 = vpop.eup %3848  ;;  %v881_v44 = vmul.f32 %v3847_v43, %v5303_v38  ;;  %3860 = vrsqrt.f32 %v5284_v36  ;;  %v520_v29 = vmul.f32 0.5, %v519_v26 }
  0xe6   : > { %v492_v14 = vsel %vm490_vm2, %v8351_v5, %v5219_v60  ;;  %v504_v62 = vsel %vm502_vm3, %v8352_v9, %v5201_v56  ;;  %v5327_v35 = vpop.eup %3850  ;;  %v882_v18 = vmul.f32 %v3849_v33, %v5308_v52  ;;  %3862 = vrsqrt.f32 %v5294_v0 }
  0xe7   : > { %v777_v55 = vmax.f32 %v492_v14, 1e-15  ;;  %1177 = vmatmul.bf16.vlgmr.msra.gmra.mxu0 %v1089_v6  ;;  %v778_v16 = vmax.f32 %v504_v62, 1e-15  ;;  %v5331_v60 = vpop.eup %3852  ;;  %vm706_vm6 = vcmp.eq.f32.partialorder %v5072_v51, 0.0  ;;  %v5335_v34 = vmul.f32 %v426_v59, %v5097_v17  ;;  %v5342_v14 = vpop.xlane.xlu1 %345 }
  0xe8   : > { %8353 = vst [vmem:[#allocation27_spill] sm:$0xff] %v5331_v60  ;;  %v639_v15 = vmul.f32 %v5286_v42, %v638_v46  ;;  %v3855_v43 = vpop.eup %3854  ;;  %v414_v26 = vmul.f32 %v5196_v61, %v413_v54  ;;  %v913_v6 = vmul.f32 %v881_v44, %v4873_v4  ;;  %v914_v5 = vmul.f32 %v882_v18, %v4888_v13  ;;  %v5348_v62 = vpop.xlane.xlu0 %331 }
  0xe9   : > { %3864 = vtanh.f32 %v777_v55  ;;  %v3857_v33 = vpop.eup %3856  ;;  %vm718_vm7 = vcmp.eq.f32.partialorder %v5083_v27, 0.0  ;;  %v510_v59 = vmul.f32 %v5206_v1, %v509_v53  ;;  %v630_v46 = vmul.f32 %v5211_v57, %v629_v37  ;;  %v5353_v44 = vpop.xlane.xlu2 %347 }
  0xea   : > { %3866 = vtanh.f32 %v778_v16  ;;  %v889_v9 = vmul.f32 %v3855_v43, %v5327_v35  ;;  %v5350_v61 = vpop.eup %3858  ;;  %v521_v4 = vsub.f32 1.5, %v520_v29  ;;  %v1097_v54 = vpack.c.bf16 %v914_v5, %v913_v6 }
  0xeb   : > { %3868 = vrcp.f32 %v777_v55  ;;  %v890_v13 = vmul.f32 %v3857_v33, %v5331_v60  ;;  %v5355_v18 = vpop.eup %3860  ;;  %v640_v56 = vmul.f32 0.5, %v639_v15  ;;  %v734_v57 = vmul.f32 %v5350_v61, %v5281_v8 }
  0xec   : > { %3870 = vrcp.f32 %v778_v16  ;;  %v921_v1 = vmul.f32 %v889_v9, %v4871_v3  ;;  %v5361_v53 = vpop.eup %3862  ;;  %vm428_vm8 = vcmp.eq.f32.partialorder %v5097_v17, inf  ;;  %vm416_vm9 = vcmp.eq.f32.partialorder %v5123_v47, inf  ;;  %1217 = vmatmul.bf16.vlgmr.msra.gmra.mxu2 %v1097_v54 }
  0xed   : > { %3872 = vrsqrt.f32 %v5342_v14  ;;  %v922_v37 = vmul.f32 %v890_v13, %v4886_v12  ;;  %v722_v55 = vmul.f32 %v5355_v18, %v5284_v36  ;;  %v8354_v3 = vand.u32 2147483648, %v5053_v25 }
  0xee   : > { %3874 = vrsqrt.f32 %v5348_v62  ;;  %vm512_vm10 = vcmp.eq.f32.partialorder %v5143_v19, inf  ;;  %v735_v15 = vmul.f32 %v5350_v61, %v734_v57  ;;  %v434_v12 = vmul.f32 %v5361_v53, %v5294_v0 }
  0xef   : > { %v612_v29 = vsel %vm610_vm4, %v8354_v3, %v5246_v28  ;;  %v5374_v16 = vpop.eup %3864  ;;  %3876 = vrsqrt.f32 %v5353_v44  ;;  %v8355_v43 = vand.u32 2147483648, %v5079_v10  ;;  %v415_v25 = vmul.f32 %v414_v26, %v5123_v47 }
  0xf0   : > { %v5386_v5 = vpop.eup %3866  ;;  %vm632_vm11 = vcmp.eq.f32.partialorder %v5152_v45, inf  ;;  %v1101_v28 = vpack.c.bf16 %v922_v37, %v921_v1  ;;  %v787_v33 = vmax.f32 %v612_v29, 1e-15  ;;  %v511_v13 = vmul.f32 %v510_v59, %v5143_v19 }
  0xf1   : > { %v624_v6 = vsel %vm622_vm5, %v8355_v43, %v5291_v2  ;;  %v3869_v54 = vpop.eup %3868  ;;  %v631_v57 = vmul.f32 %v630_v46, %v5152_v45  ;;  %v522_v3 = vmul.f32 %v5251_v24, %v521_v4  ;;  %v723_v60 = vmul.f32 %v5355_v18, %v722_v55 }
  0xf2   : > { %v788_v9 = vmax.f32 %v624_v6, 1e-15  ;;  %v3871_v10 = vpop.eup %3870  ;;  %1237 = vmatmul.bf16.vlgmr.msra.gmra.mxu3 %v1101_v28  ;;  %v435_v2 = vmul.f32 %v5361_v53, %v434_v12  ;;  %v873_v26 = vmul.f32 %v3869_v54, %v5374_v16  ;;  %3878 = vtanh.f32 %v787_v33 }
  0xf3   : > { %v8356_v1 = vand.u32 2147483648, %v5072_v51  ;;  %v5401_v59 = vpop.eup %3872  ;;  %vm524_vm12 = vcmp.eq.f32.partialorder %v5194_v11, inf  ;;  %v641_v24 = vsub.f32 1.5, %v640_v56  ;;  %v736_v46 = vmul.f32 0.5, %v735_v15 }
  0xf4   : > { %v874_v4 = vmul.f32 %v3871_v10, %v5386_v5  ;;  %3880 = vtanh.f32 %v788_v9  ;;  %v5405_v55 = vpop.eup %3874  ;;  %v905_v29 = vmul.f32 %v873_v26, %v4903_v22  ;;  %v530_v12 = vmul.f32 %v5401_v59, %v5342_v14 }
  0xf5   : > { %v708_v37 = vsel %vm706_vm6, %v8356_v1, %v5276_v7  ;;  %3882 = vrcp.f32 %v787_v33  ;;  %v8357_v51 = vand.u32 2147483648, %v5083_v27  ;;  %v5415_v43 = vpop.eup %3876  ;;  %v724_v56 = vmul.f32 0.5, %v723_v60  ;;  %v5424_v27 = vpop.xlane.xlu1 %367 }
  0xf6   : > { %v906_v15 = vmul.f32 %v874_v4, %v4901_v21  ;;  %v446_v6 = vmul.f32 %v5405_v55, %v5348_v62  ;;  %v795_v28 = vmax.f32 %v708_v37, 1e-15  ;;  %vm644_vm13 = vcmp.eq.f32.partialorder %v5223_v20, inf }
  0xf7   : > { %v720_v7 = vsel %vm718_vm7, %v8357_v51, %v5299_v63  ;;  %v436_v22 = vmul.f32 0.5, %v435_v2  ;;  %v531_v33 = vmul.f32 %v5401_v59, %v530_v12  ;;  %v542_v54 = vmul.f32 %v5415_v43, %v5353_v44 }
  0xf8   : > { %3884 = vrcp.f32 %v788_v9  ;;  %v5430_v21 = vsel %vm428_vm8, %v5097_v17, %v5335_v34  ;;  %v5435_v63 = vsel %vm416_vm9, %v5123_v47, %v415_v25  ;;  %v642_v60 = vmul.f32 %v5286_v42, %v641_v24  ;;  %v5438_v2 = vpop.eup %3878 }
  0xf9   : > { %v1093_v10 = vpack.c.bf16 %v906_v15, %v905_v29  ;;  %v5443_v9 = vsel %vm512_vm10, %v5143_v19, %v511_v13  ;;  %v523_v26 = vmul.f32 %v522_v3, %v5194_v11  ;;  %v737_v1 = vsub.f32 1.5, %v736_v46 }
  0xfa   : > { %v796_v34 = vmax.f32 %v720_v7, 1e-15  ;;  %v5446_v37 = vpop.eup %3880  ;;  %v5451_v25 = vsel %vm632_vm11, %v5152_v45, %v631_v57  ;;  %v532_v42 = vmul.f32 0.5, %v531_v33  ;;  %v447_v24 = vmul.f32 %v5405_v55, %v446_v6  ;;  %v5468_v6 = vpop.xlane.xlu0 %365 }
  0xfb   : > { %1197 = vmatmul.bf16.vlgmr.msra.gmra.mxu1 %v1093_v10  ;;  %3886 = vtanh.f32 %v795_v28  ;;  %v3883_v4 = vpop.eup %3882  ;;  %vm430_vm14 = vcmp.eq.f32.partialorder %v5097_v17, 0.0  ;;  %vm418_vm15 = vcmp.eq.f32.partialorder %v5123_v47, 0.0  ;;  %v725_v13 = vsub.f32 1.5, %v724_v56 }
  0xfc   : > { %v437_v3 = vsub.f32 1.5, %v436_v22  ;;  %v543_v46 = vmul.f32 %v5415_v43, %v542_v54  ;;  %3888 = vtanh.f32 %v796_v34  ;;  %v643_v29 = vmul.f32 %v642_v60, %v5223_v20 }
  0xfd   : > { %v743_v57 = vand.u32 2147483648, %v5281_v8  ;;  %v883_v12 = vmul.f32 %v3883_v4, %v5438_v2  ;;  %3890 = vrcp.f32 %v795_v28  ;;  %v5463_v7 = vsel %vm524_vm12, %v5194_v11, %v523_v26  ;;  %v5477_v26 = vpop.xlane.xlu2 %381 }
  0xfe   : > { %v3885_v51 = vpop.eup %3884  ;;  %v738_v15 = vmul.f32 %v5350_v61, %v737_v1  ;;  %vm740_vm0 = vcmp.eq.f32.partialorder %v5281_v8, inf  ;;  %v731_v56 = vand.u32 2147483648, %v5284_v36  ;;  %3892 = vrcp.f32 %v796_v34 }
  0xff   : > { %vm728_vm1 = vcmp.eq.f32.partialorder %v5284_v36, inf  ;;  %v533_v22 = vsub.f32 1.5, %v532_v42  ;;  %v448_v33 = vmul.f32 0.5, %v447_v24  ;;  %v884_v28 = vmul.f32 %v3885_v51, %v5446_v37 }
 0x100   : > { %3894 = vrsqrt.f32 %v5424_v27  ;;  %v726_v54 = vmul.f32 %v5355_v18, %v725_v13  ;;  %v438_v60 = vmul.f32 %v5361_v53, %v437_v3  ;;  %vm440_vm2 = vcmp.eq.f32.partialorder %v5294_v0, inf }
 0x101   : > { %v443_v61 = vand.u32 2147483648, %v5294_v0  ;;  %v544_v10 = vmul.f32 0.5, %v543_v46  ;;  %v5479_v1 = vpop.eup %3886  ;;  %v5484_v34 = vsel %vm644_vm13, %v5223_v20, %v643_v29  ;;  %v915_v42 = vmul.f32 %v883_v12, %v4905_v23  ;;  %v5496_v46 = vpop.xlane.xlu1 %333 }
 0x102   : > { %v916_v18 = vmul.f32 %v884_v28, %v4918_v31  ;;  %3896 = vrsqrt.f32 %v5468_v6  ;;  %v5489_v53 = vpop.eup %3888  ;;  %v739_v24 = vmul.f32 %v738_v15, %v5281_v8  ;;  %vm536_vm3 = vcmp.eq.f32.partialorder %v5342_v14, inf }
 0x103   : > { %v3891_v29 = vpop.eup %3890  ;;  %v534_v23 = vmul.f32 %v5401_v59, %v533_v22  ;;  %v449_v31 = vsub.f32 1.5, %v448_v33  ;;  %3898 = vrsqrt.f32 %v5477_v26  ;;  %vm514_vm4 = vcmp.eq.f32.partialorder %v5143_v19, 0.0 }
 0x104   : > { %v1098_v12 = vpack.c.bf16 %v916_v18, %v915_v42  ;;  %v3893_v51 = vpop.eup %3892  ;;  %vm526_vm5 = vcmp.eq.f32.partialorder %v5194_v11, 0.0  ;;  %v727_v15 = vmul.f32 %v726_v54, %v5284_v36  ;;  %v439_v28 = vmul.f32 %v438_v60, %v5294_v0 }
 0x105   : > { %v545_v4 = vsub.f32 1.5, %v544_v10  ;;  %v891_v3 = vmul.f32 %v3891_v29, %v5479_v1  ;;  %v892_v59 = vmul.f32 %v3893_v51, %v5489_v53  ;;  %v8358_v22 = vand.u32 2147483648, %v5123_v47 }
 0x106   : > { %v3895_v13 = vpop.eup %3894  ;;  %1222 = vmatmul.bf16.gmra.mxu2 %v1098_v12  ;;  %v8359_v42 = vand.u32 2147483648, %v5097_v17  ;;  %3900 = vrsqrt.f32 %v5496_v46  ;;  %vm634_vm6 = vcmp.eq.f32.partialorder %v5152_v45, 0.0  ;;  %v5523_v47 = vsel %vm740_vm0, %v5281_v8, %v739_v24 }
 0x107   : > { %v420_v33 = vsel %vm418_vm15, %v8358_v22, %v5435_v63  ;;  %v923_v60 = vmul.f32 %v891_v3, %v4916_v30  ;;  %v662_v10 = vmul.f32 %v3895_v13, %v5424_v27  ;;  %v535_v63 = vmul.f32 %v534_v23, %v5342_v14  ;;  %v5544_v22 = vpop.xlane.xlu0 %383 }
 0x108   : > { %v432_v54 = vsel %vm430_vm14, %v8359_v42, %v5430_v21  ;;  %v771_v18 = vmax.f32 %v420_v33, 1e-15  ;;  %v3897_v12 = vpop.eup %3896  ;;  %v450_v17 = vmul.f32 %v5405_v55, %v449_v31  ;;  %v924_v21 = vmul.f32 %v892_v59, %v4920_v32 }
 0x109   : > { %v772_v29 = vmax.f32 %v432_v54, 1e-15  ;;  %v5531_v30 = vsel %vm728_vm1, %v5284_v36, %v727_v15  ;;  %vm452_vm7 = vcmp.eq.f32.partialorder %v5348_v62, inf  ;;  %vm548_vm8 = vcmp.eq.f32.partialorder %v5353_v44, inf  ;;  %v3899_v24 = vpop.eup %3898 }
 0x10a   : > { %v663_v3 = vmul.f32 %v3895_v13, %v662_v10  ;;  %v650_v51 = vmul.f32 %v3897_v12, %v5468_v6  ;;  %3902 = vtanh.f32 %v771_v18  ;;  %vm646_vm9 = vcmp.eq.f32.partialorder %v5223_v20, 0.0 }
 0x10b   : > { %v5540_v32 = vsel %vm440_vm2, %v5294_v0, %v439_v28  ;;  %v546_v55 = vmul.f32 %v5415_v43, %v545_v4  ;;  %v1102_v23 = vpack.c.bf16 %v924_v21, %v923_v60  ;;  %3904 = vtanh.f32 %v772_v29 }
 0x10c   : > { %v664_v31 = vmul.f32 0.5, %v663_v3  ;;  %v651_v15 = vmul.f32 %v3897_v12, %v650_v51  ;;  %v746_v59 = vmul.f32 %v3899_v24, %v5477_v26  ;;  %3906 = vrcp.f32 %v771_v18  ;;  %v3901_v33 = vpop.eup %3900  ;;  %v5554_v18 = vpop.xlane.xlu2 %335 }
 0x10d   : > { %v5549_v42 = vsel %vm536_vm3, %v5342_v14, %v535_v63  ;;  %v451_v28 = vmul.f32 %v450_v17, %v5348_v62  ;;  %1242 = vmatmul.bf16.gmra.mxu3 %v1102_v23  ;;  %3908 = vrcp.f32 %v772_v29  ;;  %v458_v10 = vmul.f32 %v3901_v33, %v5496_v46 }
 0x10e   : > { %v665_v4 = vsub.f32 1.5, %v664_v31  ;;  %v652_v54 = vmul.f32 0.5, %v651_v15  ;;  %v747_v60 = vmul.f32 %v3899_v24, %v746_v59  ;;  %v547_v21 = vmul.f32 %v546_v55, %v5353_v44 }
 0x10f   : > { %3910 = vrsqrt.f32 %v5544_v22  ;;  %v8360_v63 = vand.u32 2147483648, %v5143_v19  ;;  %v8361_v29 = vand.u32 2147483648, %v5194_v11  ;;  %vm668_vm10 = vcmp.eq.f32.partialorder %v5424_v27, inf }
 0x110   : > { %v5568_v51 = vpop.eup %3902  ;;  %v666_v23 = vmul.f32 %v3895_v13, %v665_v4  ;;  %v653_v55 = vsub.f32 1.5, %v652_v54  ;;  %vm656_vm11 = vcmp.eq.f32.partialorder %v5468_v6, inf  ;;  %v748_v31 = vmul.f32 0.5, %v747_v60 }
 0x111   : > { %v516_v17 = vsel %vm514_vm4, %v8360_v63, %v5443_v9  ;;  %v528_v3 = vsel %vm526_vm5, %v8361_v29, %v5463_v7  ;;  %v459_v15 = vmul.f32 %v3901_v33, %v458_v10  ;;  %v5572_v59 = vpop.eup %3904  ;;  %v659_v19 = vand.u32 2147483648, %v5468_v6 }
 0x112   : > { %3912 = vrsqrt.f32 %v5554_v18  ;;  %v779_v9 = vmax.f32 %v516_v17, 1e-15  ;;  %v8362_v11 = vand.u32 2147483648, %v5152_v45  ;;  %v3907_v13 = vpop.eup %3906  ;;  %vm742_vm12 = vcmp.eq.f32.partialorder %v5281_v8, 0.0 }
 0x113   : > { %vm730_vm13 = vcmp.eq.f32.partialorder %v5284_v36, 0.0  ;;  %v654_v4 = vmul.f32 %v3897_v12, %v653_v55  ;;  %v749_v54 = vsub.f32 1.5, %v748_v31  ;;  %v460_v60 = vmul.f32 0.5, %v459_v15  ;;  %v3909_v63 = vpop.eup %3908 }
 0x114   : > { %v636_v7 = vsel %vm634_vm6, %v8362_v11, %v5451_v25  ;;  %v780_v10 = vmax.f32 %v528_v3, 1e-15  ;;  %v453_v17 = vsel %vm452_vm7, %v5348_v62, %v451_v28  ;;  %v5589_v29 = vsel %vm548_vm8, %v5353_v44, %v547_v21 }
 0x115   : > { %v867_v25 = vmul.f32 %v3907_v13, %v5568_v51  ;;  %vm442_vm14 = vcmp.eq.f32.partialorder %v5294_v0, 0.0  ;;  %vm454_vm15 = vcmp.eq.f32.partialorder %v5348_v62, 0.0  ;;  %v667_v12 = vmul.f32 %v666_v23, %v5424_v27  ;;  %v3911_v55 = vpop.eup %3910 }
 0x116   : > { %v868_v3 = vmul.f32 %v3909_v63, %v5572_v59  ;;  %3914 = vtanh.f32 %v779_v9  ;;  %v8363_v28 = vand.u32 2147483648, %v5223_v20  ;;  %v655_v31 = vmul.f32 %v654_v4, %v5468_v6 }
 0x117   : > { %v899_v15 = vmul.f32 %v867_v25, %v4933_v40  ;;  %v461_v11 = vsub.f32 1.5, %v460_v60  ;;  %v789_v13 = vmax.f32 %v636_v7, 1e-15  ;;  %v750_v45 = vmul.f32 %v3899_v24, %v749_v54 }
 0x118   : > { %v648_v21 = vsel %vm646_vm9, %v8363_v28, %v5484_v34  ;;  %vm752_vm0 = vcmp.eq.f32.partialorder %v5477_v26, inf  ;;  %v900_v23 = vmul.f32 %v868_v3, %v4931_v39  ;;  %v758_v63 = vmul.f32 %v3911_v55, %v5544_v22  ;;  %v3913_v43 = vpop.eup %3912 }
 0x119   : > { %3916 = vtanh.f32 %v780_v10  ;;  %vm538_vm1 = vcmp.eq.f32.partialorder %v5342_v14, 0.0  ;;  %v462_v20 = vmul.f32 %v3901_v33, %v461_v11  ;;  %vm464_vm2 = vcmp.eq.f32.partialorder %v5496_v46, inf }
 0x11a   : > { %v467_v34 = vand.u32 2147483648, %v5496_v46  ;;  %3918 = vrcp.f32 %v779_v9  ;;  %v790_v40 = vmax.f32 %v648_v21, 1e-15  ;;  %v1090_v4 = vpack.c.bf16 %v900_v23, %v899_v15  ;;  %v5629_v21 = vpop.xlane.xlu1 %351  ;;  %v5643_v23 = vpop.xlane.xlu0 %349 }
 0x11b   : > { %v759_v7 = vmul.f32 %v3911_v55, %v758_v63  ;;  %v767_v24 = vand.u32 2147483648, %v5544_v22  ;;  %v470_v54 = vmul.f32 %v3913_v43, %v5554_v18  ;;  %vm550_vm3 = vcmp.eq.f32.partialorder %v5353_v44, 0.0 }
 0x11c   : > { %v5616_v39 = vsel %vm668_vm10, %v5424_v27, %v667_v12  ;;  %v5621_v33 = vsel %vm656_vm11, %v5468_v6, %v655_v31  ;;  %v479_v9 = vand.u32 2147483648, %v5554_v18  ;;  %3920 = vrcp.f32 %v780_v10  ;;  %v5624_v60 = vpop.eup %3914  ;;  %1182 = vmatmul.bf16.gmra.mxu0 %v1090_v4 }
 0x11d   : > { %v751_v25 = vmul.f32 %v750_v45, %v5477_v26  ;;  %v760_v3 = vmul.f32 0.5, %v759_v7  ;;  %v471_v28 = vmul.f32 %v3913_v43, %v470_v54  ;;  %3922 = vtanh.f32 %v789_v13 }
 0x11e   : > { %vm658_vm4 = vcmp.eq.f32.partialorder %v5468_v6, 0.0  ;;  %v463_v12 = vmul.f32 %v462_v20, %v5496_v46  ;;  %3924 = vtanh.f32 %v790_v40  ;;  %v732_v10 = vsel %vm730_vm13, %v731_v56, %v5531_v30 }
 0x11f   : > { %v744_v45 = vsel %vm742_vm12, %v743_v57, %v5523_v47  ;;  %v5641_v31 = vpop.eup %3916  ;;  %v761_v15 = vsub.f32 1.5, %v760_v3  ;;  %v472_v11 = vmul.f32 0.5, %v471_v28  ;;  %3926 = vrcp.f32 %v789_v13 }
 0x120   : > { %v797_v63 = vmax.f32 %v732_v10, 1e-15  ;;  %v3919_v20 = vpop.eup %3918  ;;  %vm670_vm5 = vcmp.eq.f32.partialorder %v5424_v27, 0.0  ;;  %3928 = vrcp.f32 %v790_v40  ;;  %v798_v36 = vmax.f32 %v744_v45, 1e-15 }
 0x121   : > { %v444_v8 = vsel %vm442_vm14, %v443_v61, %v5540_v32  ;;  %v8364_v57 = vand.u32 2147483648, %v5348_v62  ;;  %v762_v47 = vmul.f32 %v3911_v55, %v761_v15  ;;  %vm764_vm6 = vcmp.eq.f32.partialorder %v5544_v22, inf }
 0x122   : > { %v473_v30 = vsub.f32 1.5, %v472_v11  ;;  %vm476_vm7 = vcmp.eq.f32.partialorder %v5554_v18, inf  ;;  %v875_v13 = vmul.f32 %v3919_v20, %v5624_v60  ;;  %3930 = vrsqrt.f32 %v5629_v21  ;;  %v3921_v40 = vpop.eup %3920 }
 0x123   : > { %v456_v56 = vsel %vm454_vm15, %v8364_v57, %v453_v17  ;;  %v5662_v0 = vsel %vm752_vm0, %v5477_v26, %v751_v25  ;;  %vm466_vm8 = vcmp.eq.f32.partialorder %v5496_v46, 0.0  ;;  %v575_v62 = vand.u32 2147483648, %v5629_v21  ;;  %v5668_v32 = vpop.eup %3922 }
 0x124   : > { %3932 = vrsqrt.f32 %v5643_v23  ;;  %v563_v61 = vand.u32 2147483648, %v5643_v23  ;;  %v465_v17 = vsel %vm464_vm2, %v5496_v46, %v463_v12  ;;  %v474_v55 = vmul.f32 %v3913_v43, %v473_v30  ;;  %v5679_v25 = vpop.eup %3924 }
 0x125   : > { %v876_v4 = vmul.f32 %v3921_v40, %v5641_v31  ;;  %v8365_v7 = vand.u32 2147483648, %v5342_v14  ;;  %v763_v3 = vmul.f32 %v762_v47, %v5544_v22  ;;  %vm478_vm9 = vcmp.eq.f32.partialorder %v5554_v18, 0.0  ;;  %v3927_v45 = vpop.eup %3926 }
 0x126   : > { %3934 = vtanh.f32 %v797_v63  ;;  %v773_v28 = vmax.f32 %v444_v8, 1e-15  ;;  %v774_v10 = vmax.f32 %v456_v56, 1e-15  ;;  %v907_v43 = vmul.f32 %v875_v13, %v4935_v41 }
 0x127   : > { %v540_v54 = vsel %vm538_vm1, %v8365_v7, %v5549_v42  ;;  %v908_v12 = vmul.f32 %v876_v4, %v4948_v49  ;;  %3936 = vtanh.f32 %v798_v36  ;;  %v8366_v15 = vand.u32 2147483648, %v5353_v44  ;;  %v3929_v42 = vpop.eup %3928 }
 0x128   : > { %vm754_vm10 = vcmp.eq.f32.partialorder %v5477_v26, 0.0  ;;  %v475_v11 = vmul.f32 %v474_v55, %v5554_v18  ;;  %v885_v20 = vmul.f32 %v3927_v45, %v5668_v32  ;;  %3938 = vrcp.f32 %v797_v63  ;;  %v3931_v57 = vpop.eup %3930 }
 0x129   : > { %v552_v14 = vsel %vm550_vm3, %v8366_v15, %v5589_v29  ;;  %v781_v8 = vmax.f32 %v540_v54, 1e-15  ;;  %vm766_vm11 = vcmp.eq.f32.partialorder %v5544_v22, 0.0  ;;  %v1094_v41 = vpack.c.bf16 %v908_v12, %v907_v43 }
 0x12a   : > { %v886_v49 = vmul.f32 %v3929_v42, %v5679_v25  ;;  %3940 = vrcp.f32 %v798_v36  ;;  %v660_v44 = vsel %vm658_vm4, %v659_v19, %v5621_v33  ;;  %v3933_v29 = vpop.eup %3932  ;;  %v917_v56 = vmul.f32 %v885_v20, %v4946_v48 }
 0x12b   : > { %v566_v47 = vmul.f32 %v3931_v57, %v5629_v21  ;;  %3942 = vtanh.f32 %v773_v28  ;;  %v782_v63 = vmax.f32 %v552_v14, 1e-15  ;;  %1202 = vmatmul.bf16.gmra.mxu1 %v1094_v41  ;;  %v554_v13 = vmul.f32 %v3933_v29, %v5643_v23  ;;  %v8369_v41 = vld [vmem:[#allocation12_spill] sm:$0xff] }
 0x12c   : > { %v918_v30 = vmul.f32 %v886_v49, %v4950_v50  ;;  %3944 = vtanh.f32 %v774_v10  ;;  %v8367_v36 = vand.u32 2147483648, %v5424_v27  ;;  %v5709_v19 = vpop.eup %3934  ;;  %v765_v48 = vsel %vm764_vm6, %v5544_v22, %v763_v3 }
 0x12d   : > { %v477_v33 = vsel %vm476_vm7, %v5554_v18, %v475_v11  ;;  %v567_v50 = vmul.f32 %v3931_v57, %v566_v47  ;;  %3946 = vrcp.f32 %v773_v28  ;;  %v5717_v40 = vpop.eup %3936  ;;  %vm572_vm12 = vcmp.eq.f32.partialorder %v5629_v21, inf }
 0x12e   : > { %v672_v6 = vsel %vm670_vm5, %v8367_v36, %v5616_v39  ;;  %v1099_v55 = vpack.c.bf16 %v918_v30, %v917_v56  ;;  %v555_v4 = vmul.f32 %v3933_v29, %v554_v13  ;;  %3948 = vrcp.f32 %v774_v10  ;;  %v3939_v39 = vpop.eup %3938 }
 0x12f   : > { %v468_v27 = vsel %vm466_vm8, %v467_v34, %v465_v17  ;;  %v568_v7 = vmul.f32 0.5, %v567_v50  ;;  %vm574_vm13 = vcmp.eq.f32.partialorder %v5629_v21, 0.0  ;;  %vm560_vm14 = vcmp.eq.f32.partialorder %v5643_v23, inf }
 0x130   : > { %3950 = vtanh.f32 %v781_v8  ;;  %v791_v54 = vmax.f32 %v660_v44, 1e-15  ;;  %v792_v3 = vmax.f32 %v672_v6, 1e-15  ;;  %v3941_v28 = vpop.eup %3940  ;;  %1227 = vmatmul.bf16.gmra.mxu2 %v1099_v55  ;;  %v556_v45 = vmul.f32 0.5, %v555_v4  ;;  %v8370_v6 = vld [vmem:[#allocation13_spill] sm:$0xff] }
 0x131   : > { %vm562_vm15 = vcmp.eq.f32.partialorder %v5643_v23, 0.0  ;;  %v893_v10 = vmul.f32 %v3939_v39, %v5709_v19  ;;  %3952 = vtanh.f32 %v782_v63  ;;  %v480_v46 = vsel %vm478_vm9, %v479_v9, %v477_v33  ;;  %v5732_v34 = vpop.eup %3942  ;;  %v8371_v33 = vld [vmem:[#allocation15_spill] sm:$0xff] }
 0x132   : > { %v569_v17 = vsub.f32 1.5, %v568_v7  ;;  %v894_v43 = vmul.f32 %v3941_v28, %v5717_v40  ;;  %3954 = vrcp.f32 %v781_v8  ;;  %v775_v12 = vmax.f32 %v468_v27, 1e-15  ;;  %v5735_v15 = vpop.eup %3944 }
 0x133   : > { %v557_v14 = vsub.f32 1.5, %v556_v45  ;;  %v925_v42 = vmul.f32 %v893_v10, %v4963_v58  ;;  %3956 = vrcp.f32 %v782_v63  ;;  %v8368_v11 = vand.u32 2147483648, %v5477_v26  ;;  %v3947_v9 = vpop.eup %3946  ;;  %v8372_v10 = vld [vmem:[#allocation14_spill] sm:$0xff] }
 0x134   : > { %v570_v20 = vmul.f32 %v3931_v57, %v569_v17  ;;  %v926_v49 = vmul.f32 %v894_v43, %v8369_v41  ;;  %3958 = vtanh.f32 %v791_v54  ;;  %v768_v8 = vsel %vm766_vm11, %v767_v24, %v765_v48  ;;  %v3949_v44 = vpop.eup %3948 }
 0x135   : > { %v756_v18 = vsel %vm754_vm10, %v8368_v11, %v5662_v0  ;;  %v558_v56 = vmul.f32 %v3933_v29, %v557_v14  ;;  %v869_v58 = vmul.f32 %v3947_v9, %v5732_v34  ;;  %3960 = vtanh.f32 %v792_v3  ;;  %v8374_v9 = vld [vmem:[#allocation18_spill] sm:$0xff] }
 0x136   : > { %v776_v47 = vmax.f32 %v480_v46, 1e-15  ;;  %v5749_v63 = vpop.eup %3950  ;;  %v571_v26 = vmul.f32 %v570_v20, %v5629_v21  ;;  %v1103_v0 = vpack.c.bf16 %v926_v49, %v925_v42  ;;  %v870_v57 = vmul.f32 %v3949_v44, %v5735_v15  ;;  %v8375_v49 = vld [vmem:[#allocation17_spill] sm:$0xff] }
 0x137   : > { %3962 = vrcp.f32 %v791_v54  ;;  %v5753_v30 = vpop.eup %3952  ;;  %v559_v13 = vmul.f32 %v558_v56, %v5643_v23  ;;  %v799_v22 = vmax.f32 %v756_v18, 1e-15  ;;  %v800_v24 = vmax.f32 %v768_v8, 1e-15 }
 0x138   : > { %3964 = vrcp.f32 %v792_v3  ;;  %v3955_v29 = vpop.eup %3954  ;;  %v573_v36 = vsel %vm572_vm12, %v5629_v21, %v571_v26  ;;  %1247 = vmatmul.bf16.gmra.mxu3 %v1103_v0  ;;  %v901_v48 = vmul.f32 %v869_v58, %v8370_v6  ;;  %v902_v50 = vmul.f32 %v870_v57, %v8371_v33  ;;  %v8373_v21 = vld [vmem:[#allocation16_spill] sm:$0xff] }
 0x139   : > { %3966 = vtanh.f32 %v775_v12  ;;  %v3957_v55 = vpop.eup %3956  ;;  %v561_v4 = vsel %vm560_vm14, %v5643_v23, %v559_v13  ;;  %v877_v27 = vmul.f32 %v3955_v29, %v5749_v63  ;;  %v576_v39 = vsel %vm574_vm13, %v575_v62, %v573_v36  ;;  %v8377_v13 = vld [vmem:[#allocation20_spill] sm:$0xff] }
 0x13a   : > { %3968 = vtanh.f32 %v776_v47  ;;  %v5769_v7 = vpop.eup %3958  ;;  %v1091_v54 = vpack.c.bf16 %v902_v50, %v901_v48  ;;  %v878_v3 = vmul.f32 %v3957_v55, %v5753_v30  ;;  %v564_v28 = vsel %vm562_vm15, %v563_v61, %v561_v4 }
 0x13b   : > { %3970 = vrcp.f32 %v775_v12  ;;  %v5776_v45 = vpop.eup %3960  ;;  %v909_v46 = vmul.f32 %v877_v27, %v8372_v10  ;;  %v783_v43 = vmax.f32 %v564_v28, 1e-15  ;;  %v784_v12 = vmax.f32 %v576_v39, 1e-15  ;;  %v8380_v27 = vld [vmem:[#allocation19_spill] sm:$0xff] }
 0x13c   : > { %3972 = vrcp.f32 %v776_v47  ;;  %1187 = vmatmul.bf16.gmra.mxu0 %v1091_v54  ;;  %v910_v62 = vmul.f32 %v878_v3, %v8373_v21  ;;  %v8381_v54 = vld [vmem:[#allocation21_spill] sm:$0xff]  ;;  %v8382_v21 = vld [vmem:[#allocation24_spill] sm:$0xff] }
 0x13d   : > { %v3963_v17 = vpop.eup %3962  ;;  %3974 = vtanh.f32 %v799_v22 }
 0x13e   : > { %v3965_v14 = vpop.eup %3964  ;;  %v887_v42 = vmul.f32 %v3963_v17, %v5769_v7  ;;  %3976 = vtanh.f32 %v800_v24  ;;  %v1095_v23 = vpack.c.bf16 %v910_v62, %v909_v46 }
 0x13f   : > { %v5781_v11 = vpop.eup %3966  ;;  %v888_v61 = vmul.f32 %v3965_v14, %v5776_v45  ;;  %3978 = vrcp.f32 %v799_v22 }
 0x140   : > { %v5784_v18 = vpop.eup %3968  ;;  %v919_v20 = vmul.f32 %v887_v42, %v8374_v9  ;;  %3980 = vrcp.f32 %v800_v24  ;;  %1207 = vmatmul.bf16.gmra.mxu1 %v1095_v23  ;;  %v8378_v24 = vld [vmem:[#allocation22_spill] sm:$0xff]  ;;  %v5810_v9 = vld [vmem:[#allocation7] sm:$0x7] }
 0x141   : > { %v3971_v41 = vpop.eup %3970  ;;  %v920_v8 = vmul.f32 %v888_v61, %v8375_v49  ;;  %3982 = vtanh.f32 %v783_v43 }
 0x142   : > { %v3973_v44 = vpop.eup %3972  ;;  %v871_v56 = vmul.f32 %v3971_v41, %v5781_v11  ;;  %3984 = vtanh.f32 %v784_v12  ;;  %v5813_v41 = vperm.slane %v5810_v9, 0 }
 0x143   : > { %v5789_v58 = vpop.eup %3974  ;;  %v1100_v47 = vpack.c.bf16 %v920_v8, %v919_v20  ;;  %v872_v26 = vmul.f32 %v3973_v44, %v5784_v18  ;;  %3986 = vrcp.f32 %v783_v43  ;;  %v8383_v43 = vld [vmem:[#allocation23_spill] sm:$0xff]  ;;  %v945_v8 = vmul.f32 %v5303_v38, %v5303_v38 }
 0x144   : > { %v5792_v0 = vpop.eup %3976  ;;  %3988 = vrcp.f32 %v784_v12  ;;  %v903_v22 = vmul.f32 %v871_v56, %v8377_v13  ;;  %v8384_v12 = vld [vmem:[#allocation25_spill] sm:$0xff]  ;;  %v5819_v56 = vperm.slane %v5810_v9, 1 }
 0x145   : > { %8376 = vst [vmem:[#allocation12_spill] sm:$0xff] %v5792_v0  ;;  %v3979_v57 = vpop.eup %3978  ;;  %1232 = vmatmul.bf16.gmra.mxu2 %v1100_v47  ;;  %v904_v29 = vmul.f32 %v872_v26, %v8378_v24  ;;  %v929_v23 = vmul.f32 %v8384_v12, %v8384_v12  ;;  %v977_v47 = vsub.f32 1.0, %v945_v8  ;;  %v953_v24 = vmul.f32 %v5327_v35, %v5327_v35  ;;  %v8386_v12 = vld [vmem:[#allocation27_spill] sm:$0xff] }
 0x146   : > { %v3981_v36 = vpop.eup %3980  ;;  %v895_v6 = vmul.f32 %v3979_v57, %v5789_v58  ;;  %v938_v8 = vmul.f32 %v5386_v5, %v5386_v5  ;;  %v931_v5 = vmul.f32 %v5568_v51, %v5568_v51  ;;  %v932_v51 = vmul.f32 %v5572_v59, %v5572_v59 }
 0x147   : > { %v5797_v48 = vpop.eup %3982  ;;  %v896_v33 = vmul.f32 %v3981_v36, %v5792_v0  ;;  %v1092_v4 = vpack.c.bf16 %v904_v29, %v903_v22  ;;  %v961_v61 = vsub.f32 1.0, %v929_v23  ;;  %v1009_v13 = vmax.f32 %v977_v47, 1e-15 }
 0x148   : > { %v5800_v50 = vpop.eup %3984  ;;  %v927_v39 = vmul.f32 %v895_v6, %v8380_v27  ;;  %v985_v6 = vsub.f32 1.0, %v953_v24  ;;  %v954_v23 = vmul.f32 %v8386_v12, %v8386_v12  ;;  %v940_v59 = vmul.f32 %v5641_v31, %v5641_v31 }
 0x149   : > { %8379 = vst [vmem:[#allocation13_spill] sm:$0xff] %v5800_v50  ;;  %v3987_v55 = vpop.eup %3986  ;;  %v928_v3 = vmul.f32 %v896_v33, %v8381_v54  ;;  %v993_v20 = vmax.f32 %v961_v61, 1e-15  ;;  %v964_v12 = vsub.f32 1.0, %v932_v51 }
 0x14a   : > { %v3989_v28 = vpop.eup %3988  ;;  %v879_v10 = vmul.f32 %v3987_v55, %v5797_v48  ;;  %v1017_v55 = vmax.f32 %v985_v6, 1e-15 }
 0x14b   : > { %v1104_v46 = vpack.c.bf16 %v928_v3, %v927_v39  ;;  %v880_v17 = vmul.f32 %v3989_v28, %v5800_v50  ;;  %3990 = vrcp.f32 %v993_v20 }
 0x14c   : > { %v911_v62 = vmul.f32 %v879_v10, %v8382_v21  ;;  %1192 = vmatmul.bf16.gmra.mxu0 %v1092_v4  ;;  %3992 = vrcp.f32 %v1009_v13  ;;  %v937_v21 = vmul.f32 %v5374_v16, %v5374_v16 }
 0x14d   : > { %1252 = vmatmul.bf16.gmra.mxu3 %v1104_v46  ;;  %v912_v14 = vmul.f32 %v880_v17, %v8383_v43  ;;  %3994 = vrcp.f32 %v1017_v55  ;;  %v8385_v46 = vld [vmem:[#allocation26_spill] sm:$0xff] }
 0x14e   : > { %v930_v17 = vmul.f32 %v8385_v46, %v8385_v46 }
 0x14f   : > { %v1096_v42 = vpack.c.bf16 %v912_v14, %v911_v62  ;;  %v946_v62 = vmul.f32 %v5308_v52, %v5308_v52  ;;  %v947_v52 = vmul.f32 %v5438_v2, %v5438_v2  ;;  %v948_v2 = vmul.f32 %v5446_v37, %v5446_v37 }
 0x150   : > { %v962_v20 = vsub.f32 1.0, %v930_v17  ;;  %v963_v37 = vsub.f32 1.0, %v931_v5  ;;  %v950_v5 = vmul.f32 %v5679_v25, %v5679_v25  ;;  %v957_v25 = vmul.f32 %v5709_v19, %v5709_v19 }
 0x151   : > { %1212 = vmatmul.bf16.gmra.mxu1 %v1096_v42  ;;  %v3991_v26 = vpop.eup %3990  ;;  %v979_v6 = vsub.f32 1.0, %v947_v52 }
 0x152   : > { %v1057_v22 = vmul.f32 2.0, %v3991_v26  ;;  %v3993_v4 = vpop.eup %3992  ;;  %v986_v26 = vsub.f32 1.0, %v954_v23  ;;  %v994_v13 = vmax.f32 %v962_v20, 1e-15  ;;  %v995_v23 = vmax.f32 %v963_v37, 1e-15 }
 0x153   : > { %v1073_v54 = vmul.f32 2.0, %v3993_v4  ;;  %v3995_v43 = vpop.eup %3994  ;;  %v956_v4 = vmul.f32 %v5489_v53, %v5489_v53  ;;  %v949_v53 = vmul.f32 %v5668_v32, %v5668_v32  ;;  %v989_v19 = vsub.f32 1.0, %v957_v25 }
 0x154   : > { %v1081_v16 = vmul.f32 2.0, %v3995_v43  ;;  %v1018_v55 = vmax.f32 %v986_v26, 1e-15 }
 0x155   : > { %v988_v17 = vsub.f32 1.0, %v956_v4 }
 0x164   : > { %v1178_v49 = vpop.f32.mrf.mxu0 }
 0x165   : > { %v1259_v44 = vmul.f32 %v5813_v41, %v1178_v49  ;;  %v969_v49 = vsub.f32 1.0, %v937_v21 }
 0x167   : > { %v1292_v57 = vsub.f32 %v1259_v44, %v5819_v56  ;;  %v978_v44 = vsub.f32 1.0, %v946_v62  ;;  %v1001_v24 = vmax.f32 %v969_v49, 1e-15  ;;  %v981_v49 = vsub.f32 1.0, %v949_v53 }
 0x168   : > { %v933_v53 = vmul.f32 %v5732_v34, %v5732_v34 }
 0x169   : > { %v1324_v29 = vmul.f32 %v1292_v57, %v1057_v22  ;;  %v955_v22 = vmul.f32 %v5479_v1, %v5479_v1 }
 0x16b   : > { %v5825_v38 = vadd.f32 %v1324_v29, %v5819_v56  ;;  %v970_v29 = vsub.f32 1.0, %v938_v8  ;;  %v987_v1 = vsub.f32 1.0, %v955_v22 }
 0x16d   : > { %v5829_v27 = vand.u32 2147483647, %v5825_v38  ;;  %v1019_v43 = vmax.f32 %v987_v1, 1e-15  ;;  %vm1964_vm6 = vcmp.lt.f32.partialorder %v5825_v38, 0.0 }
 0x16f   : > { %v1218_v36 = vpop.f32.mrf.mxu2  ;;  %v1420_v35 = vmul.f32 %v5829_v27, %v5829_v27 }
 0x170   : > { %v1275_v33 = vmul.f32 %v5813_v41, %v1218_v36  ;;  %v1010_v36 = vmax.f32 %v978_v44, 1e-15  ;;  %v972_v44 = vsub.f32 1.0, %v940_v59 }
 0x171   : > { %v5841_v14 = vadd.f32 1.0, %v1420_v35  ;;  %v939_v35 = vmul.f32 %v5624_v60, %v5624_v60  ;;  %v1180_v60 = vpop.f32.mrf.mxu0 }
 0x172   : > { %v1308_v39 = vsub.f32 %v1275_v33, %v5819_v56  ;;  %v1260_v31 = vmul.f32 %v5813_v41, %v1180_v60 }
 0x173   : > { %3996 = vrsqrt.f32 %v5841_v14  ;;  %vm1491_vm0 = vcmp.eq.f32.partialorder %v5841_v14, inf  ;;  %vm1493_vm1 = vcmp.eq.f32.partialorder %v5841_v14, 0.0 }
 0x174   : > { %v1340_v28 = vmul.f32 %v1308_v39, %v1073_v54  ;;  %3998 = vrcp.f32 %v994_v13  ;;  %v996_v13 = vmax.f32 %v964_v12, 1e-15 }
 0x175   : > { %v1238_v3 = vpop.f32.mrf.mxu3  ;;  %4000 = vrcp.f32 %v1001_v24 }
 0x176   : > { %v1283_v10 = vmul.f32 %v5813_v41, %v1238_v3  ;;  %v5844_v42 = vadd.f32 %v1340_v28, %v5819_v56  ;;  %v1002_v3 = vmax.f32 %v970_v29, 1e-15  ;;  %4002 = vrcp.f32 %v1010_v36 }
 0x177   : > { %v1011_v28 = vmax.f32 %v979_v6, 1e-15  ;;  %4004 = vrcp.f32 %v1018_v55  ;;  %v1013_v29 = vmax.f32 %v981_v49, 1e-15  ;;  %v1293_v6 = vsub.f32 %v1260_v31, %v5819_v56  ;;  %v1220_v31 = vpop.f32.mrf.mxu2 }
 0x178   : > { %v1316_v61 = vsub.f32 %v1283_v10, %v5819_v56  ;;  %v5855_v47 = vand.u32 2147483647, %v5844_v42  ;;  %v980_v10 = vsub.f32 1.0, %v948_v2  ;;  %4006 = vrcp.f32 %v1002_v3  ;;  %v1198_v3 = vpop.f32.mrf.mxu1 }
 0x179   : > { %v5872_v54 = vpop.eup %3996  ;;  %4008 = vrcp.f32 %v1011_v28  ;;  %v1004_v2 = vmax.f32 %v972_v44, 1e-15  ;;  %v1267_v60 = vmul.f32 %v5813_v41, %v1198_v3  ;;  %v965_v44 = vsub.f32 1.0, %v933_v53 }
 0x17a   : > { %v1348_v57 = vmul.f32 %v1316_v61, %v1081_v16  ;;  %v1436_v33 = vmul.f32 %v5855_v47, %v5855_v47  ;;  %v1485_v21 = vmul.f32 %v5872_v54, %v5841_v14  ;;  %v971_v61 = vsub.f32 1.0, %v939_v35  ;;  %v3999_v32 = vpop.eup %3998 }
 0x17b   : > { %v1012_v20 = vmax.f32 %v980_v10, 1e-15  ;;  %v4001_v8 = vpop.eup %4000  ;;  %v1020_v16 = vmax.f32 %v988_v17, 1e-15  ;;  %v1058_v51 = vmul.f32 2.0, %v3999_v32  ;;  %v982_v35 = vsub.f32 1.0, %v950_v5 }
 0x17c   : > { %v5868_v39 = vadd.f32 %v1348_v57, %v5819_v56  ;;  %v5878_v46 = vadd.f32 1.0, %v1436_v33  ;;  %v4003_v52 = vpop.eup %4002  ;;  %v1486_v26 = vmul.f32 %v5872_v54, %v1485_v21  ;;  %v1003_v24 = vmax.f32 %v971_v61, 1e-15 }
 0x17d   : > { %v4005_v22 = vpop.eup %4004  ;;  %v1325_v10 = vmul.f32 %v1293_v6, %v1058_v51  ;;  %v1014_v61 = vmax.f32 %v982_v35, 1e-15  ;;  %v941_v32 = vmul.f32 %v5749_v63, %v5749_v63  ;;  %v5912_v49 = vmul.f32 2.0, %v4003_v52 }
 0x17e   : > { %v5885_v62 = vand.u32 2147483647, %v5868_v39  ;;  %4010 = vrsqrt.f32 %v5878_v46  ;;  %v4007_v36 = vpop.eup %4006  ;;  %v1487_v55 = vmul.f32 0.5, %v1486_v26  ;;  %v958_v51 = vmul.f32 %v5717_v40, %v5717_v40 }
 0x17f   : > { %4012 = vrcp.f32 %v1019_v43  ;;  %v4009_v33 = vpop.eup %4008  ;;  %v5910_v34 = vadd.f32 %v1325_v10, %v5819_v56  ;;  %vm1683_vm2 = vcmp.eq.f32.partialorder %v5878_v46, inf  ;;  %vm1685_vm3 = vcmp.eq.f32.partialorder %v5878_v46, 0.0 }
 0x180   : > { %v1444_v57 = vmul.f32 %v5885_v62, %v5885_v62  ;;  %4014 = vrcp.f32 %v995_v23  ;;  %v1488_v59 = vsub.f32 1.5, %v1487_v55  ;;  %v1065_v23 = vmul.f32 2.0, %v4001_v8 }
 0x181   : > { %4016 = vrcp.f32 %v1012_v20  ;;  %v5921_v5 = vmul.f32 2.0, %v4009_v33  ;;  %v973_v55 = vsub.f32 1.0, %v941_v32  ;;  %vm1980_vm7 = vcmp.lt.f32.partialorder %v5844_v42, 0.0 }
 0x182   : > { %4018 = vrcp.f32 %v1020_v16  ;;  %v5895_v4 = vadd.f32 1.0, %v1444_v57  ;;  %v5914_v16 = vmul.f32 2.0, %v4005_v22  ;;  %v1489_v57 = vmul.f32 %v5872_v54, %v1488_v59 }
 0x183   : > { %4020 = vrcp.f32 %v996_v13  ;;  %v1300_v13 = vsub.f32 %v1267_v60, %v5819_v56  ;;  %v1021_v54 = vmax.f32 %v989_v19, 1e-15  ;;  %v1200_v60 = vpop.f32.mrf.mxu1  ;;  %vm1988_vm8 = vcmp.lt.f32.partialorder %v5868_v39, 0.0 }
 0x184   : > { %v5897_v1 = vpop.eup %4010  ;;  %4022 = vrcp.f32 %v1003_v24  ;;  %v1240_v24 = vpop.f32.mrf.mxu3  ;;  %v1490_v35 = vmul.f32 %v1489_v57, %v5841_v14  ;;  %vm1779_vm4 = vcmp.eq.f32.partialorder %v5895_v4, inf  ;;  %vm1781_vm5 = vcmp.eq.f32.partialorder %v5895_v4, 0.0 }
 0x185   : > { %v4013_v37 = vpop.eup %4012  ;;  %4024 = vrcp.f32 %v1013_v29  ;;  %v1677_v21 = vmul.f32 %v5897_v1, %v5878_v46  ;;  %v5919_v29 = vmul.f32 2.0, %v4007_v36  ;;  %v5934_v36 = vand.u32 2147483647, %v5910_v34 }
 0x186   : > { %v4015_v28 = vpop.eup %4014  ;;  %4026 = vrcp.f32 %v1004_v2  ;;  %v5923_v6 = vmul.f32 2.0, %v4013_v37  ;;  %v997_v37 = vmax.f32 %v965_v44, 1e-15  ;;  %v1492_v32 = vsel %vm1491_vm0, %v5841_v14, %v1490_v35 }
 0x187   : > { %v4017_v17 = vpop.eup %4016  ;;  %4028 = vrsqrt.f32 %v5895_v4  ;;  %v1678_v8 = vmul.f32 %v5897_v1, %v1677_v21  ;;  %v5925_v52 = vmul.f32 2.0, %v4015_v28  ;;  %v1332_v28 = vmul.f32 %v1300_v13, %v1065_v23 }
 0x188   : > { %v4019_v43 = vpop.eup %4018  ;;  %v5927_v22 = vmul.f32 2.0, %v4017_v17  ;;  %4030 = vrcp.f32 %v1014_v61  ;;  %v1276_v17 = vmul.f32 %v5813_v41, %v1220_v31  ;;  %v1284_v21 = vmul.f32 %v5813_v41, %v1240_v24 }
 0x189   : > { %v4021_v12 = vpop.eup %4020  ;;  %v5936_v3 = vmul.f32 2.0, %v4019_v43  ;;  %v1679_v25 = vmul.f32 0.5, %v1678_v8  ;;  %4032 = vrcp.f32 %v1021_v54  ;;  %v1005_v43 = vmax.f32 %v973_v55, 1e-15  ;;  %v1223_v24 = vpop.f32.mrf.mxu2 }
 0x18a   : > { %v4023_v20 = vpop.eup %4022  ;;  %v5938_v33 = vmul.f32 2.0, %v4021_v12  ;;  %v990_v12 = vsub.f32 1.0, %v958_v51  ;;  %v1421_v23 = vmul.f32 %v5934_v36, %v5934_v36  ;;  %4034 = vrcp.f32 %v997_v37 }
 0x18b   : > { %v4025_v26 = vpop.eup %4024  ;;  %v5941_v10 = vmul.f32 2.0, %v4023_v20  ;;  %v934_v61 = vmul.f32 %v5735_v15, %v5735_v15  ;;  %v1680_v20 = vsub.f32 1.5, %v1679_v25  ;;  %v5958_v31 = vadd.f32 %v1332_v28, %v5819_v56 }
 0x18c   : > { %v4027_v63 = vpop.eup %4026  ;;  %v5946_v40 = vmul.f32 2.0, %v4025_v26  ;;  %v942_v44 = vmul.f32 %v5753_v30, %v5753_v30  ;;  %v1494_v26 = vand.u32 2147483648, %v5841_v14  ;;  %v1309_v8 = vsub.f32 %v1276_v17, %v5819_v56 }
 0x18d   : > { %v5929_v2 = vpop.eup %4028  ;;  %v5948_v59 = vmul.f32 2.0, %v4027_v63  ;;  %v1268_v13 = vmul.f32 %v5813_v41, %v1200_v60  ;;  %v1317_v15 = vsub.f32 %v1284_v21, %v5819_v56  ;;  %4036 = vrcp.f32 %v1005_v43 }
 0x18e   : > { %v1773_v53 = vmul.f32 %v5929_v2, %v5895_v4  ;;  %v4031_v19 = vpop.eup %4030  ;;  %v1022_v54 = vmax.f32 %v990_v12, 1e-15  ;;  %v1495_v55 = vsel %vm1493_vm1, %v1494_v26, %v1492_v32  ;;  %v5968_v51 = vadd.f32 1.0, %v1421_v23 }
 0x18f   : > { %v966_v30 = vsub.f32 1.0, %v934_v61  ;;  %v951_v37 = vmul.f32 %v5769_v7, %v5769_v7  ;;  %v4033_v35 = vpop.eup %4032  ;;  %v1681_v25 = vmul.f32 %v5897_v1, %v1680_v20  ;;  %v5974_v28 = vand.u32 2147483647, %v5958_v31 }
 0x190   : > { %v1774_v57 = vmul.f32 %v5929_v2, %v1773_v53  ;;  %v1243_v63 = vpop.f32.mrf.mxu3  ;;  %v1277_v14 = vmul.f32 %v5813_v41, %v1223_v24  ;;  %v974_v53 = vsub.f32 1.0, %v942_v44  ;;  %v5977_v17 = vpop.eup %4034  ;;  %v1341_v60 = vmul.f32 %v1309_v8, %v5912_v49 }
 0x191   : > { %v1301_v43 = vsub.f32 %v1268_v13, %v5819_v56  ;;  %v1285_v12 = vmul.f32 %v5813_v41, %v1243_v63  ;;  %v1868_v7 = vadd.f32 %v1495_v55, %v5829_v27  ;;  %v1349_v23 = vmul.f32 %v1317_v15, %v5914_v16 }
 0x192   : > { %v1775_v21 = vmul.f32 0.5, %v1774_v57  ;;  %4038 = vrcp.f32 %v1022_v54  ;;  %v935_v1 = vmul.f32 %v5781_v11, %v5781_v11  ;;  %v5987_v32 = vmul.f32 2.0, %v4031_v19 }
 0x193   : > { %4040 = vrsqrt.f32 %v5968_v51  ;;  %v998_v20 = vmax.f32 %v966_v30, 1e-15  ;;  %v983_v44 = vsub.f32 1.0, %v951_v37  ;;  %v5989_v49 = vpop.eup %4036  ;;  %v1682_v26 = vmul.f32 %v1681_v25, %v5878_v46 }
 0x194   : > { %v1428_v27 = vmul.f32 %v5974_v28, %v5974_v28  ;;  %v1310_v16 = vsub.f32 %v1277_v14, %v5819_v56  ;;  %v1006_v57 = vmax.f32 %v974_v53, 1e-15  ;;  %v1776_v8 = vsub.f32 1.5, %v1775_v21 }
 0x195   : > { %v5996_v11 = vadd.f32 %v1341_v60, %v5819_v56  ;;  %v1333_v13 = vmul.f32 %v1301_v43, %v5919_v29  ;;  %v1318_v19 = vsub.f32 %v1285_v12, %v5819_v56  ;;  %4042 = vlog2.f32 %v1868_v7 }
 0x196   : > { %v6001_v24 = vadd.f32 %v1349_v23, %v5819_v56  ;;  %v967_v63 = vsub.f32 1.0, %v935_v1  ;;  %v6005_v54 = vmul.f32 2.0, %v4033_v35  ;;  %4044 = vrcp.f32 %v998_v20 }
 0x197   : > { %v1015_v55 = vmax.f32 %v983_v44, 1e-15  ;;  %v1684_v37 = vsel %vm1683_vm2, %v5878_v46, %v1682_v26  ;;  %v6010_v29 = vadd.f32 1.0, %v1428_v27  ;;  %v1342_v25 = vmul.f32 %v1310_v16, %v5921_v5  ;;  %v1225_v44 = vpop.f32.mrf.mxu2 }
 0x198   : > { %v6007_v30 = vpop.eup %4038  ;;  %4046 = vrcp.f32 %v1006_v57  ;;  %v1777_v53 = vmul.f32 %v5929_v2, %v1776_v8  ;;  %v6017_v21 = vand.u32 2147483647, %v5996_v11  ;;  %v6020_v35 = vadd.f32 %v1333_v13, %v5819_v56 }
 0x199   : > { %v1183_v61 = vpop.f32.mrf.mxu0  ;;  %v6013_v14 = vpop.eup %4040  ;;  %v1350_v60 = vmul.f32 %v1318_v19, %v5923_v6  ;;  %v1686_v43 = vand.u32 2147483648, %v5878_v46  ;;  %v6025_v12 = vand.u32 2147483647, %v6001_v24  ;;  %v999_v7 = vmax.f32 %v967_v63, 1e-15 }
 0x19a   : > { %v1261_v15 = vmul.f32 %v5813_v41, %v1183_v61  ;;  %4048 = vrcp.f32 %v1015_v55  ;;  %v952_v2 = vmul.f32 %v5776_v45, %v5776_v45  ;;  %v959_v23 = vmul.f32 %v5789_v58, %v5789_v58 }
 0x19b   : > { %v4043_v1 = vpop.eup %4042  ;;  %v1687_v61 = vsel %vm1685_vm3, %v1686_v43, %v1684_v37  ;;  %v1497_v6 = vmul.f32 %v6013_v14, %v5968_v51  ;;  %4050 = vrsqrt.f32 %v6010_v29  ;;  %v6037_v20 = vadd.f32 %v1342_v25, %v5819_v56 }
 0x19c   : > { %v1294_v5 = vsub.f32 %v1261_v15, %v5819_v56  ;;  %v6039_v26 = vpop.eup %4044  ;;  %v1778_v46 = vmul.f32 %v1777_v53, %v5895_v4  ;;  %v1437_v45 = vmul.f32 %v6017_v21, %v6017_v21  ;;  %v6045_v58 = vand.u32 2147483647, %v6020_v35 }
 0x19d   : > { %8387 = vst [vmem:[#allocation15_spill] sm:$0xff] %v6037_v20  ;;  %v6048_v27 = vadd.f32 %v1350_v60, %v5819_v56  ;;  %v1445_v57 = vmul.f32 %v6025_v12, %v6025_v12  ;;  %4052 = vrcp.f32 %v999_v7  ;;  %v936_v13 = vmul.f32 %v5784_v18, %v5784_v18 }
 0x19e   : > { %v6050_v16 = vpop.eup %4046  ;;  %v1326_v8 = vmul.f32 %v1294_v5, %v5925_v52  ;;  %v1901_v19 = vmul.f32 0.6931472, %v4043_v1  ;;  %v1278_v15 = vmul.f32 %v5813_v41, %v1225_v44  ;;  %v984_v63 = vsub.f32 1.0, %v952_v2 }
 0x19f   : > { %8388 = vst [vmem:[#allocation14_spill] sm:$0xff] %v6048_v27  ;;  %v991_v55 = vsub.f32 1.0, %v959_v23  ;;  %v1884_v37 = vadd.f32 %v1687_v61, %v5855_v47  ;;  %v1498_v25 = vmul.f32 %v6013_v14, %v1497_v6  ;;  %v6062_v53 = vand.u32 2147483647, %v6037_v20  ;;  %v1245_v6 = vpop.f32.mrf.mxu3 }
 0x1a0   : > { %v6064_v60 = vpop.eup %4048  ;;  %v1780_v52 = vsel %vm1779_vm4, %v5895_v4, %v1778_v46  ;;  %v6067_v43 = vadd.f32 1.0, %v1437_v45  ;;  %v1429_v18 = vmul.f32 %v6045_v58, %v6045_v58  ;;  %v6072_v5 = vand.u32 2147483647, %v6048_v27 }
 0x1a1   : > { %v6074_v47 = vpop.eup %4050  ;;  %v1782_v7 = vand.u32 2147483648, %v5895_v4  ;;  %v6077_v2 = vadd.f32 1.0, %v1445_v57  ;;  %v6080_v23 = vadd.f32 %v1326_v8, %v5819_v56  ;;  %v968_v1 = vsub.f32 1.0, %v936_v13 }
 0x1a2   : > { %v1311_v61 = vsub.f32 %v1278_v15, %v5819_v56  ;;  %v1016_v44 = vmax.f32 %v984_v63, 1e-15  ;;  %v1023_v46 = vmax.f32 %v991_v55, 1e-15  ;;  %4054 = vlog2.f32 %v1884_v37 }
 0x1a3   : > { %8389 = vst [vmem:[#allocation16_spill] sm:$0xff] %v6080_v23  ;;  %v4053_v45 = vpop.eup %4052  ;;  %v1783_v50 = vsel %vm1781_vm5, %v1782_v7, %v1780_v52  ;;  %v1499_v0 = vmul.f32 0.5, %v1498_v25  ;;  %v1438_v27 = vmul.f32 %v6062_v53, %v6062_v53  ;;  %v1581_v57 = vmul.f32 %v6074_v47, %v6010_v29 }
 0x1a4   : > { %4056 = vrsqrt.f32 %v6067_v43  ;;  %v6089_v8 = vadd.f32 1.0, %v1429_v18  ;;  %v1446_v4 = vmul.f32 %v6072_v5, %v6072_v5  ;;  %v6095_v13 = vand.u32 2147483647, %v6080_v23 }
 0x1a5   : > { %4058 = vrsqrt.f32 %v6077_v2  ;;  %v1286_v15 = vmul.f32 %v5813_v41, %v1245_v6  ;;  %v1000_v63 = vmax.f32 %v968_v1, 1e-15  ;;  %v1892_v55 = vadd.f32 %v1783_v50, %v5885_v62 }
 0x1a6   : > { %v1343_v37 = vmul.f32 %v1311_v61, %v5927_v22  ;;  %v6101_v25 = vmul.f32 2.0, %v5977_v17  ;;  %4060 = vrcp.f32 %v1016_v44  ;;  %v1996_v52 = vsub.f32 0.0, %v1901_v19 }
 0x1a7   : > { %v6103_v18 = vadd.f32 1.0, %v1438_v27  ;;  %v6106_v7 = vmul.f32 2.0, %v5989_v49  ;;  %4062 = vrcp.f32 %v1023_v46  ;;  %v1500_v23 = vsub.f32 1.5, %v1499_v0 }
 0x1a8   : > { %v1582_v20 = vmul.f32 %v6074_v47, %v1581_v57  ;;  %4064 = vrsqrt.f32 %v6089_v8  ;;  %v6110_v1 = vadd.f32 1.0, %v1446_v4  ;;  %v4055_v50 = vpop.eup %4054  ;;  %v1422_v62 = vmul.f32 %v6095_v13, %v6095_v13 }
 0x1a9   : > { %8390 = vst [vmem:[#allocation18_spill] sm:$0xff] %v6106_v7  ;;  %v1319_v22 = vsub.f32 %v1286_v15, %v5819_v56  ;;  %v6116_v17 = vmul.f32 2.0, %v6007_v30  ;;  %4066 = vrcp.f32 %v1000_v63  ;;  %v6122_v0 = vadd.f32 %v1343_v37, %v5819_v56  ;;  %v1185_v30 = vpop.f32.mrf.mxu0 }
 0x1aa   : > { %v6118_v49 = vpop.eup %4056  ;;  %4068 = vlog2.f32 %v1892_v55  ;;  %v6125_v27 = vmul.f32 2.0, %v6039_v26  ;;  %v2028_v6 = vsel %vm1964_vm6, %v1996_v52, %v1901_v19  ;;  %v6130_v44 = vperm.slane %v5810_v9, 2 }
 0x1ab   : > { %8391 = vst [vmem:[#allocation17_spill] sm:$0xff] %v6116_v17  ;;  %v6127_v61 = vpop.eup %4058  ;;  %4070 = vrsqrt.f32 %v6103_v18  ;;  %v943_v46 = vmul.f32 %v5797_v48, %v5797_v48  ;;  %v1933_v57 = vmul.f32 0.6931472, %v4055_v50  ;;  %v1501_v4 = vmul.f32 %v6013_v14, %v1500_v23 }
 0x1ac   : > { %8392 = vst [vmem:[#allocation20_spill] sm:$0xff] %v6122_v0  ;;  %v4061_v38 = vpop.eup %4060  ;;  %v1583_v15 = vmul.f32 0.5, %v1582_v20  ;;  %4072 = vrsqrt.f32 %v6110_v1  ;;  %v1689_v19 = vmul.f32 %v6118_v49, %v6067_v43  ;;  %v6139_v63 = vadd.f32 1.0, %v1422_v62 }
 0x1ad   : > { %8393 = vst [vmem:[#allocation22_spill] sm:$0xff] %v6125_v27  ;;  %v4063_v26 = vpop.eup %4062  ;;  %v1351_v9 = vmul.f32 %v1319_v22, %v5936_v3  ;;  %v6143_v55 = vmul.f32 2.0, %v6050_v16  ;;  %v1785_v48 = vmul.f32 %v6127_v61, %v6077_v2  ;;  %v6151_v14 = vand.u32 2147483647, %v6122_v0 }
 0x1ae   : > { %v6145_v37 = vpop.eup %4064  ;;  %v1262_v20 = vmul.f32 %v5813_v41, %v1185_v30  ;;  %v6155_v52 = vmul.f32 %v6130_v44, %v2028_v6  ;;  %v6158_v3 = vmul.f32 2.0, %v6064_v60  ;;  %v6160_v16 = vmul.f32 2.0, %v4053_v45 }
 0x1af   : > { %8394 = vst [vmem:[#allocation19_spill] sm:$0xff] %v6143_v55  ;;  %v4067_v23 = vpop.eup %4066  ;;  %v975_v50 = vsub.f32 1.0, %v943_v46  ;;  %v2012_v22 = vsub.f32 0.0, %v1933_v57  ;;  %v1502_v55 = vmul.f32 %v1501_v4, %v5968_v51  ;;  %v1584_v27 = vsub.f32 1.5, %v1583_v15 }
 0x1b0   : > { %8395 = vst [vmem:[#allocation21_spill] sm:$0xff] %v6155_v52  ;;  %v4069_v62 = vpop.eup %4068  ;;  %v6163_v17 = vmul.f32 2.0, %v4061_v38  ;;  %v1690_v30 = vmul.f32 %v6118_v49, %v1689_v19  ;;  %v1593_v6 = vmul.f32 %v6145_v37, %v6089_v8  ;;  %4074 = vrsqrt.f32 %v6139_v63 }
 0x1b1   : > { %8396 = vst [vmem:[#allocation24_spill] sm:$0xff] %v6158_v3  ;;  %v6165_v0 = vpop.eup %4070  ;;  %v6172_v60 = vadd.f32 %v1351_v9, %v5819_v56  ;;  %v1786_v46 = vmul.f32 %v6127_v61, %v1785_v48  ;;  %v1439_v38 = vmul.f32 %v6151_v14, %v6151_v14  ;;  %v1295_v4 = vsub.f32 %v1262_v20, %v5819_v56 }
 0x1b2   : > { %8397 = vst [vmem:[#allocation23_spill] sm:$0xff] %v6160_v16  ;;  %v6174_v45 = vpop.eup %4072  ;;  %v6180_v15 = vmul.f32 2.0, %v4063_v26  ;;  %v1949_v19 = vmul.f32 0.6931472, %v4069_v62  ;;  %vm1503_vm9 = vcmp.eq.f32.partialorder %v5968_v51, inf  ;;  %v2044_v16 = vsel %vm1980_vm7, %v2012_v22, %v1933_v57 }
 0x1b3   : > { %8398 = vst [vmem:[#allocation25_spill] sm:$0xff] %v6163_v17  ;;  %v6184_v17 = vmul.f32 2.0, %v4067_v23  ;;  %v1007_v9 = vmax.f32 %v975_v50, 1e-15  ;;  %v1504_v48 = vsel %vm1503_vm9, %v5968_v51, %v1502_v55  ;;  %v1585_v3 = vmul.f32 %v6074_v47, %v1584_v27  ;;  %v1203_v50 = vpop.f32.mrf.mxu1 }
 0x1b4   : > { %8399 = vst [vmem:[#allocation26_spill] sm:$0xff] %v6172_v60  ;;  %v1701_v20 = vmul.f32 %v6165_v0, %v6103_v18  ;;  %v1691_v26 = vmul.f32 0.5, %v1690_v30  ;;  %v1594_v62 = vmul.f32 %v6145_v37, %v1593_v6  ;;  %v6196_v23 = vand.u32 2147483647, %v6172_v60 }
 0x1b5   : > { %8400 = vst [vmem:[#allocation27_spill] sm:$0xff] %v6180_v15  ;;  %v1797_v15 = vmul.f32 %v6174_v45, %v6110_v1  ;;  %v1506_v42 = vand.u32 2147483648, %v5968_v51  ;;  %v1787_v57 = vmul.f32 0.5, %v1786_v46  ;;  %v6199_v22 = vadd.f32 1.0, %v1439_v38  ;;  %v1228_v38 = vpop.f32.mrf.mxu2 }
 0x1b6   : > { %8401 = vst [vmem:[#allocation28_spill] sm:$0xff] %v6184_v17  ;;  %v1327_v47 = vmul.f32 %v1295_v4, %v5938_v33  ;;  %v6202_v27 = vpop.eup %4074  ;;  %v6205_v55 = vmul.f32 %v6130_v44, %v2044_v16  ;;  %v2020_v30 = vsub.f32 0.0, %v1949_v19  ;;  %vm1505_vm10 = vcmp.eq.f32.partialorder %v5968_v51, 0.0 }
 0x1b7   : > { %4076 = vrcp.f32 %v1007_v9  ;;  %v1507_v6 = vsel %vm1505_vm10, %v1506_v42, %v1504_v48  ;;  %v1586_v17 = vmul.f32 %v1585_v3, %v6010_v29  ;;  %v1702_v60 = vmul.f32 %v6165_v0, %v1701_v20 }
 0x1b8   : > { %v1269_v46 = vmul.f32 %v5813_v41, %v1203_v50  ;;  %v1692_v52 = vsub.f32 1.5, %v1691_v26  ;;  %v1595_v7 = vmul.f32 0.5, %v1594_v62  ;;  %v1798_v33 = vmul.f32 %v6174_v45, %v1797_v15 }
 0x1b9   : > { %v1447_v16 = vmul.f32 %v6196_v23, %v6196_v23  ;;  %v1788_v4 = vsub.f32 1.5, %v1787_v57  ;;  %v1509_v51 = vmul.f32 %v6202_v27, %v6139_v63  ;;  %4078 = vrsqrt.f32 %v6199_v22 }
 0x1ba   : > { %v6218_v3 = vadd.f32 %v1327_v47, %v5819_v56  ;;  %v1869_v9 = vadd.f32 %v1507_v6, %v5934_v36  ;;  %vm1587_vm11 = vcmp.eq.f32.partialorder %v6010_v29, inf  ;;  %vm1589_vm12 = vcmp.eq.f32.partialorder %v6010_v29, 0.0 }
 0x1bb   : > { %v1279_v15 = vmul.f32 %v5813_v41, %v1228_v38  ;;  %v6226_v48 = vsel %vm1988_vm8, %v2020_v30, %v1949_v19  ;;  %v1590_v20 = vand.u32 2147483648, %v6010_v29  ;;  %v1703_v26 = vmul.f32 0.5, %v1702_v60 }
 0x1bc   : > { %v1302_v62 = vsub.f32 %v1269_v46, %v5819_v56  ;;  %v1588_v42 = vsel %vm1587_vm11, %v6010_v29, %v1586_v17  ;;  %v1596_v36 = vsub.f32 1.5, %v1595_v7  ;;  %v1799_v57 = vmul.f32 0.5, %v1798_v33 }
 0x1bd   : > { %v6230_v50 = vpop.eup %4076  ;;  %v6233_v47 = vadd.f32 1.0, %v1447_v16  ;;  %v1693_v6 = vmul.f32 %v6118_v49, %v1692_v52  ;;  %v1789_v38 = vmul.f32 %v6127_v61, %v1788_v4  ;;  %v1510_v39 = vmul.f32 %v6202_v27, %v1509_v51  ;;  %v1205_v52 = vpop.f32.mrf.mxu1 }
 0x1be   : > { %v6239_v19 = vand.u32 2147483647, %v6218_v3  ;;  %4080 = vlog2.f32 %v1869_v9  ;;  %vm1695_vm13 = vcmp.eq.f32.partialorder %v6067_v43, inf  ;;  %v1698_v60 = vand.u32 2147483648, %v6067_v43 }
 0x1bf   : > { %v1312_v17 = vsub.f32 %v1279_v15, %v5819_v56  ;;  %v6244_v7 = vpop.eup %4078  ;;  %v1591_v30 = vsel %vm1589_vm12, %v1590_v20, %v1588_v42  ;;  %vm1697_vm14 = vcmp.eq.f32.partialorder %v6067_v43, 0.0  ;;  %vm1791_vm15 = vcmp.eq.f32.partialorder %v6077_v2, inf }
 0x1c0   : > { %v1704_v49 = vsub.f32 1.5, %v1703_v26  ;;  %v1334_v61 = vmul.f32 %v1302_v62, %v5941_v10  ;;  %vm1793_vm0 = vcmp.eq.f32.partialorder %v6077_v2, 0.0  ;;  %v1597_v46 = vmul.f32 %v6145_v37, %v1596_v36 }
 0x1c1   : > { %v1800_v33 = vsub.f32 1.5, %v1799_v57  ;;  %4082 = vrsqrt.f32 %v6233_v47  ;;  %v1694_v16 = vmul.f32 %v1693_v6, %v6067_v43  ;;  %v1790_v29 = vmul.f32 %v1789_v38, %v6077_v2 }
 0x1c2   : > { %v1511_v4 = vmul.f32 0.5, %v1510_v39  ;;  %v1423_v51 = vmul.f32 %v6239_v19, %v6239_v19  ;;  %v1876_v9 = vadd.f32 %v1591_v30, %v5974_v28  ;;  %v1713_v10 = vmul.f32 %v6244_v7, %v6199_v22 }
 0x1c3   : > { %v1344_v15 = vmul.f32 %v1312_v17, %v5946_v40  ;;  %v1270_v37 = vmul.f32 %v5813_v41, %v1205_v52  ;;  %v1794_v20 = vand.u32 2147483648, %v6077_v2  ;;  %vm1599_vm1 = vcmp.eq.f32.partialorder %v6089_v8, inf }
 0x1c4   : > { %v1705_v26 = vmul.f32 %v6165_v0, %v1704_v49  ;;  %v6267_v62 = vadd.f32 %v1334_v61, %v5819_v56  ;;  %v4081_v42 = vpop.eup %4080  ;;  %v1598_v36 = vmul.f32 %v1597_v46, %v6089_v8  ;;  %vm1601_vm2 = vcmp.eq.f32.partialorder %v6089_v8, 0.0  ;;  %v1230_v49 = vpop.f32.mrf.mxu2 }
 0x1c5   : > { %v1602_v28 = vand.u32 2147483648, %v6089_v8  ;;  %v1801_v40 = vmul.f32 %v6174_v45, %v1800_v33  ;;  %v1696_v57 = vsel %vm1695_vm13, %v6067_v43, %v1694_v16  ;;  %v1792_v0 = vsel %vm1791_vm15, %v6077_v2, %v1790_v29 }
 0x1c6   : > { %v1512_v6 = vsub.f32 1.5, %v1511_v4  ;;  %v6279_v38 = vadd.f32 1.0, %v1423_v51  ;;  %4084 = vlog2.f32 %v1876_v9  ;;  %v1714_v17 = vmul.f32 %v6244_v7, %v1713_v10 }
 0x1c7   : > { %v6281_v39 = vpop.eup %4082  ;;  %v6285_v30 = vadd.f32 %v1344_v15, %v5819_v56  ;;  %v1303_v45 = vsub.f32 %v1270_v37, %v5819_v56  ;;  %v6288_v61 = vmul.f32 0.6931472, %v4081_v42  ;;  %v1706_v52 = vmul.f32 %v1705_v26, %v6103_v18 }
 0x1c8   : > { %vm1707_vm3 = vcmp.eq.f32.partialorder %v6103_v18, inf  ;;  %v6293_v46 = vand.u32 2147483647, %v6267_v62  ;;  %v1699_v33 = vsel %vm1697_vm14, %v1698_v60, %v1696_v57  ;;  %v1795_v16 = vsel %vm1793_vm0, %v1794_v20, %v1792_v0 }
 0x1c9   : > { %v1600_v29 = vsel %vm1599_vm1, %v6089_v8, %v1598_v36  ;;  %v1802_v4 = vmul.f32 %v1801_v40, %v6110_v1  ;;  %v1513_v51 = vmul.f32 %v6202_v27, %v1512_v6  ;;  %v1809_v9 = vmul.f32 %v6281_v39, %v6233_v47 }
 0x1ca   : > { %4086 = vrsqrt.f32 %v6279_v38  ;;  %v1280_v10 = vmul.f32 %v5813_v41, %v1230_v49  ;;  %vm1709_vm4 = vcmp.eq.f32.partialorder %v6103_v18, 0.0  ;;  %v1715_v43 = vmul.f32 0.5, %v1714_v17 }
 0x1cb   : > { %v6310_v2 = vand.u32 2147483647, %v6285_v30  ;;  %v1335_v60 = vmul.f32 %v1303_v45, %v5948_v59  ;;  %v1885_v15 = vadd.f32 %v1699_v33, %v6017_v21  ;;  %v1708_v37 = vsel %vm1707_vm3, %v6103_v18, %v1706_v52  ;;  %v1248_v33 = vpop.f32.mrf.mxu3 }
 0x1cc   : > { %v1710_v27 = vand.u32 2147483648, %v6103_v18  ;;  %v1430_v20 = vmul.f32 %v6293_v46, %v6293_v46  ;;  %v4085_v26 = vpop.eup %4084  ;;  %v1893_v42 = vadd.f32 %v1795_v16, %v6025_v12  ;;  %v1603_v36 = vsel %vm1601_vm2, %v1602_v28, %v1600_v29 }
 0x1cd   : > { %vm1803_vm5 = vcmp.eq.f32.partialorder %v6110_v1, inf  ;;  %v1806_v40 = vand.u32 2147483648, %v6110_v1  ;;  %v1514_v21 = vmul.f32 %v1513_v51, %v6139_v63  ;;  %v1810_v57 = vmul.f32 %v6281_v39, %v1809_v9 }
 0x1ce   : > { %v1804_v59 = vsel %vm1803_vm5, %v6110_v1, %v1802_v4  ;;  %v1313_v0 = vsub.f32 %v1280_v10, %v5819_v56  ;;  %v1711_v6 = vsel %vm1709_vm4, %v1710_v27, %v1708_v37  ;;  %v1716_v17 = vsub.f32 1.5, %v1715_v43 }
 0x1cf   : > { %v1440_v12 = vmul.f32 %v6310_v2, %v6310_v2  ;;  %v6332_v8 = vadd.f32 %v1335_v60, %v5819_v56  ;;  %vm1965_vm6 = vcmp.lt.f32.partialorder %v5910_v34, 0.0  ;;  %v1917_v45 = vmul.f32 0.6931472, %v4085_v26 }
 0x1d0   : > { %v6334_v28 = vpop.eup %4086  ;;  %4088 = vlog2.f32 %v1885_v15  ;;  %vm1805_vm7 = vcmp.eq.f32.partialorder %v6110_v1, 0.0  ;;  %v6338_v49 = vadd.f32 1.0, %v1430_v20  ;;  %v1877_v18 = vadd.f32 %v1603_v36, %v6045_v58 }
 0x1d1   : > { %4090 = vlog2.f32 %v1893_v42  ;;  %v1807_v52 = vsel %vm1805_vm7, %v1806_v40, %v1804_v59  ;;  %vm1515_vm8 = vcmp.eq.f32.partialorder %v6139_v63, inf  ;;  %v1886_v16 = vadd.f32 %v1711_v6, %v6062_v53  ;;  %v1188_v40 = vpop.f32.mrf.mxu0 }
 0x1d2   : > { %v1516_v29 = vsel %vm1515_vm8, %v6139_v63, %v1514_v21  ;;  %v1811_v4 = vmul.f32 0.5, %v1810_v57  ;;  %v1345_v51 = vmul.f32 %v1313_v0, %v5987_v32  ;;  %v1717_v9 = vmul.f32 %v6244_v7, %v1716_v17 }
 0x1d3   : > { %v1521_v1 = vmul.f32 %v6334_v28, %v6279_v38  ;;  %v6348_v10 = vadd.f32 1.0, %v1440_v12  ;;  %v6351_v58 = vand.u32 2147483647, %v6332_v8  ;;  %v1894_v43 = vadd.f32 %v1807_v52, %v6072_v5 }
 0x1d4   : > { %v1518_v60 = vand.u32 2147483648, %v6139_v63  ;;  %4092 = vrsqrt.f32 %v6338_v49  ;;  %v1287_v53 = vmul.f32 %v5813_v41, %v1248_v33  ;;  %v1997_v32 = vsub.f32 0.0, %v6288_v61 }
 0x1d5   : > { %v2004_v15 = vsub.f32 0.0, %v1917_v45  ;;  %4094 = vlog2.f32 %v1877_v18  ;;  %vm1517_vm9 = vcmp.eq.f32.partialorder %v6139_v63, 0.0  ;;  %v1812_v27 = vsub.f32 1.5, %v1811_v4 }
 0x1d6   : > { %v4089_v7 = vpop.eup %4088  ;;  %4096 = vlog2.f32 %v1886_v16  ;;  %v1519_v37 = vsel %vm1517_vm9, %v1518_v60, %v1516_v29  ;;  %v6360_v20 = vadd.f32 %v1345_v51, %v5819_v56  ;;  %v1718_v26 = vmul.f32 %v1717_v9, %v6199_v22 }
 0x1d7   : > { %v4091_v5 = vpop.eup %4090  ;;  %v1522_v42 = vmul.f32 %v6334_v28, %v1521_v1  ;;  %4098 = vrsqrt.f32 %v6348_v10  ;;  %v1431_v36 = vmul.f32 %v6351_v58, %v6351_v58  ;;  %vm1972_vm10 = vcmp.lt.f32.partialorder %v5958_v31, 0.0 }
 0x1d8   : > { %4100 = vlog2.f32 %v1894_v43  ;;  %v1320_v63 = vsub.f32 %v1287_v53, %v5819_v56  ;;  %v6370_v59 = vmul.f32 2.0, %v6230_v50  ;;  %v6374_v21 = vmul.f32 %v6130_v44, %v6226_v48 }
 0x1d9   : > { %v2029_v57 = vsel %vm1965_vm6, %v1997_v32, %v6288_v61  ;;  %v2036_v0 = vsel %vm1972_vm10, %v2004_v15, %v1917_v45  ;;  %v1870_v6 = vadd.f32 %v1519_v37, %v6095_v13  ;;  %vm1981_vm11 = vcmp.lt.f32.partialorder %v5996_v11, 0.0  ;;  %v8403_v37 = vld [vmem:[#allocation15_spill] sm:$0xff] }
 0x1da   : > { %v6380_v17 = vpop.eup %4092  ;;  %vm1719_vm12 = vcmp.eq.f32.partialorder %v6199_v22, inf  ;;  %v1813_v31 = vmul.f32 %v6281_v39, %v1812_v27  ;;  %v6386_v50 = vand.u32 2147483647, %v6360_v20  ;;  %v1263_v48 = vmul.f32 %v5813_v41, %v1188_v40 }
 0x1db   : > { %v4095_v12 = vpop.eup %4094  ;;  %v1935_v18 = vmul.f32 0.6931472, %v4089_v7  ;;  %vm1989_vm13 = vcmp.lt.f32.partialorder %v6001_v24, 0.0  ;;  %v1720_v34 = vsel %vm1719_vm12, %v6199_v22, %v1718_v26  ;;  %v1523_v13 = vmul.f32 0.5, %v1522_v42 }
 0x1dc   : > { %v6391_v61 = vadd.f32 1.0, %v1431_v36  ;;  %v4097_v45 = vpop.eup %4096  ;;  %v6394_v52 = vmul.f32 %v6130_v44, %v2029_v57  ;;  %v1951_v33 = vmul.f32 0.6931472, %v4091_v5  ;;  %v1722_v39 = vand.u32 2147483648, %v6199_v22  ;;  %v8404_v36 = vld [vmem:[#allocation14_spill] sm:$0xff] }
 0x1dd   : > { %v1352_v16 = vmul.f32 %v1320_v63, %v6005_v54  ;;  %v6398_v29 = vpop.eup %4098  ;;  %v6401_v4 = vmul.f32 %v6130_v44, %v2036_v0  ;;  %4102 = vlog2.f32 %v1870_v6  ;;  %vm1721_vm14 = vcmp.eq.f32.partialorder %v6199_v22, 0.0  ;;  %v1208_v22 = vpop.f32.mrf.mxu1 }
 0x1de   : > { %8402 = vst [vmem:[#allocation29_spill] sm:$0xff] %v6394_v52  ;;  %v1605_v51 = vmul.f32 %v6380_v17, %v6338_v49  ;;  %v4101_v9 = vpop.eup %4100  ;;  %vm1973_vm15 = vcmp.lt.f32.partialorder %v6020_v35, 0.0  ;;  %v1723_v1 = vsel %vm1721_vm14, %v1722_v39, %v1720_v34  ;;  %v1814_v43 = vmul.f32 %v1813_v31, %v6233_v47 }
 0x1df   : > { %v1441_v54 = vmul.f32 %v6386_v50, %v6386_v50  ;;  %v1296_v60 = vsub.f32 %v1263_v48, %v5819_v56  ;;  %v2013_v53 = vsub.f32 0.0, %v1935_v18  ;;  %v1919_v32 = vmul.f32 0.6931472, %v4095_v12 }
 0x1e0   : > { %v1524_v15 = vsub.f32 1.5, %v1523_v13  ;;  %4104 = vrsqrt.f32 %v6391_v61  ;;  %v2021_v7 = vsub.f32 0.0, %v1951_v33  ;;  %vm1982_vm0 = vcmp.lt.f32.partialorder %v8403_v37, 0.0 }
 0x1e1   : > { %vm1815_vm1 = vcmp.eq.f32.partialorder %v6233_v47, inf  ;;  %v1725_v27 = vmul.f32 %v6398_v29, %v6348_v10  ;;  %v6417_v5 = vadd.f32 %v1352_v16, %v5819_v56  ;;  %v1937_v26 = vmul.f32 0.6931472, %v4097_v45 }
 0x1e2   : > { %v1953_v42 = vmul.f32 0.6931472, %v4101_v9  ;;  %vm1990_vm2 = vcmp.lt.f32.partialorder %v8404_v36, 0.0  ;;  %v1887_v40 = vadd.f32 %v1723_v1, %v6151_v14  ;;  %v1606_v63 = vmul.f32 %v6380_v17, %v1605_v51  ;;  %v8405_v1 = vld [vmem:[#allocation16_spill] sm:$0xff] }
 0x1e3   : > { %v1816_v57 = vsel %vm1815_vm1, %v6233_v47, %v1814_v43  ;;  %v6423_v0 = vadd.f32 1.0, %v1441_v54  ;;  %v1328_v6 = vmul.f32 %v1296_v60, %v6101_v25  ;;  %v1271_v31 = vmul.f32 %v5813_v41, %v1208_v22  ;;  %v4103_v48 = vpop.eup %4102  ;;  %v1250_v60 = vpop.f32.mrf.mxu3 }
 0x1e4   : > { %v2045_v12 = vsel %vm1981_vm11, %v2013_v53, %v1935_v18  ;;  %v2005_v34 = vsub.f32 0.0, %v1919_v32  ;;  %v1818_v13 = vand.u32 2147483648, %v6233_v47  ;;  %v1525_v45 = vmul.f32 %v6334_v28, %v1524_v15 }
 0x1e5   : > { %v2053_v14 = vsel %vm1989_vm13, %v2021_v7, %v1951_v33  ;;  %vm1817_vm3 = vcmp.eq.f32.partialorder %v6233_v47, 0.0  ;;  %v1726_v39 = vmul.f32 %v6398_v29, %v1725_v27  ;;  %v6436_v25 = vand.u32 2147483647, %v6417_v5 }
 0x1e6   : > { %v6438_v16 = vpop.eup %4104  ;;  %v2014_v51 = vsub.f32 0.0, %v1937_v26  ;;  %4106 = vlog2.f32 %v1887_v40  ;;  %v1819_v11 = vsel %vm1817_vm3, %v1818_v13, %v1816_v57  ;;  %v1607_v18 = vmul.f32 0.5, %v1606_v63  ;;  %v8408_v63 = vld [vmem:[#allocation18_spill] sm:$0xff] }
 0x1e7   : > { %v2022_v9 = vsub.f32 0.0, %v1953_v42  ;;  %vm1966_vm4 = vcmp.lt.f32.partialorder %v8405_v1, 0.0  ;;  %4108 = vrsqrt.f32 %v6423_v0  ;;  %v6443_v24 = vadd.f32 %v1328_v6, %v5819_v56 }
 0x1e8   : > { %v1304_v47 = vsub.f32 %v1271_v31, %v5819_v56  ;;  %v6447_v28 = vmul.f32 %v6130_v44, %v2045_v12  ;;  %v2037_v33 = vsel %vm1973_vm15, %v2005_v34, %v1919_v32  ;;  %v1905_v43 = vmul.f32 0.6931472, %v4103_v48 }
 0x1e9   : > { %v1526_v54 = vmul.f32 %v1525_v45, %v6279_v38  ;;  %v1895_v53 = vadd.f32 %v1819_v11, %v6196_v23  ;;  %v1727_v15 = vmul.f32 0.5, %v1726_v39  ;;  %v1617_v22 = vmul.f32 %v6438_v16, %v6391_v61  ;;  %v1190_v45 = vpop.f32.mrf.mxu0  ;;  %v8412_v11 = vld [vmem:[#allocation20_spill] sm:$0xff] }
 0x1ea   : > { %8406 = vst [vmem:[#allocation15_spill] sm:$0xff] %v6447_v28  ;;  %v1448_v7 = vmul.f32 %v6436_v25, %v6436_v25  ;;  %v6458_v27 = vmul.f32 %v6130_v44, %v2053_v14  ;;  %v2046_v35 = vsel %vm1982_vm0, %v2014_v51, %v1937_v26  ;;  %vm1527_vm5 = vcmp.eq.f32.partialorder %v6279_v38, inf }
 0x1eb   : > { %v1608_v32 = vsub.f32 1.5, %v1607_v18  ;;  %v2054_v40 = vsel %vm1990_vm2, %v2022_v9, %v1953_v42  ;;  %v6466_v23 = vand.u32 2147483647, %v6443_v24  ;;  %v1336_v57 = vmul.f32 %v1304_v47, %v8408_v63  ;;  %v8413_v63 = vld [vmem:[#allocation17_spill] sm:$0xff] }
 0x1ec   : > { %8407 = vst [vmem:[#allocation14_spill] sm:$0xff] %v6458_v27  ;;  %v1288_v6 = vmul.f32 %v5813_v41, %v1250_v60  ;;  %v4107_v31 = vpop.eup %4106  ;;  %v6471_v48 = vmul.f32 %v6130_v44, %v2037_v33  ;;  %v1998_v12 = vsub.f32 0.0, %v1905_v43  ;;  %v1528_v37 = vsel %vm1527_vm5, %v6279_v38, %v1526_v54 }
 0x1ed   : > { %v1530_v26 = vand.u32 2147483648, %v6279_v38  ;;  %v6475_v34 = vpop.eup %4108  ;;  %4110 = vlog2.f32 %v1895_v53  ;;  %v1728_v42 = vsub.f32 1.5, %v1727_v15  ;;  %v1618_v36 = vmul.f32 %v6438_v16, %v1617_v22 }
 0x1ee   : > { %8409 = vst [vmem:[#allocation16_spill] sm:$0xff] %v6471_v48  ;;  %v6478_v13 = vadd.f32 1.0, %v1448_v7  ;;  %v6481_v14 = vmul.f32 %v6130_v44, %v2046_v35  ;;  %v6484_v39 = vmul.f32 %v6130_v44, %v2054_v40  ;;  %vm1529_vm6 = vcmp.eq.f32.partialorder %v6279_v38, 0.0  ;;  %v1233_v7 = vpop.f32.mrf.mxu2 }
 0x1ef   : > { %v1609_v51 = vmul.f32 %v6380_v17, %v1608_v32  ;;  %vm1983_vm7 = vcmp.lt.f32.partialorder %v8412_v11, 0.0  ;;  %v1531_v18 = vsel %vm1529_vm6, %v1530_v26, %v1528_v37  ;;  %v1424_v9 = vmul.f32 %v6466_v23, %v6466_v23  ;;  %v1210_v17 = vpop.f32.mrf.mxu1  ;;  %v8415_v37 = vld [vmem:[#allocation21_spill] sm:$0xff] }
 0x1f0   : > { %8410 = vst [vmem:[#allocation18_spill] sm:$0xff] %v6481_v14  ;;  %v6492_v47 = vadd.f32 %v1336_v57, %v5819_v56  ;;  %v1321_v33 = vsub.f32 %v1288_v6, %v5819_v56  ;;  %v2030_v54 = vsel %vm1966_vm4, %v1998_v12, %v1905_v43  ;;  %v1939_v60 = vmul.f32 0.6931472, %v4107_v31 }
 0x1f1   : > { %8411 = vst [vmem:[#allocation30_spill] sm:$0xff] %v6484_v39  ;;  %vm1611_vm8 = vcmp.eq.f32.partialorder %v6338_v49, inf  ;;  %v1737_v38 = vmul.f32 %v6475_v34, %v6423_v0  ;;  %vm1613_vm9 = vcmp.eq.f32.partialorder %v6338_v49, 0.0  ;;  %v1729_v53 = vmul.f32 %v6398_v29, %v1728_v42 }
 0x1f2   : > { %v1619_v15 = vmul.f32 0.5, %v1618_v36  ;;  %4112 = vrsqrt.f32 %v6478_v13  ;;  %v1264_v22 = vmul.f32 %v5813_v41, %v1190_v45  ;;  %v1871_v1 = vadd.f32 %v1531_v18, %v6239_v19 }
 0x1f3   : > { %v1610_v43 = vmul.f32 %v1609_v51, %v6338_v49  ;;  %v1614_v35 = vand.u32 2147483648, %v6338_v49  ;;  %vm1731_vm10 = vcmp.eq.f32.partialorder %v6348_v10, inf  ;;  %v4111_v32 = vpop.eup %4110  ;;  %vm1733_vm11 = vcmp.eq.f32.partialorder %v6348_v10, 0.0 }
 0x1f4   : > { %v6509_v40 = vadd.f32 1.0, %v1424_v9  ;;  %v6512_v29 = vand.u32 2147483647, %v6492_v47  ;;  %v1353_v57 = vmul.f32 %v1321_v33, %v8413_v63  ;;  %v1272_v6 = vmul.f32 %v5813_v41, %v1210_v17 }
 0x1f5   : > { %v6517_v19 = vmul.f32 %v6130_v44, %v2030_v54  ;;  %v2015_v31 = vsub.f32 0.0, %v1939_v60  ;;  %v1738_v12 = vmul.f32 %v6475_v34, %v1737_v38  ;;  %v2157_v26 = vsub.f32 0.0, %v8415_v37  ;;  %v8416_v38 = vld [vmem:[#allocation26_spill] sm:$0xff] }
 0x1f6   : > { %v1730_v42 = vmul.f32 %v1729_v53, %v6348_v10  ;;  %v1620_v36 = vsub.f32 1.5, %v1619_v15  ;;  %v1297_v45 = vsub.f32 %v1264_v22, %v5819_v56  ;;  %v1281_v51 = vmul.f32 %v5813_v41, %v1233_v7  ;;  %v1193_v22 = vpop.f32.mrf.mxu0 }
 0x1f7   : > { %8414 = vst [vmem:[#allocation20_spill] sm:$0xff] %v6517_v19  ;;  %v1955_v18 = vmul.f32 0.6931472, %v4111_v32  ;;  %4114 = vlog2.f32 %v1871_v1  ;;  %v1612_v9 = vsel %vm1611_vm8, %v6338_v49, %v1610_v43  ;;  %v1734_v33 = vand.u32 2147483648, %v6348_v10  ;;  %v8419_v19 = vld [vmem:[#allocation24_spill] sm:$0xff] }
 0x1f8   : > { %v6528_v54 = vpop.eup %4112  ;;  %vm1991_vm12 = vcmp.lt.f32.partialorder %v8416_v38, 0.0  ;;  %4116 = vrsqrt.f32 %v6509_v40  ;;  %v1432_v17 = vmul.f32 %v6512_v29, %v6512_v29  ;;  %v6535_v53 = vadd.f32 %v1353_v57, %v5819_v56  ;;  %v8417_v57 = vld [vmem:[#allocation22_spill] sm:$0xff] }
 0x1f9   : > { %v1305_v15 = vsub.f32 %v1272_v6, %v5819_v56  ;;  %v2047_v7 = vsel %vm1983_vm7, %v2015_v31, %v1939_v60  ;;  %vm1623_vm13 = vcmp.eq.f32.partialorder %v6391_v61, inf  ;;  %v1739_v1 = vmul.f32 0.5, %v1738_v12 }
 0x1fa   : > { %v2093_v43 = vmul.f32 1.442695, %v8415_v37  ;;  %v2189_v32 = vmul.f32 1.442695, %v2157_v26  ;;  %v1732_v63 = vsel %vm1731_vm10, %v6348_v10, %v1730_v42  ;;  %v1621_v39 = vmul.f32 %v6438_v16, %v1620_v36  ;;  %v8418_v26 = vld [vmem:[#allocation19_spill] sm:$0xff]  ;;  %v1235_v36 = vpop.f32.mrf.mxu2 }
 0x1fb   : > { %v1329_v14 = vmul.f32 %v1297_v45, %v8417_v57  ;;  %v1314_v6 = vsub.f32 %v1281_v51, %v5819_v56  ;;  %v1615_v11 = vsel %vm1613_vm9, %v1614_v35, %v1612_v9  ;;  %v1626_v60 = vand.u32 2147483648, %v6391_v61 }
 0x1fc   : > { %v1821_v31 = vmul.f32 %v6528_v54, %v6478_v13  ;;  %v1265_v12 = vmul.f32 %v5813_v41, %v1193_v22  ;;  %vm1625_vm14 = vcmp.eq.f32.partialorder %v6391_v61, 0.0  ;;  %v6555_v37 = vadd.f32 1.0, %v1432_v17 }
 0x1fd   : > { %v6558_v16 = vand.u32 2147483647, %v6535_v53  ;;  %v1337_v42 = vmul.f32 %v1305_v15, %v8418_v26  ;;  %4118 = vpow2.f32 %v2189_v32  ;;  %v4115_v49 = vpop.eup %4114  ;;  %v2023_v35 = vsub.f32 0.0, %v1955_v18 }
 0x1fe   : > { %v1735_v45 = vsel %vm1733_vm11, %v1734_v33, %v1732_v63  ;;  %v1740_v51 = vsub.f32 1.5, %v1739_v1  ;;  %4120 = vpow2.f32 %v2093_v43  ;;  %v6563_v9 = vpop.eup %4116  ;;  %v1878_v22 = vadd.f32 %v1615_v11, %v6293_v46 }
 0x1ff   : > { %v1622_v17 = vmul.f32 %v1621_v39, %v6391_v61  ;;  %v6568_v57 = vadd.f32 %v1329_v14, %v5819_v56  ;;  %v1346_v15 = vmul.f32 %v1314_v6, %v8419_v19  ;;  %v6572_v32 = vmul.f32 %v6130_v44, %v2047_v7 }
 0x200   : > { %v1822_v26 = vmul.f32 %v6528_v54, %v1821_v31  ;;  %v1298_v10 = vsub.f32 %v1265_v12, %v5819_v56  ;;  %v1282_v33 = vmul.f32 %v5813_v41, %v1235_v36  ;;  %vm1967_vm15 = vcmp.lt.f32.partialorder %v6218_v3, 0.0 }
 0x201   : > { %8420 = vst [vmem:[#allocation17_spill] sm:$0xff] %v6572_v32  ;;  %v1888_v46 = vadd.f32 %v1735_v45, %v6310_v2  ;;  %4122 = vrsqrt.f32 %v6555_v37  ;;  %v1449_v14 = vmul.f32 %v6558_v16, %v6558_v16  ;;  %v6583_v39 = vadd.f32 %v1337_v42, %v5819_v56 }
 0x202   : > { %v2055_v19 = vsel %vm1991_vm12, %v2023_v35, %v1955_v18  ;;  %v1907_v7 = vmul.f32 0.6931472, %v4115_v49  ;;  %v1741_v1 = vmul.f32 %v6475_v34, %v1740_v51  ;;  %v1533_v43 = vmul.f32 %v6563_v9, %v6509_v40  ;;  %v8421_v34 = vld [vmem:[#allocation23_spill] sm:$0xff] }
 0x203   : > { %v4119_v63 = vpop.eup %4118  ;;  %4124 = vlog2.f32 %v1878_v22  ;;  %v1624_v2 = vsel %vm1623_vm13, %v6391_v61, %v1622_v17  ;;  %v6594_v6 = vand.u32 2147483647, %v6568_v57  ;;  %v6597_v11 = vadd.f32 %v1346_v15, %v5819_v56 }
 0x204   : > { %v4121_v38 = vpop.eup %4120  ;;  %vm1743_vm0 = vcmp.eq.f32.partialorder %v6423_v0, inf  ;;  %v1823_v18 = vmul.f32 0.5, %v1822_v26  ;;  %v1330_v31 = vmul.f32 %v1298_v10, %v8421_v34  ;;  %v1315_v12 = vsub.f32 %v1282_v33, %v5819_v56 }
 0x205   : > { %4126 = vlog2.f32 %v1888_v46  ;;  %v6602_v42 = vadd.f32 1.0, %v1449_v14  ;;  %v6605_v36 = vand.u32 2147483647, %v6583_v39  ;;  %v2253_v49 = vsub.f32 %v4121_v38, %v4119_v63  ;;  %v8424_v46 = vld [vmem:[#allocation25_spill] sm:$0xff] }
 0x206   : > { %v1999_v35 = vsub.f32 0.0, %v1907_v7  ;;  %v1627_v45 = vsel %vm1625_vm14, %v1626_v60, %v1624_v2  ;;  %v1742_v51 = vmul.f32 %v1741_v1, %v6423_v0  ;;  %v1534_v22 = vmul.f32 %v6563_v9, %v1533_v43  ;;  %v1253_v1 = vpop.f32.mrf.mxu3 }
 0x207   : > { %v6611_v17 = vpop.eup %4122  ;;  %v6614_v15 = vmul.f32 %v6130_v44, %v2055_v19  ;;  %vm1745_vm1 = vcmp.eq.f32.partialorder %v6423_v0, 0.0  ;;  %v1425_v26 = vmul.f32 %v6594_v6, %v6594_v6  ;;  %v6620_v10 = vand.u32 2147483647, %v6597_v11 }
 0x208   : > { %v1746_v61 = vand.u32 2147483648, %v6423_v0  ;;  %v1824_v60 = vsub.f32 1.5, %v1823_v18  ;;  %v6624_v33 = vadd.f32 %v1330_v31, %v5819_v56  ;;  %v1347_v14 = vmul.f32 %v1315_v12, %v8424_v46  ;;  %v1213_v12 = vpop.f32.mrf.mxu1 }
 0x209   : > { %8422 = vst [vmem:[#allocation21_spill] sm:$0xff] %v6614_v15  ;;  %v4125_v43 = vpop.eup %4124  ;;  %v1879_v19 = vadd.f32 %v1627_v45, %v6351_v58  ;;  %4128 = vrsqrt.f32 %v6602_v42  ;;  %v1433_v63 = vmul.f32 %v6605_v36, %v6605_v36  ;;  %v6631_v2 = vmul.f32 0.5, %v2253_v49  ;;  %v1195_v58 = vpop.f32.mrf.mxu0 }
 0x20a   : > { %8423 = vst [vmem:[#allocation26_spill] sm:$0xff] %v6624_v33  ;;  %v6635_v38 = vsel %vm1967_vm15, %v1999_v35, %v1907_v7  ;;  %v1744_v18 = vsel %vm1743_vm0, %v6423_v0, %v1742_v51  ;;  %v1535_v34 = vmul.f32 0.5, %v1534_v22  ;;  %v1629_v31 = vmul.f32 %v6611_v17, %v6555_v37 }
 0x20b   : > { %8425 = vst [vmem:[#allocation22_spill] sm:$0xff] %v6631_v2  ;;  %v4127_v45 = vpop.eup %4126  ;;  %vm1827_vm2 = vcmp.eq.f32.partialorder %v6478_v13, inf  ;;  %v6643_v46 = vadd.f32 1.0, %v1425_v26  ;;  %v1442_v3 = vmul.f32 %v6620_v10, %v6620_v10  ;;  %v2317_v7 = vmul.f32 %v6631_v2, %v6631_v2 }
 0x20c   : > { %v1289_v49 = vmul.f32 %v5813_v41, %v1253_v1  ;;  %v1921_v35 = vmul.f32 0.6931472, %v4125_v43  ;;  %vm1974_vm3 = vcmp.lt.f32.partialorder %v6267_v62, 0.0  ;;  %v1825_v51 = vmul.f32 %v6528_v54, %v1824_v60 }
 0x20d   : > { %v6653_v22 = vand.u32 2147483647, %v6624_v33  ;;  %v6656_v32 = vadd.f32 %v1347_v14, %v5819_v56  ;;  %vm1984_vm4 = vcmp.lt.f32.partialorder %v6285_v30, 0.0  ;;  %4130 = vlog2.f32 %v1879_v19  ;;  %2349 = vadd.xlane.f32.xlu2 %v2317_v7 }
 0x20e   : > { %v6659_v26 = vadd.f32 1.0, %v1433_v63  ;;  %v1266_v2 = vmul.f32 %v5813_v41, %v1195_v58  ;;  %v1273_v1 = vmul.f32 %v5813_v41, %v1213_v12  ;;  %v1941_v43 = vmul.f32 0.6931472, %v4127_v45 }
 0x20f   : > { %8426 = vst [vmem:[#allocation19_spill] sm:$0xff] %v6656_v32  ;;  %v1747_v54 = vsel %vm1745_vm1, %v1746_v61, %v1744_v18  ;;  %vm1829_vm5 = vcmp.eq.f32.partialorder %v6478_v13, 0.0  ;;  %v1536_v60 = vsub.f32 1.5, %v1535_v34  ;;  %v6666_v15 = vpop.eup %4128  ;;  %v1630_v14 = vmul.f32 %v6611_v17, %v1629_v31 }
 0x210   : > { %4132 = vrsqrt.f32 %v6643_v46  ;;  %v6670_v19 = vadd.f32 1.0, %v1442_v3  ;;  %v1322_v63 = vsub.f32 %v1289_v49, %v5819_v56  ;;  %v1826_v58 = vmul.f32 %v1825_v51, %v6478_v13 }
 0x211   : > { %v1426_v12 = vmul.f32 %v6653_v22, %v6653_v22  ;;  %v6677_v0 = vand.u32 2147483647, %v6656_v32  ;;  %v1306_v61 = vsub.f32 %v1273_v1, %v5819_v56  ;;  %v2006_v18 = vsub.f32 0.0, %v1921_v35  ;;  %v8427_v1 = vld [vmem:[#allocation27_spill] sm:$0xff] }
 0x212   : > { %v1830_v34 = vand.u32 2147483648, %v6478_v13  ;;  %4134 = vrsqrt.f32 %v6659_v26  ;;  %v1299_v31 = vsub.f32 %v1266_v2, %v5819_v56  ;;  %v2016_v45 = vsub.f32 0.0, %v1941_v43 }
 0x213   : > { %v1889_v3 = vadd.f32 %v1747_v54, %v6386_v50  ;;  %vm1539_vm6 = vcmp.eq.f32.partialorder %v6509_v40, inf  ;;  %v1833_v7 = vmul.f32 %v6666_v15, %v6602_v42  ;;  %v4131_v49 = vpop.eup %4130  ;;  %v1537_v51 = vmul.f32 %v6563_v9, %v1536_v60 }
 0x214   : > { %v1631_v32 = vmul.f32 0.5, %v1630_v14  ;;  %4136 = vrsqrt.f32 %v6670_v19  ;;  %v1354_v27 = vmul.f32 %v1322_v63, %v8427_v1  ;;  %v1828_v2 = vsel %vm1827_vm2, %v6478_v13, %v1826_v58  ;;  %v8428_v63 = vld [vmem:[#allocation28_spill] sm:$0xff] }
 0x215   : > { %v6693_v48 = vadd.f32 1.0, %v1426_v12  ;;  %v1443_v50 = vmul.f32 %v6677_v0, %v6677_v0  ;;  %v1338_v54 = vmul.f32 %v1306_v61, %v6370_v59  ;;  %v6702_v9 = vsel %vm1974_vm3, %v2006_v18, %v1921_v35 }
 0x216   : > { %v6698_v28 = vpop.eup %4132  ;;  %v1542_v60 = vand.u32 2147483648, %v6509_v40  ;;  %v1331_v1 = vmul.f32 %v1299_v31, %v8428_v63  ;;  %v6709_v58 = vsel %vm1984_vm4, %v2016_v45, %v1941_v43  ;;  %v6711_v12 = vmul.f32 0.6931472, %v4131_v49 }
 0x217   : > { %4138 = vlog2.f32 %v1889_v3  ;;  %v1834_v59 = vmul.f32 %v6666_v15, %v1833_v7  ;;  %v1831_v62 = vsel %vm1829_vm5, %v1830_v34, %v1828_v2  ;;  %v1538_v35 = vmul.f32 %v1537_v51, %v6509_v40 }
 0x218   : > { %v6714_v61 = vpop.eup %4134  ;;  %v1632_v18 = vsub.f32 1.5, %v1631_v32  ;;  %v6720_v14 = vadd.f32 %v1354_v27, %v5819_v56  ;;  %v1545_v30 = vmul.f32 %v6698_v28, %v6643_v46  ;;  %4140 = vrsqrt.f32 %v6693_v48 }
 0x219   : > { %v6725_v43 = vadd.f32 1.0, %v1443_v50  ;;  %v6728_v31 = vadd.f32 %v1338_v54, %v5819_v56  ;;  %vm1541_vm7 = vcmp.eq.f32.partialorder %v6509_v40, 0.0  ;;  %v6734_v13 = vadd.f32 %v1331_v1, %v5819_v56 }
 0x21a   : > { %8429 = vst [vmem:[#allocation24_spill] sm:$0xff] %v6720_v14  ;;  %v6730_v45 = vpop.eup %4136  ;;  %v2125_v27 = vmul.f32 1.442695, %v6205_v55  ;;  %v2173_v32 = vsub.f32 0.0, %v6205_v55  ;;  %v2165_v34 = vsub.f32 0.0, %v6401_v4  ;;  %v1835_v7 = vmul.f32 0.5, %v1834_v59 }
 0x21b   : > { %8430 = vst [vmem:[#allocation23_spill] sm:$0xff] %v6728_v31  ;;  %v1641_v49 = vmul.f32 %v6714_v61, %v6659_v26  ;;  %v2109_v51 = vmul.f32 1.442695, %v6401_v4  ;;  %v1896_v2 = vadd.f32 %v1831_v62, %v6436_v25  ;;  %v1540_v50 = vsel %vm1539_vm6, %v6509_v40, %v1538_v35 }
 0x21c   : > { %8431 = vst [vmem:[#allocation25_spill] sm:$0xff] %v6734_v13  ;;  %v1633_v54 = vmul.f32 %v6611_v17, %v1632_v18  ;;  %v6749_v55 = vand.u32 2147483647, %v6720_v14  ;;  %v1546_v1 = vmul.f32 %v6698_v28, %v1545_v30  ;;  %v1749_v59 = vmul.f32 %v6730_v45, %v6670_v19 }
 0x21d   : > { %v4139_v63 = vpop.eup %4138  ;;  %4142 = vrsqrt.f32 %v6725_v43  ;;  %v6756_v4 = vand.u32 2147483647, %v6728_v31  ;;  %v6759_v25 = vand.u32 2147483647, %v6734_v13  ;;  %v2221_v62 = vmul.f32 1.442695, %v2173_v32 }
 0x21e   : > { %4144 = vpow2.f32 %v2125_v27  ;;  %v2205_v17 = vmul.f32 1.442695, %v2165_v34  ;;  %v6761_v35 = vpop.eup %4140  ;;  %vm1635_vm8 = vcmp.eq.f32.partialorder %v6555_v37, inf  ;;  %v1836_v18 = vsub.f32 1.5, %v1835_v7 }
 0x21f   : > { %8432 = vst [vmem:[#allocation27_spill] sm:$0xff] %v6759_v25  ;;  %v1642_v30 = vmul.f32 %v6714_v61, %v1641_v49  ;;  %v1434_v3 = vmul.f32 %v6756_v4, %v6756_v4  ;;  %4146 = vpow2.f32 %v2109_v51  ;;  %v1450_v14 = vmul.f32 %v6749_v55, %v6749_v55 }
 0x220   : > { %4148 = vpow2.f32 %v2221_v62  ;;  %v2141_v13 = vmul.f32 1.442695, %v6374_v21  ;;  %v2181_v27 = vsub.f32 0.0, %v6374_v21  ;;  %v6771_v32 = vmul.f32 0.6931472, %v4139_v63 }
 0x221   : > { %v1547_v34 = vmul.f32 0.5, %v1546_v1  ;;  %v1750_v31 = vmul.f32 %v6730_v45, %v1749_v59  ;;  %4150 = vpow2.f32 %v2205_v17  ;;  %v1557_v7 = vmul.f32 %v6761_v35, %v6693_v48 }
 0x222   : > { %v1427_v49 = vmul.f32 %v6759_v25, %v6759_v25  ;;  %v6778_v51 = vadd.f32 1.0, %v1434_v3  ;;  %v2237_v52 = vmul.f32 1.442695, %v2181_v27  ;;  %4152 = vlog2.f32 %v1896_v2 }
 0x223   : > { %v6780_v62 = vpop.eup %4142  ;;  %v1543_v21 = vsel %vm1541_vm7, %v1542_v60, %v1540_v50  ;;  %vm1637_vm9 = vcmp.eq.f32.partialorder %v6555_v37, 0.0  ;;  %v1643_v1 = vmul.f32 0.5, %v1642_v30  ;;  %v1634_v17 = vmul.f32 %v1633_v54, %v6555_v37  ;;  %v8433_v60 = vld [vmem:[#allocation12_spill] sm:$0xff] }
 0x224   : > { %v4145_v59 = vpop.eup %4144  ;;  %v1837_v33 = vmul.f32 %v6666_v15, %v1836_v18  ;;  %vm1839_vm10 = vcmp.eq.f32.partialorder %v6602_v42, inf  ;;  %v6789_v3 = vadd.f32 1.0, %v1450_v14  ;;  %4154 = vpow2.f32 %v2141_v13 }
 0x225   : > { %v4147_v27 = vpop.eup %4146  ;;  %v1751_v40 = vmul.f32 0.5, %v1750_v31  ;;  %4156 = vpow2.f32 %v2237_v52  ;;  %v960_v50 = vmul.f32 %v8433_v60, %v8433_v60  ;;  %v1548_v30 = vsub.f32 1.5, %v1547_v34 }
 0x226   : > { %v4149_v63 = vpop.eup %4148  ;;  %v1558_v25 = vmul.f32 %v6761_v35, %v1557_v7  ;;  %v6795_v54 = vadd.f32 1.0, %v1427_v49  ;;  %4158 = vrsqrt.f32 %v6778_v51  ;;  %v1872_v14 = vadd.f32 %v1543_v21, %v6466_v23 }
 0x227   : > { %v4151_v15 = vpop.eup %4150  ;;  %vm1841_vm11 = vcmp.eq.f32.partialorder %v6602_v42, 0.0  ;;  %v1644_v13 = vsub.f32 1.5, %v1643_v1  ;;  %v2269_v18 = vsub.f32 %v4145_v59, %v4149_v63  ;;  %v992_v31 = vsub.f32 1.0, %v960_v50  ;;  %v1255_v1 = vpop.f32.mrf.mxu3 }
 0x228   : > { %v1636_v52 = vsel %vm1635_vm8, %v6555_v37, %v1634_v17  ;;  %v1838_v34 = vmul.f32 %v1837_v33, %v6602_v42  ;;  %4160 = vrsqrt.f32 %v6789_v3  ;;  %v2261_v7 = vsub.f32 %v4147_v27, %v4151_v15  ;;  %v4153_v49 = vpop.eup %4152 }
 0x229   : > { %v1752_v60 = vsub.f32 1.5, %v1751_v40  ;;  %v1761_v2 = vmul.f32 %v6780_v62, %v6725_v43  ;;  %v6807_v23 = vmul.f32 0.5, %v2269_v18  ;;  %v1024_v21 = vmax.f32 %v992_v31, 1e-15 }
 0x22a   : > { %v4155_v63 = vpop.eup %4154  ;;  %v1549_v59 = vmul.f32 %v6698_v28, %v1548_v30  ;;  %v1559_v50 = vmul.f32 0.5, %v1558_v25  ;;  %4162 = vrsqrt.f32 %v6795_v54  ;;  %v6811_v17 = vmul.f32 0.5, %v2261_v7 }
 0x22b   : > { %v4157_v33 = vpop.eup %4156  ;;  %vm1551_vm12 = vcmp.eq.f32.partialorder %v6643_v46, inf  ;;  %v1645_v27 = vmul.f32 %v6714_v61, %v1644_v13  ;;  %v2333_v40 = vmul.f32 %v6807_v23, %v6807_v23  ;;  %4164 = vrcp.f32 %v1024_v21 }
 0x22c   : > { %8434 = vst [vmem:[#allocation28_spill] sm:$0xff] %v6811_v17  ;;  %v6817_v15 = vpop.eup %4158  ;;  %4166 = vlog2.f32 %v1872_v14  ;;  %v8435_v18 = vand.u32 2147483648, %v6555_v37  ;;  %vm1553_vm13 = vcmp.eq.f32.partialorder %v6643_v46, 0.0  ;;  %v2325_v25 = vmul.f32 %v6811_v17, %v6811_v17 }
 0x22d   : > { %v1290_v30 = vmul.f32 %v5813_v41, %v1255_v1  ;;  %v1840_v61 = vsel %vm1839_vm10, %v6602_v42, %v1838_v34  ;;  %v1753_v13 = vmul.f32 %v6730_v45, %v1752_v60  ;;  %v1762_v14 = vmul.f32 %v6780_v62, %v1761_v2  ;;  %2381 = vadd.xlane.f32.xlu0 %v2333_v40  ;;  %v8437_v2 = vld [vmem:[#allocation13_spill] sm:$0xff] }
 0x22e   : > { %v1639_v28 = vsel %vm1637_vm9, %v8435_v18, %v1636_v52  ;;  %v2277_v31 = vsub.f32 %v4155_v63, %v4157_v33  ;;  %v6832_v7 = vpop.eup %4160  ;;  %v6834_v37 = vmul.f32 0.6931472, %v4153_v49  ;;  %v1550_v52 = vmul.f32 %v1549_v59, %v6643_v46  ;;  %2365 = vadd.xlane.f32.xlu1 %v2325_v25 }
 0x22f   : > { %v1554_v21 = vand.u32 2147483648, %v6643_v46  ;;  %v1560_v18 = vsub.f32 1.5, %v1559_v50  ;;  %v1646_v1 = vmul.f32 %v1645_v27, %v6659_v26  ;;  %v1653_v34 = vmul.f32 %v6817_v15, %v6778_v51 }
 0x230   : > { %v6841_v45 = vmul.f32 0.5, %v2277_v31  ;;  %v944_v60 = vmul.f32 %v8437_v2, %v8437_v2  ;;  %v6845_v63 = vpop.eup %4162  ;;  %v1880_v49 = vadd.f32 %v1639_v28, %v6512_v29  ;;  %v8438_v59 = vand.u32 2147483648, %v6602_v42 }
 0x231   : > { %vm1647_vm14 = vcmp.eq.f32.partialorder %v6659_v26, inf  ;;  %v1323_v33 = vsub.f32 %v1290_v30, %v5819_v56  ;;  %v4165_v27 = vpop.eup %4164  ;;  %v1754_v40 = vmul.f32 %v1753_v13, %v6670_v19  ;;  %v1763_v25 = vmul.f32 0.5, %v1762_v14 }
 0x232   : > { %8436 = vst [vmem:[#allocation12_spill] sm:$0xff] %v6841_v45  ;;  %v1843_v50 = vsel %vm1841_vm11, %v8438_v59, %v1840_v61  ;;  %v1845_v31 = vmul.f32 %v6832_v7, %v6789_v3  ;;  %v2341_v2 = vmul.f32 %v6841_v45, %v6841_v45  ;;  %v4167_v29 = vpop.eup %4166  ;;  %v1552_v42 = vsel %vm1551_vm12, %v6643_v46, %v1550_v52 }
 0x233   : > { %vm1649_vm15 = vcmp.eq.f32.partialorder %v6659_v26, 0.0  ;;  %v1561_v28 = vmul.f32 %v6761_v35, %v1560_v18  ;;  %v1088_v30 = vmul.f32 2.0, %v4165_v27  ;;  %v1648_v61 = vsel %vm1647_vm14, %v6659_v26, %v1646_v1 }
 0x234   : > { %v1569_v13 = vmul.f32 %v6845_v63, %v6795_v54  ;;  %v1654_v14 = vmul.f32 %v6817_v15, %v1653_v34  ;;  %2397 = vadd.xlane.f32.xlu2 %v2341_v2  ;;  %v976_v59 = vsub.f32 1.0, %v944_v60  ;;  %v1897_v45 = vadd.f32 %v1843_v50, %v6558_v16 }
 0x235   : > { %v1650_v17 = vand.u32 2147483648, %v6659_v26  ;;  %vm1755_vm0 = vcmp.eq.f32.partialorder %v6670_v19, inf  ;;  %v1355_v52 = vmul.f32 %v1323_v33, %v1088_v30  ;;  %vm1975_vm1 = vcmp.lt.f32.partialorder %v6332_v8, 0.0 }
 0x236   : > { %vm1985_vm2 = vcmp.lt.f32.partialorder %v6360_v20, 0.0  ;;  %v1555_v35 = vsel %vm1553_vm13, %v1554_v21, %v1552_v42  ;;  %v1756_v18 = vsel %vm1755_vm0, %v6670_v19, %v1754_v40  ;;  %v1764_v1 = vsub.f32 1.5, %v1763_v25 }
 0x237   : > { %v1846_v34 = vmul.f32 %v6832_v7, %v1845_v31  ;;  %v1651_v16 = vsel %vm1649_vm15, %v1650_v17, %v1648_v61  ;;  %v1758_v60 = vand.u32 2147483648, %v6670_v19  ;;  %v1562_v50 = vmul.f32 %v1561_v28, %v6693_v48 }
 0x238   : > { %v6882_v33 = vadd.f32 %v1355_v52, %v5819_v56  ;;  %vm1757_vm3 = vcmp.eq.f32.partialorder %v6670_v19, 0.0  ;;  %v1570_v46 = vmul.f32 %v6845_v63, %v1569_v13  ;;  %v1655_v21 = vmul.f32 0.5, %v1654_v14 }
 0x239   : > { %v1008_v27 = vmax.f32 %v976_v59, 1e-15  ;;  %4168 = vlog2.f32 %v1880_v49  ;;  %v1873_v40 = vadd.f32 %v1555_v35, %v6594_v6  ;;  %v1759_v25 = vsel %vm1757_vm3, %v1758_v60, %v1756_v18 }
 0x23a   : > { %v6888_v26 = vand.u32 2147483647, %v6882_v33  ;;  %v1881_v17 = vadd.f32 %v1651_v16, %v6605_v36  ;;  %vm1563_vm4 = vcmp.eq.f32.partialorder %v6693_v48, inf  ;;  %v1765_v31 = vmul.f32 %v6780_v62, %v1764_v1 }
 0x23b   : > { %v1847_v2 = vmul.f32 0.5, %v1846_v34  ;;  %vm1992_vm5 = vcmp.lt.f32.partialorder %v6417_v5, 0.0  ;;  %4170 = vlog2.f32 %v1897_v45  ;;  %v1564_v19 = vsel %vm1563_vm4, %v6693_v48, %v1562_v50  ;;  %v1215_v50 = vpop.f32.mrf.mxu1 }
 0x23c   : > { %v1566_v49 = vand.u32 2147483648, %v6693_v48  ;;  %v1451_v6 = vmul.f32 %v6888_v26, %v6888_v26  ;;  %v1890_v42 = vadd.f32 %v1759_v25, %v6620_v10  ;;  %v1571_v28 = vmul.f32 0.5, %v1570_v46 }
 0x23d   : > { %v1656_v30 = vsub.f32 1.5, %v1655_v21  ;;  %4172 = vrcp.f32 %v1008_v27  ;;  %v1909_v36 = vmul.f32 0.6931472, %v4167_v29  ;;  %vm1968_vm6 = vcmp.lt.f32.partialorder %v6443_v24, 0.0 }
 0x23e   : > { %4174 = vlog2.f32 %v1873_v40  ;;  %vm1565_vm7 = vcmp.eq.f32.partialorder %v6693_v48, 0.0  ;;  %v6901_v62 = vadd.f32 1.0, %v1451_v6  ;;  %v1766_v61 = vmul.f32 %v1765_v31, %v6725_v43 }
 0x23f   : > { %4176 = vlog2.f32 %v1881_v17  ;;  %v1567_v45 = vsel %vm1565_vm7, %v1566_v49, %v1564_v19  ;;  %v1848_v13 = vsub.f32 1.5, %v1847_v2  ;;  %v4169_v14 = vpop.eup %4168  ;;  %v6906_v10 = vmul.f32 %v6130_v44, %v6635_v38 }
 0x240   : > { %v8439_v29 = vsub.f32 0.0, %v6711_v12  ;;  %v8440_v48 = vsub.f32 0.0, %v6771_v32  ;;  %4178 = vrsqrt.f32 %v6901_v62  ;;  %v2024_v35 = vsub.f32 0.0, %v6834_v37 }
 0x241   : > { %4180 = vlog2.f32 %v1890_v42  ;;  %v1572_v18 = vsub.f32 1.5, %v1571_v28  ;;  %v1657_v38 = vmul.f32 %v6817_v15, %v1656_v30  ;;  %v4171_v1 = vpop.eup %4170  ;;  %v6923_v34 = vmul.f32 %v6130_v44, %v6702_v9 }
 0x242   : > { %v2039_v59 = vsel %vm1975_vm1, %v8439_v29, %v6711_v12  ;;  %v2049_v52 = vsel %vm1985_vm2, %v8440_v48, %v6771_v32  ;;  %v6927_v8 = vmul.f32 %v6130_v44, %v6709_v58  ;;  %v1874_v20 = vadd.f32 %v1567_v45, %v6653_v22 }
 0x243   : > { %vm1767_vm8 = vcmp.eq.f32.partialorder %v6725_v43, inf  ;;  %v4173_v12 = vpop.eup %4172  ;;  %v2000_v32 = vsub.f32 0.0, %v1909_v36  ;;  %v1925_v16 = vmul.f32 0.6931472, %v4169_v14  ;;  %v1849_v15 = vmul.f32 %v6832_v7, %v1848_v13 }
 0x244   : > { %v1768_v60 = vsel %vm1767_vm8, %v6725_v43, %v1766_v61  ;;  %v4175_v46 = vpop.eup %4174  ;;  %v6934_v9 = vmul.f32 %v6130_v44, %v2039_v59  ;;  %v6937_v21 = vmul.f32 %v6130_v44, %v2049_v52  ;;  %v1770_v58 = vand.u32 2147483648, %v6725_v43 }
 0x245   : > { %v1274_v22 = vmul.f32 %v5813_v41, %v1215_v50  ;;  %v4177_v27 = vpop.eup %4176  ;;  %v2056_v40 = vsel %vm1992_vm5, %v2024_v35, %v6834_v37  ;;  %vm1769_vm9 = vcmp.eq.f32.partialorder %v6725_v43, 0.0  ;;  %v1573_v7 = vmul.f32 %v6845_v63, %v1572_v18 }
 0x246   : > { %v1658_v25 = vmul.f32 %v1657_v38, %v6778_v51  ;;  %v6947_v17 = vpop.eup %4178  ;;  %vm1976_vm10 = vcmp.lt.f32.partialorder %v6492_v47, 0.0  ;;  %4182 = vlog2.f32 %v1874_v20  ;;  %v1771_v31 = vsel %vm1769_vm9, %v1770_v58, %v1768_v60 }
 0x247   : > { %v1072_v2 = vmul.f32 2.0, %v4173_v12  ;;  %v1307_v41 = vsub.f32 %v1274_v22, %v5819_v56  ;;  %v4181_v19 = vpop.eup %4180  ;;  %v2032_v5 = vsel %vm1968_vm6, %v2000_v32, %v1909_v36  ;;  %v2008_v37 = vsub.f32 0.0, %v1925_v16 }
 0x248   : > { %v1911_v49 = vmul.f32 0.6931472, %v4175_v46  ;;  %v1850_v43 = vmul.f32 %v1849_v15, %v6789_v3  ;;  %v1959_v63 = vmul.f32 0.6931472, %v4171_v1  ;;  %vm1969_vm11 = vcmp.lt.f32.partialorder %v6568_v57, 0.0 }
 0x249   : > { %vm1977_vm12 = vcmp.lt.f32.partialorder %v6583_v39, 0.0  ;;  %vm1659_vm13 = vcmp.eq.f32.partialorder %v6778_v51, inf  ;;  %v1857_v6 = vmul.f32 %v6947_v17, %v6901_v62  ;;  %v1339_v42 = vmul.f32 %v1307_v41, %v1072_v2 }
 0x24a   : > { %v1927_v28 = vmul.f32 0.6931472, %v4177_v27  ;;  %vm1986_vm14 = vcmp.lt.f32.partialorder %v6597_v11, 0.0  ;;  %v1891_v24 = vadd.f32 %v1771_v31, %v6677_v0  ;;  %v1574_v30 = vmul.f32 %v1573_v7, %v6795_v54  ;;  %v8441_v27 = vld [vmem:[#allocation26_spill] sm:$0xff] }
 0x24b   : > { %v1660_v36 = vsel %vm1659_vm13, %v6778_v51, %v1658_v25  ;;  %v1945_v45 = vmul.f32 0.6931472, %v4181_v19  ;;  %vm1851_vm15 = vcmp.eq.f32.partialorder %v6789_v3, inf  ;;  %v1662_v61 = vand.u32 2147483648, %v6778_v51  ;;  %v8442_v25 = vld [vmem:[#allocation27_spill] sm:$0xff]  ;;  %v8443_v19 = vld [vmem:[#allocation29_spill] sm:$0xff] }
 0x24c   : > { %v6966_v13 = vadd.f32 %v1339_v42, %v5819_v56  ;;  %vm1993_vm0 = vcmp.lt.f32.partialorder %v6535_v53, 0.0  ;;  %v2001_v14 = vsub.f32 0.0, %v1911_v49  ;;  %v1852_v29 = vsel %vm1851_vm15, %v6789_v3, %v1850_v43  ;;  %v4183_v0 = vpop.eup %4182  ;;  %v8444_v53 = vld [vmem:[#allocation15_spill] sm:$0xff] }
 0x24d   : > { %v1854_v59 = vand.u32 2147483648, %v6789_v3  ;;  %vm1661_vm1 = vcmp.eq.f32.partialorder %v6778_v51, 0.0  ;;  %vm1575_vm2 = vcmp.eq.f32.partialorder %v6795_v54, inf  ;;  %v1858_v52 = vmul.f32 %v6947_v17, %v1857_v6  ;;  %v8445_v6 = vld [vmem:[#allocation16_spill] sm:$0xff] }
 0x24e   : > { %v1663_v48 = vsel %vm1661_vm1, %v1662_v61, %v1660_v36  ;;  %v6975_v35 = vand.u32 2147483647, %v6966_v13  ;;  %v2009_v56 = vsub.f32 0.0, %v1927_v28  ;;  %4184 = vlog2.f32 %v1891_v24 }
 0x24f   : > { %vm1853_vm3 = vcmp.eq.f32.partialorder %v6789_v3, 0.0  ;;  %v1576_v18 = vsel %vm1575_vm2, %v6795_v54, %v1574_v30  ;;  %v2018_v38 = vsub.f32 0.0, %v1945_v45  ;;  %v1578_v20 = vand.u32 2147483648, %v6795_v54  ;;  %v8446_v30 = vld [vmem:[#allocation14_spill] sm:$0xff] }
 0x250   : > { %v1855_v1 = vsel %vm1853_vm3, %v1854_v59, %v1852_v29  ;;  %v1435_v51 = vmul.f32 %v6975_v35, %v6975_v35  ;;  %v2040_v12 = vsel %vm1976_vm10, %v2008_v37, %v1925_v16  ;;  %v1913_v32 = vmul.f32 0.6931472, %v4183_v0 }
 0x251   : > { %vm1577_vm4 = vcmp.eq.f32.partialorder %v6795_v54, 0.0  ;;  %v1882_v60 = vadd.f32 %v1663_v48, %v6756_v4  ;;  %v2025_v15 = vsub.f32 0.0, %v1959_v63  ;;  %v1859_v3 = vmul.f32 0.5, %v1858_v52  ;;  %v8447_v52 = vld [vmem:[#allocation20_spill] sm:$0xff] }
 0x252   : > { %v1579_v50 = vsel %vm1577_vm4, %v1578_v20, %v1576_v18  ;;  %v6986_v46 = vadd.f32 1.0, %v1435_v51  ;;  %v6989_v58 = vmul.f32 %v6130_v44, %v2056_v40  ;;  %v2033_v22 = vsel %vm1969_vm11, %v2001_v14, %v1911_v49 }
 0x253   : > { %v2041_v47 = vsel %vm1977_vm12, %v2009_v56, %v1927_v28  ;;  %v1898_v16 = vadd.f32 %v1855_v1, %v6749_v55  ;;  %v6997_v54 = vmul.f32 %v6130_v44, %v2032_v5  ;;  %v2050_v4 = vsel %vm1986_vm14, %v2018_v38, %v1945_v45 }
 0x254   : > { %vm1970_vm5 = vcmp.lt.f32.partialorder %v8441_v27, 0.0  ;;  %4186 = vrsqrt.f32 %v6986_v46  ;;  %v4185_v40 = vpop.eup %4184  ;;  %v7004_v7 = vmul.f32 %v6130_v44, %v2040_v12  ;;  %v2002_v57 = vsub.f32 0.0, %v1913_v32  ;;  %v8448_v12 = vld [vmem:[#allocation18_spill] sm:$0xff] }
 0x255   : > { %v1875_v39 = vadd.f32 %v1579_v50, %v8442_v25  ;;  %4188 = vlog2.f32 %v1882_v60  ;;  %v7009_v55 = vsel %vm1993_vm0, %v2025_v15, %v1959_v63  ;;  %v7012_v31 = vmul.f32 %v6130_v44, %v2033_v22 }
 0x256   : > { %v7015_v11 = vmul.f32 %v6130_v44, %v2041_v47  ;;  %v1860_v2 = vsub.f32 1.5, %v1859_v3  ;;  %v7018_v41 = vmul.f32 %v6130_v44, %v2050_v4  ;;  %4190 = vlog2.f32 %v1898_v16 }
 0x257   : > { %v2095_v5 = vmul.f32 1.442695, %v8443_v19  ;;  %v2158_v37 = vsub.f32 0.0, %v8443_v19  ;;  %v7022_v49 = vmul.f32 0.6931472, %v4185_v40  ;;  %v2174_v63 = vsub.f32 0.0, %v8444_v53 }
 0x258   : > { %v2127_v43 = vmul.f32 1.442695, %v8444_v53  ;;  %v2166_v42 = vsub.f32 0.0, %v8445_v6  ;;  %v2034_v28 = vsel %vm1970_vm5, %v2002_v57, %v1913_v32  ;;  %4192 = vlog2.f32 %v1875_v39  ;;  %v8449_v39 = vld [vmem:[#allocation30_spill] sm:$0xff] }
 0x259   : > { %v2191_v24 = vmul.f32 1.442695, %v2158_v37  ;;  %v2182_v36 = vsub.f32 0.0, %v8446_v30  ;;  %v1861_v61 = vmul.f32 %v6947_v17, %v1860_v2  ;;  %4194 = vpow2.f32 %v2095_v5 }
 0x25a   : > { %v4187_v45 = vpop.eup %4186  ;;  %v2223_v14 = vmul.f32 1.442695, %v2174_v63  ;;  %v2111_v29 = vmul.f32 1.442695, %v8445_v6  ;;  %v2207_v48 = vmul.f32 1.442695, %v2166_v42  ;;  %v7035_v18 = vmul.f32 %v6130_v44, %v2034_v28 }
 0x25b   : > { %v4189_v59 = vpop.eup %4188  ;;  %v1665_v0 = vmul.f32 %v4187_v45, %v6986_v46  ;;  %4196 = vpow2.f32 %v2191_v24  ;;  %v2159_v56 = vsub.f32 0.0, %v8447_v52  ;;  %v2019_v38 = vsub.f32 0.0, %v7022_v49 }
 0x25c   : > { %4198 = vpow2.f32 %v2127_v43  ;;  %v2143_v1 = vmul.f32 1.442695, %v8446_v30  ;;  %v7039_v17 = vpop.eup %4190  ;;  %v2239_v51 = vmul.f32 1.442695, %v2182_v36  ;;  %v2175_v32 = vsub.f32 0.0, %v8448_v12 }
 0x25d   : > { %v1666_v20 = vmul.f32 %v4187_v45, %v1665_v0  ;;  %4200 = vpow2.f32 %v2223_v14  ;;  %v7042_v60 = vmul.f32 0.6931472, %v4189_v59  ;;  %v7045_v15 = vmul.f32 %v1861_v61, %v6901_v62 }
 0x25e   : > { %4202 = vpow2.f32 %v2111_v29  ;;  %v2097_v50 = vmul.f32 1.442695, %v8447_v52  ;;  %v7048_v3 = vpop.eup %4192  ;;  %v2193_v47 = vmul.f32 1.442695, %v2159_v56  ;;  %v2160_v16 = vsub.f32 0.0, %v6906_v10 }
 0x25f   : > { %v1667_v22 = vmul.f32 0.5, %v1666_v20  ;;  %4204 = vpow2.f32 %v2207_v48  ;;  %v4195_v4 = vpop.eup %4194  ;;  %vm1671_vm6 = vcmp.eq.f32.partialorder %v6986_v46, inf  ;;  %vm1673_vm7 = vcmp.eq.f32.partialorder %v6986_v46, 0.0 }
 0x260   : > { %4206 = vpow2.f32 %v2143_v1  ;;  %v2129_v27 = vmul.f32 1.442695, %v8448_v12  ;;  %v2225_v25 = vmul.f32 1.442695, %v2175_v32  ;;  %v2183_v2 = vsub.f32 0.0, %v8449_v39  ;;  %v8450_v1 = vld [vmem:[#allocation21_spill] sm:$0xff] }
 0x261   : > { %v4197_v40 = vpop.eup %4196  ;;  %v1668_v57 = vsub.f32 1.5, %v1667_v22  ;;  %4208 = vpow2.f32 %v2239_v51  ;;  %vm1863_vm8 = vcmp.eq.f32.partialorder %v6901_v62, inf  ;;  %v1674_v5 = vand.u32 2147483648, %v6986_v46 }
 0x262   : > { %v4199_v19 = vpop.eup %4198  ;;  %v2254_v37 = vsub.f32 %v4195_v4, %v4197_v40  ;;  %4210 = vpow2.f32 %v2097_v50  ;;  %v2099_v53 = vmul.f32 1.442695, %v6906_v10  ;;  %v2195_v6 = vmul.f32 1.442695, %v2160_v16 }
 0x263   : > { %v4201_v43 = vpop.eup %4200  ;;  %v1669_v63 = vmul.f32 %v4187_v45, %v1668_v57  ;;  %4212 = vpow2.f32 %v2193_v47  ;;  %v2145_v42 = vmul.f32 1.442695, %v8449_v39  ;;  %v2113_v36 = vmul.f32 1.442695, %v6923_v34 }
 0x264   : > { %v4203_v28 = vpop.eup %4202  ;;  %v7059_v24 = vmul.f32 0.5, %v2254_v37  ;;  %v2270_v30 = vsub.f32 %v4199_v19, %v4201_v43  ;;  %4214 = vpow2.f32 %v2129_v27  ;;  %v2241_v29 = vmul.f32 1.442695, %v2183_v2  ;;  %v8451_v27 = vld [vmem:[#allocation17_spill] sm:$0xff]  ;;  %v8452_v19 = vld [vmem:[#allocation19_spill] sm:$0xff] }
 0x265   : > { %v4205_v61 = vpop.eup %4204  ;;  %v1670_v14 = vmul.f32 %v1669_v63, %v6986_v46  ;;  %4216 = vpow2.f32 %v2225_v25  ;;  %v2167_v10 = vsub.f32 0.0, %v6923_v34  ;;  %v2147_v20 = vmul.f32 1.442695, %v8450_v1  ;;  %v8453_v43 = vld [vmem:[#allocation23_spill] sm:$0xff] }
 0x266   : > { %v4207_v59 = vpop.eup %4206  ;;  %v2318_v45 = vmul.f32 %v7059_v24, %v7059_v24  ;;  %v7066_v0 = vmul.f32 0.5, %v2270_v30  ;;  %v2262_v48 = vsub.f32 %v4203_v28, %v4205_v61  ;;  %4218 = vpow2.f32 %v2099_v53 }
 0x267   : > { %v4209_v52 = vpop.eup %4208  ;;  %v1672_v56 = vsel %vm1671_vm6, %v6986_v46, %v1670_v14  ;;  %4220 = vpow2.f32 %v2195_v6  ;;  %v2184_v51 = vsub.f32 0.0, %v8450_v1  ;;  %vm1865_vm9 = vcmp.eq.f32.partialorder %v6901_v62, 0.0 }
 0x268   : > { %v4211_v12 = vpop.eup %4210  ;;  %v1675_v34 = vsel %vm1673_vm7, %v1674_v5, %v1672_v56  ;;  %2351 = vadd.xlane.f32.xlu0 %v2318_v45  ;;  %v2334_v32 = vmul.f32 %v7066_v0, %v7066_v0  ;;  %v7077_v50 = vmul.f32 0.5, %v2262_v48  ;;  %v2278_v22 = vsub.f32 %v4207_v59, %v4209_v52 }
 0x269   : > { %v4213_v47 = vpop.eup %4212  ;;  %v1883_v16 = vadd.f32 %v1675_v34, %v6975_v35  ;;  %4222 = vpow2.f32 %v2145_v42  ;;  %v2209_v4 = vmul.f32 1.442695, %v2167_v10  ;;  %v2176_v40 = vsub.f32 0.0, %v8451_v27 }
 0x26a   : > { %v4215_v57 = vpop.eup %4214  ;;  %2383 = vadd.xlane.f32.xlu1 %v2334_v32  ;;  %v2326_v46 = vmul.f32 %v7077_v50, %v7077_v50  ;;  %v7084_v25 = vmul.f32 0.5, %v2278_v22  ;;  %v2255_v39 = vsub.f32 %v4211_v12, %v4213_v47  ;;  %4224 = vpow2.f32 %v2241_v29 }
 0x26b   : > { %v4217_v2 = vpop.eup %4216  ;;  %vm1987_vm10 = vcmp.lt.f32.partialorder %v8452_v19, 0.0  ;;  %v1864_v35 = vsel %vm1863_vm8, %v6901_v62, %v7045_v15  ;;  %4226 = vlog2.f32 %v1883_v16  ;;  %v2243_v5 = vmul.f32 1.442695, %v2184_v51 }
 0x26c   : > { %v2168_v37 = vsub.f32 0.0, %v6934_v9  ;;  %v4219_v53 = vpop.eup %4218  ;;  %vm1978_vm11 = vcmp.lt.f32.partialorder %v8453_v43, 0.0  ;;  %2367 = vadd.xlane.f32.xlu2 %v2326_v46  ;;  %v7093_v63 = vmul.f32 0.5, %v2255_v39  ;;  %v2271_v6 = vsub.f32 %v4215_v57, %v4217_v2 }
 0x26d   : > { %4228 = vpow2.f32 %v2113_v36  ;;  %v2131_v42 = vmul.f32 1.442695, %v8451_v27  ;;  %v4221_v28 = vpop.eup %4220  ;;  %v2227_v30 = vmul.f32 1.442695, %v2176_v40  ;;  %v2115_v61 = vmul.f32 1.442695, %v6934_v9 }
 0x26e   : > { %4230 = vpow2.f32 %v2209_v4  ;;  %v2177_v15 = vsub.f32 0.0, %v6927_v8  ;;  %v2342_v14 = vmul.f32 %v7084_v25, %v7084_v25  ;;  %v2319_v29 = vmul.f32 %v7093_v63, %v7093_v63 }
 0x26f   : > { %v7102_v10 = vmul.f32 0.5, %v2271_v6  ;;  %4232 = vpow2.f32 %v2147_v20  ;;  %v4223_v59 = vpop.eup %4222  ;;  %v2256_v36 = vsub.f32 %v4219_v53, %v4221_v28  ;;  %v2211_v45 = vmul.f32 1.442695, %v2168_v37 }
 0x270   : > { %4234 = vpow2.f32 %v2243_v5  ;;  %v2161_v48 = vsub.f32 0.0, %v6997_v54  ;;  %v4225_v52 = vpop.eup %4224  ;;  %v2010_v9 = vsub.f32 0.0, %v7042_v60  ;;  %v1866_v56 = vand.u32 2147483648, %v6901_v62  ;;  %2399 = vadd.xlane.f32.xlu0 %v2342_v14 }
 0x271   : > { %4236 = vpow2.f32 %v2131_v42  ;;  %v2133_v1 = vmul.f32 1.442695, %v6927_v8  ;;  %v4227_v51 = vpop.eup %4226  ;;  %v2279_v12 = vsub.f32 %v4223_v59, %v4225_v52  ;;  %v2229_v34 = vmul.f32 1.442695, %v2177_v15 }
 0x272   : > { %4238 = vpow2.f32 %v2227_v30  ;;  %v2169_v20 = vsub.f32 0.0, %v7004_v7  ;;  %v1867_v22 = vsel %vm1865_vm9, %v1866_v56, %v1864_v35  ;;  %2353 = vadd.xlane.f32.xlu1 %v2319_v29  ;;  %v2335_v47 = vmul.f32 %v7102_v10, %v7102_v10 }
 0x273   : > { %v4229_v32 = vpop.eup %4228  ;;  %4240 = vpow2.f32 %v2115_v61  ;;  %v2101_v16 = vmul.f32 1.442695, %v6997_v54  ;;  %v7114_v27 = vmul.f32 0.5, %v2256_v36  ;;  %v7116_v8 = vmul.f32 0.5, %v2279_v12 }
 0x274   : > { %v4231_v4 = vpop.eup %4230  ;;  %4242 = vpow2.f32 %v2211_v45  ;;  %v2197_v40 = vmul.f32 1.442695, %v2161_v48  ;;  %v7123_v62 = vsel %vm1987_vm10, %v2019_v38, %v7022_v49  ;;  %2385 = vadd.xlane.f32.xlu2 %v2335_v47  ;;  %v2117_v54 = vmul.f32 1.442695, %v7004_v7 }
 0x275   : > { %v4233_v57 = vpop.eup %4232  ;;  %v2263_v46 = vsub.f32 %v4229_v32, %v4231_v4  ;;  %4244 = vpow2.f32 %v2133_v1  ;;  %v2042_v2 = vsel %vm1978_vm11, %v2010_v9, %v7042_v60  ;;  %v2213_v35 = vmul.f32 1.442695, %v2169_v20  ;;  %v8454_v20 = vld [vmem:[#allocation24_spill] sm:$0xff] }
 0x276   : > { %v4235_v39 = vpop.eup %4234  ;;  %4246 = vpow2.f32 %v2229_v34  ;;  %v2162_v5 = vsub.f32 0.0, %v7012_v31  ;;  %v1899_v53 = vadd.f32 %v1867_v22, %v6888_v26  ;;  %v2185_v49 = vsub.f32 0.0, %v6989_v58 }
 0x277   : > { %v4237_v37 = vpop.eup %4236  ;;  %v7131_v19 = vmul.f32 0.5, %v2263_v46  ;;  %4248 = vpow2.f32 %v2101_v16  ;;  %v1931_v6 = vmul.f32 0.6931472, %v4227_v51  ;;  %v2320_v7 = vmul.f32 %v7114_v27, %v7114_v27  ;;  %v8455_v16 = vld [vmem:[#allocation25_spill] sm:$0xff] }
 0x278   : > { %v4239_v38 = vpop.eup %4238  ;;  %v2343_v60 = vmul.f32 %v7116_v8, %v7116_v8  ;;  %4250 = vpow2.f32 %v2197_v40  ;;  %v2178_v26 = vsub.f32 0.0, %v6937_v21  ;;  %v7142_v61 = vmul.f32 0.6931472, %v7039_v17 }
 0x279   : > { %v4241_v43 = vpop.eup %4240  ;;  %v2327_v42 = vmul.f32 %v7131_v19, %v7131_v19  ;;  %v2272_v28 = vsub.f32 %v4237_v37, %v4239_v38  ;;  %4252 = vpow2.f32 %v2117_v54  ;;  %v7145_v15 = vmul.f32 0.6931472, %v7048_v3 }
 0x27a   : > { %v4243_v30 = vpop.eup %4242  ;;  %4254 = vpow2.f32 %v2213_v35  ;;  %v2199_v14 = vmul.f32 1.442695, %v2162_v5  ;;  %v7148_v59 = vmul.f32 %v6130_v44, %v2042_v2  ;;  %2401 = vadd.xlane.f32.xlu1 %v2343_v60  ;;  %v2280_v36 = vsub.f32 %v4233_v57, %v4235_v39 }
 0x27b   : > { %v4245_v29 = vpop.eup %4244  ;;  %2369 = vadd.xlane.f32.xlu0 %v2327_v42  ;;  %v2264_v45 = vsub.f32 %v4241_v43, %v4243_v30  ;;  %v2103_v48 = vmul.f32 1.442695, %v7012_v31  ;;  %vm1979_vm12 = vcmp.lt.f32.partialorder %v6966_v13, 0.0  ;;  %v2011_v17 = vsub.f32 0.0, %v1931_v6 }
 0x27c   : > { %v4247_v52 = vpop.eup %4246  ;;  %v2245_v9 = vmul.f32 1.442695, %v2185_v49  ;;  %v2170_v3 = vsub.f32 0.0, %v7015_v11  ;;  %4256 = vlog2.f32 %v1899_v53  ;;  %2355 = vadd.xlane.f32.xlu2 %v2320_v7  ;;  %v7153_v1 = vmul.f32 0.5, %v2272_v28 }
 0x27d   : > { %v4249_v56 = vpop.eup %4248  ;;  %v7155_v51 = vmul.f32 0.5, %v2264_v45  ;;  %v2231_v12 = vmul.f32 1.442695, %v2178_v26  ;;  %vm1994_vm13 = vcmp.lt.f32.partialorder %v8454_v20, 0.0  ;;  %v2149_v31 = vmul.f32 1.442695, %v6989_v58 }
 0x27e   : > { %v4251_v34 = vpop.eup %4250  ;;  %4258 = vpow2.f32 %v2199_v14  ;;  %v2135_v32 = vmul.f32 1.442695, %v6937_v21  ;;  %v2163_v22 = vsub.f32 0.0, %v7035_v18  ;;  %vm1971_vm14 = vcmp.lt.f32.partialorder %v8455_v16, 0.0 }
 0x27f   : > { %v4253_v47 = vpop.eup %4252  ;;  %v7162_v4 = vmul.f32 0.5, %v2280_v36  ;;  %v2328_v40 = vmul.f32 %v7155_v51, %v7155_v51  ;;  %v2257_v57 = vsub.f32 %v4249_v56, %v4251_v34  ;;  %4260 = vpow2.f32 %v2103_v48 }
 0x280   : > { %v4255_v46 = vpop.eup %4254  ;;  %v2043_v54 = vsel %vm1979_vm12, %v2011_v17, %v1931_v6  ;;  %4262 = vpow2.f32 %v2245_v9  ;;  %v2119_v58 = vmul.f32 1.442695, %v7015_v11  ;;  %v2215_v21 = vmul.f32 1.442695, %v2170_v3 }
 0x281   : > { %v2336_v39 = vmul.f32 %v7153_v1, %v7153_v1  ;;  %v2273_v2 = vsub.f32 %v4245_v29, %v4247_v52  ;;  %v2265_v35 = vsub.f32 %v4253_v47, %v4255_v46  ;;  %4264 = vpow2.f32 %v2231_v12 }
 0x282   : > { %v2084_v5 = vmul.f32 %v6130_v44, %v7123_v62  ;;  %v2026_v37 = vsub.f32 0.0, %v7142_v61  ;;  %4266 = vpow2.f32 %v2149_v31  ;;  %v2201_v53 = vmul.f32 1.442695, %v2163_v22  ;;  %v4257_v49 = vpop.eup %4256  ;;  %2371 = vadd.xlane.f32.xlu1 %v2328_v40 }
 0x283   : > { %v2003_v13 = vsub.f32 0.0, %v7145_v15  ;;  %v2344_v11 = vmul.f32 %v7162_v4, %v7162_v4  ;;  %2387 = vadd.xlane.f32.xlu0 %v2336_v39  ;;  %v7177_v38 = vmul.f32 0.5, %v2257_v57  ;;  %4268 = vpow2.f32 %v2135_v32 }
 0x284   : > { %v4259_v6 = vpop.eup %4258  ;;  %v2076_v7 = vmul.f32 %v6130_v44, %v2043_v54  ;;  %4270 = vpow2.f32 %v2119_v58  ;;  %v2121_v62 = vmul.f32 1.442695, %v7148_v59  ;;  %v2171_v60 = vsub.f32 0.0, %v7148_v59 }
 0x285   : > { %v4261_v43 = vpop.eup %4260  ;;  %2403 = vadd.xlane.f32.xlu2 %v2344_v11  ;;  %v7182_v42 = vmul.f32 0.5, %v2273_v2  ;;  %v7184_v28 = vmul.f32 0.5, %v2265_v35  ;;  %4272 = vpow2.f32 %v2215_v21  ;;  %v2105_v26 = vmul.f32 1.442695, %v7035_v18 }
 0x286   : > { %v4263_v30 = vpop.eup %4262  ;;  %v2258_v14 = vsub.f32 %v4261_v43, %v4259_v6  ;;  %4274 = vpow2.f32 %v2201_v53  ;;  %v2179_v29 = vsub.f32 0.0, %v7018_v41  ;;  %v2217_v36 = vmul.f32 1.442695, %v2171_v60 }
 0x287   : > { %v4265_v45 = vpop.eup %4264  ;;  %v2058_v59 = vsel %vm1994_vm13, %v2026_v37, %v7142_v61  ;;  %v2321_v48 = vmul.f32 %v7177_v38, %v7177_v38  ;;  %4276 = vpow2.f32 %v2121_v62  ;;  %v2180_v52 = vsub.f32 0.0, %v2084_v5 }
 0x288   : > { %v4267_v17 = vpop.eup %4266  ;;  %v2035_v18 = vsel %vm1971_vm14, %v2003_v13, %v7145_v15  ;;  %v1963_v9 = vmul.f32 0.6931472, %v4257_v49  ;;  %4278 = vpow2.f32 %v2217_v36  ;;  %v2172_v3 = vsub.f32 0.0, %v2076_v7 }
 0x289   : > { %v4269_v56 = vpop.eup %4268  ;;  %v2337_v12 = vmul.f32 %v7182_v42, %v7182_v42  ;;  %v2329_v61 = vmul.f32 %v7184_v28, %v7184_v28  ;;  %v2281_v34 = vsub.f32 %v4267_v17, %v4263_v30  ;;  %v2137_v20 = vmul.f32 1.442695, %v7018_v41 }
 0x28a   : > { %v4271_v31 = vpop.eup %4270  ;;  %v7201_v32 = vmul.f32 0.5, %v2258_v14  ;;  %v2274_v22 = vsub.f32 %v4269_v56, %v4265_v45  ;;  %4280 = vpow2.f32 %v2105_v26  ;;  %v2233_v47 = vmul.f32 1.442695, %v2179_v29  ;;  %v7222_v45 = vpop.xlane.xlu2 %2349 }
 0x28b   : > { %v4273_v15 = vpop.eup %4272  ;;  %v2068_v16 = vmul.f32 %v6130_v44, %v2035_v18  ;;  %2389 = vadd.xlane.f32.xlu1 %v2337_v12  ;;  %2357 = vadd.xlane.f32.xlu0 %v2321_v48  ;;  %v2235_v40 = vmul.f32 1.442695, %v2180_v52  ;;  %v2090_v46 = vmul.f32 %v6130_v44, %v7009_v55  ;;  %v2091_v54 = vmul.f32 %v6130_v44, %v2058_v59 }
 0x28c   : > { %v4275_v57 = vpop.eup %4274  ;;  %v2219_v58 = vmul.f32 1.442695, %v2172_v3  ;;  %v2027_v21 = vsub.f32 0.0, %v1963_v9  ;;  %v7207_v39 = vmul.f32 0.5, %v2281_v34  ;;  %4282 = vpow2.f32 %v2137_v20 }
 0x28d   : > { %v4277_v41 = vpop.eup %4276  ;;  %2373 = vadd.xlane.f32.xlu2 %v2329_v61  ;;  %v2139_v2 = vmul.f32 1.442695, %v2084_v5  ;;  %v2322_v37 = vmul.f32 %v7201_v32, %v7201_v32  ;;  %v7211_v53 = vmul.f32 0.5, %v2274_v22  ;;  %4284 = vpow2.f32 %v2233_v47 }
 0x28e   : > { %v4279_v35 = vpop.eup %4278  ;;  %v2123_v49 = vmul.f32 1.442695, %v2076_v7  ;;  %v2266_v13 = vsub.f32 %v4271_v31, %v4273_v15  ;;  %4286 = vpow2.f32 %v2235_v40  ;;  %v2164_v11 = vsub.f32 0.0, %v2068_v16 }
 0x28f   : > { %v2267_v55 = vsub.f32 %v4277_v41, %v4279_v35  ;;  %vm1995_vm15 = vcmp.lt.f32.partialorder %v6882_v33, 0.0  ;;  %4288 = vpow2.f32 %v2219_v58  ;;  %v2186_v62 = vsub.f32 0.0, %v2090_v46 }
 0x290   : > { %v4281_v6 = vpop.eup %4280  ;;  %v2059_v60 = vsel %vm1995_vm15, %v2027_v21, %v1963_v9  ;;  %v2345_v5 = vmul.f32 %v7207_v39, %v7207_v39  ;;  %4290 = vpow2.f32 %v2139_v2  ;;  %v2107_v26 = vmul.f32 1.442695, %v2068_v16 }
 0x291   : > { %v2259_v43 = vsub.f32 %v4281_v6, %v4275_v57  ;;  %4292 = vpow2.f32 %v2123_v49  ;;  %v2187_v30 = vsub.f32 0.0, %v2091_v54  ;;  %v2338_v7 = vmul.f32 %v7211_v53, %v7211_v53 }
 0x292   : > { %v4283_v14 = vpop.eup %4282  ;;  %v7218_v29 = vmul.f32 0.5, %v2266_v13  ;;  %v7220_v33 = vmul.f32 0.5, %v2267_v55  ;;  %v2203_v36 = vmul.f32 1.442695, %v2164_v11  ;;  %v2092_v48 = vmul.f32 %v6130_v44, %v2059_v60 }
 0x293   : > { %2405 = vadd.xlane.f32.xlu0 %v2345_v5  ;;  %2359 = vadd.xlane.f32.xlu1 %v2322_v37  ;;  %v4285_v59 = vpop.eup %4284  ;;  %v2247_v52 = vmul.f32 1.442695, %v2186_v62  ;;  %v7225_v18 = vmul.f32 0.5, %v2259_v43  ;;  %v2151_v9 = vmul.f32 1.442695, %v2090_v46  ;;  %4294 = vrsqrt.f32 %v7222_v45 }
 0x294   : > { %v4287_v17 = vpop.eup %4286  ;;  %4296 = vpow2.f32 %v2107_v26  ;;  %v2249_v56 = vmul.f32 1.442695, %v2187_v30  ;;  %v2330_v61 = vmul.f32 %v7218_v29, %v7218_v29  ;;  %v2331_v34 = vmul.f32 %v7220_v33, %v7220_v33 }
 0x295   : > { %2391 = vadd.xlane.f32.xlu2 %v2338_v7  ;;  %v4289_v3 = vpop.eup %4288  ;;  %4298 = vpow2.f32 %v2203_v36  ;;  %v2275_v20 = vsub.f32 %v4283_v14, %v4285_v59  ;;  %v2153_v31 = vmul.f32 1.442695, %v2091_v54  ;;  %v2188_v22 = vsub.f32 0.0, %v2092_v48 }
 0x296   : > { %v4291_v12 = vpop.eup %4290  ;;  %4300 = vpow2.f32 %v2247_v52  ;;  %v2323_v47 = vmul.f32 %v7225_v18, %v7225_v18  ;;  %v2155_v37 = vmul.f32 1.442695, %v2092_v48  ;;  %vm2420_vm0 = vcmp.eq.f32.partialorder %v7222_v45, inf }
 0x297   : > { %v4293_v44 = vpop.eup %4292  ;;  %v2276_v15 = vsub.f32 %v4291_v12, %v4287_v17  ;;  %4302 = vpow2.f32 %v2151_v9  ;;  %v7234_v46 = vmul.f32 0.5, %v2275_v20  ;;  %v2251_v58 = vmul.f32 1.442695, %v2188_v22 }
 0x298   : > { %v2268_v16 = vsub.f32 %v4293_v44, %v4289_v3  ;;  %4304 = vpow2.f32 %v2249_v56  ;;  %v2423_v9 = vand.u32 2147483648, %v7222_v45  ;;  %vm2422_vm1 = vcmp.eq.f32.partialorder %v7222_v45, 0.0 }
 0x299   : > { %v4295_v40 = vpop.eup %4294  ;;  %4306 = vpow2.f32 %v2153_v31  ;;  %v7237_v54 = vmul.f32 0.5, %v2276_v15  ;;  %v2339_v11 = vmul.f32 %v7234_v46, %v7234_v46 }
 0x29a   : > { %v4297_v57 = vpop.eup %4296  ;;  %v2414_v41 = vmul.f32 %v4295_v40, %v7222_v45  ;;  %v7239_v2 = vmul.f32 0.5, %v2268_v16  ;;  %4308 = vpow2.f32 %v2251_v58 }
 0x29b   : > { %2375 = vadd.xlane.f32.xlu0 %v2330_v61  ;;  %2377 = vadd.xlane.f32.xlu1 %v2331_v34  ;;  %v4299_v21 = vpop.eup %4298  ;;  %v2340_v62 = vmul.f32 %v7237_v54, %v7237_v54  ;;  %4310 = vpow2.f32 %v2155_v37 }
 0x29c   : > { %8456 = vst [vmem:[#allocation13_spill] sm:$0xff] %v7239_v2  ;;  %v4301_v35 = vpop.eup %4300  ;;  %v2415_v49 = vmul.f32 %v4295_v40, %v2414_v41  ;;  %v2332_v60 = vmul.f32 %v7239_v2, %v7239_v2  ;;  %v2260_v5 = vsub.f32 %v4297_v57, %v4299_v21 }
 0x29d   : > { %2361 = vadd.xlane.f32.xlu2 %v2323_v47  ;;  %v4303_v13 = vpop.eup %4302 }
 0x29e   : > { %v4305_v55 = vpop.eup %4304  ;;  %v2416_v6 = vmul.f32 0.5, %v2415_v49  ;;  %v2282_v43 = vsub.f32 %v4303_v13, %v4301_v35  ;;  %v7247_v36 = vmul.f32 0.5, %v2260_v5 }
 0x29f   : > { %v4307_v26 = vpop.eup %4306 }
 0x2a0   : > { %v2417_v30 = vsub.f32 1.5, %v2416_v6  ;;  %v2283_v14 = vsub.f32 %v4307_v26, %v4305_v55  ;;  %v7249_v59 = vmul.f32 0.5, %v2282_v43  ;;  %v4309_v48 = vpop.eup %4308  ;;  %v2324_v12 = vmul.f32 %v7247_v36, %v7247_v36  ;;  %v2382_v16 = vpop.xlane.xlu0 %2381 }
 0x2a1   : > { %v4311_v3 = vpop.eup %4310  ;;  %vm2612_vm4 = vcmp.eq.f32.partialorder %v2382_v16, inf  ;;  %vm2614_vm5 = vcmp.eq.f32.partialorder %v2382_v16, 0.0 }
 0x2a2   : > { %v2418_v7 = vmul.f32 %v4295_v40, %v2417_v30  ;;  %8457 = vst [vmem:[#allocation26_spill] sm:$0xff] %v7249_v59  ;;  %v7252_v17 = vmul.f32 0.5, %v2283_v14  ;;  %v2346_v61 = vmul.f32 %v7249_v59, %v7249_v59  ;;  %v2284_v34 = vsub.f32 %v4311_v3, %v4309_v48 }
 0x2a3   : > { %2393 = vadd.xlane.f32.xlu0 %v2339_v11  ;;  %2395 = vadd.xlane.f32.xlu1 %v2340_v62 }
 0x2a4   : > { %v2419_v52 = vmul.f32 %v2418_v7, %v7222_v45  ;;  %8458 = vst [vmem:[#allocation27_spill] sm:$0xff] %v7252_v17  ;;  %v2347_v31 = vmul.f32 %v7252_v17, %v7252_v17  ;;  %v7264_v47 = vmul.f32 0.5, %v2284_v34  ;;  %v2615_v7 = vand.u32 2147483648, %v2382_v16 }
 0x2a5   : > { %2379 = vadd.xlane.f32.xlu2 %v2332_v60 }
 0x2a6   : > { %v2421_v56 = vsel %vm2420_vm0, %v7222_v45, %v2419_v52  ;;  %8459 = vst [vmem:[#allocation29_spill] sm:$0xff] %v7264_v47  ;;  %v2348_v45 = vmul.f32 %v7264_v47, %v7264_v47 }
 0x2a7   : > { %v2424_v44 = vsel %vm2422_vm1, %v2423_v9, %v2421_v56 }
 0x2a8   : > { %v2797_v20 = vmax.f32 %v2424_v44, 1e-15 }
 0x2aa   : > { %v2829_v22 = vmul.f32 %v2797_v20, %v2797_v20  ;;  %v3373_v30 = vmul.f32 2.0, %v2797_v20 }
 0x2ab   : > { %2363 = vadd.xlane.f32.xlu0 %v2324_v12  ;;  %2407 = vadd.xlane.f32.xlu1 %v2346_v61 }
 0x2ac   : > { %v2861_v15 = vadd.f32 1.0, %v2829_v22 }
 0x2ad   : > { %2409 = vadd.xlane.f32.xlu2 %v2347_v31  ;;  %v8460_v31 = vld [vmem:[#allocation22_spill] sm:$0xff] }
 0x2ae   : > { %4312 = vrsqrt.f32 %v2861_v15  ;;  %vm2900_vm2 = vcmp.eq.f32.partialorder %v2861_v15, inf  ;;  %v2903_v6 = vand.u32 2147483648, %v2861_v15  ;;  %vm2902_vm3 = vcmp.eq.f32.partialorder %v2861_v15, 0.0 }
 0x2af   : > { %4314 = vrsqrt.f32 %v2382_v16 }
 0x2b3   : > { %2411 = vadd.xlane.f32.xlu0 %v2348_v45 }
 0x2b4   : > { %v4313_v40 = vpop.eup %4312 }
 0x2b5   : > { %v2894_v57 = vmul.f32 %v4313_v40, %v2861_v15  ;;  %v4315_v41 = vpop.eup %4314 }
 0x2b6   : > { %v2606_v35 = vmul.f32 %v4315_v41, %v2382_v16 }
 0x2b7   : > { %v2895_v58 = vmul.f32 %v4313_v40, %v2894_v57 }
 0x2b8   : > { %v2607_v49 = vmul.f32 %v4315_v41, %v2606_v35 }
 0x2b9   : > { %v2896_v21 = vmul.f32 0.5, %v2895_v58 }
 0x2ba   : > { %v2608_v55 = vmul.f32 0.5, %v2607_v49 }
 0x2bb   : > { %v2897_v37 = vsub.f32 1.5, %v2896_v21 }
 0x2bc   : > { %v2609_v62 = vsub.f32 1.5, %v2608_v55 }
 0x2bd   : > { %v2898_v13 = vmul.f32 %v4313_v40, %v2897_v37 }
 0x2be   : > { %v2610_v43 = vmul.f32 %v4315_v41, %v2609_v62 }
 0x2bf   : > { %v2899_v11 = vmul.f32 %v2898_v13, %v2861_v15 }
 0x2c0   : > { %v2611_v14 = vmul.f32 %v2610_v43, %v2382_v16 }
 0x2c1   : > { %v2901_v60 = vsel %vm2900_vm2, %v2861_v15, %v2899_v11 }
 0x2c2   : > { %v2904_v5 = vsel %vm2902_vm3, %v2903_v6, %v2901_v60  ;;  %v2613_v48 = vsel %vm2612_vm4, %v2382_v16, %v2611_v14 }
 0x2c3   : > { %v3277_v26 = vadd.f32 %v2904_v5, %v2797_v20  ;;  %v2616_v52 = vsel %vm2614_vm5, %v2615_v7, %v2613_v48  ;;  %v2366_v20 = vpop.xlane.xlu1 %2365 }
 0x2c4   : > { %v2813_v9 = vmax.f32 %v2616_v52, 1e-15  ;;  %vm2516_vm8 = vcmp.eq.f32.partialorder %v2366_v20, inf  ;;  %vm2518_vm9 = vcmp.eq.f32.partialorder %v2366_v20, 0.0 }
 0x2c5   : > { %4316 = vlog2.f32 %v3277_v26  ;;  %v2519_v26 = vand.u32 2147483648, %v2366_v20 }
 0x2c6   : > { %4318 = vrcp.f32 %v3373_v30  ;;  %v2845_v3 = vmul.f32 %v2813_v9, %v2813_v9  ;;  %v3389_v5 = vmul.f32 2.0, %v2813_v9 }
 0x2c8   : > { %v2877_v61 = vadd.f32 1.0, %v2845_v3 }
 0x2ca   : > { %4320 = vrsqrt.f32 %v2877_v61  ;;  %vm3092_vm6 = vcmp.eq.f32.partialorder %v2877_v61, inf  ;;  %v3095_v13 = vand.u32 2147483648, %v2877_v61  ;;  %vm3094_vm7 = vcmp.eq.f32.partialorder %v2877_v61, 0.0 }
 0x2cb   : > { %v4317_v56 = vpop.eup %4316  ;;  %4322 = vrsqrt.f32 %v2366_v20 }
 0x2cc   : > { %v3310_v12 = vmul.f32 0.6931472, %v4317_v56  ;;  %v4319_v34 = vpop.eup %4318 }
 0x2ce   : > { %v3437_v44 = vmul.f32 %v4319_v34, %v3310_v12 }
 0x2d0   : > { %v3469_v22 = vmul.f32 %v3437_v44, %v8460_v31  ;;  %v4321_v15 = vpop.eup %4320 }
 0x2d1   : > { %v3086_v45 = vmul.f32 %v4321_v15, %v2877_v61  ;;  %v4323_v40 = vpop.eup %4322 }
 0x2d2   : > { %3501 = vst [vmem:[%s7271_s18] sm:$0xff] %v3469_v22  ;;  %v2510_v58 = vmul.f32 %v4323_v40, %v2366_v20 }
 0x2d3   : > { %v3087_v16 = vmul.f32 %v4321_v15, %v3086_v45 }
 0x2d4   : > { %v2511_v21 = vmul.f32 %v4323_v40, %v2510_v58 }
 0x2d5   : > { %v3088_v57 = vmul.f32 0.5, %v3087_v16 }
 0x2d6   : > { %v2512_v37 = vmul.f32 0.5, %v2511_v21 }
 0x2d7   : > { %v3089_v41 = vsub.f32 1.5, %v3088_v57 }
 0x2d8   : > { %v2513_v55 = vsub.f32 1.5, %v2512_v37 }
 0x2d9   : > { %v3090_v35 = vmul.f32 %v4321_v15, %v3089_v41 }
 0x2da   : > { %v2514_v62 = vmul.f32 %v4323_v40, %v2513_v55 }
 0x2db   : > { %v3091_v49 = vmul.f32 %v3090_v35, %v2877_v61 }
 0x2dc   : > { %v2515_v43 = vmul.f32 %v2514_v62, %v2366_v20 }
 0x2dd   : > { %v3093_v11 = vsel %vm3092_vm6, %v2877_v61, %v3091_v49 }
 0x2de   : > { %v3096_v6 = vsel %vm3094_vm7, %v3095_v13, %v3093_v11  ;;  %v2517_v30 = vsel %vm2516_vm8, %v2366_v20, %v2515_v43 }
 0x2df   : > { %v3293_v60 = vadd.f32 %v3096_v6, %v2813_v9  ;;  %v2520_v14 = vsel %vm2518_vm9, %v2519_v26, %v2517_v30  ;;  %v2398_v9 = vpop.xlane.xlu2 %2397 }
 0x2e0   : > { %v2805_v7 = vmax.f32 %v2520_v14, 1e-15  ;;  %vm2708_vm12 = vcmp.eq.f32.partialorder %v2398_v9, inf  ;;  %v2711_v6 = vand.u32 2147483648, %v2398_v9  ;;  %vm2710_vm13 = vcmp.eq.f32.partialorder %v2398_v9, 0.0 }
 0x2e1   : > { %4324 = vlog2.f32 %v3293_v60 }
 0x2e2   : > { %4326 = vrcp.f32 %v3389_v5  ;;  %v2837_v48 = vmul.f32 %v2805_v7, %v2805_v7  ;;  %v3381_v55 = vmul.f32 2.0, %v2805_v7 }
 0x2e4   : > { %v2869_v56 = vadd.f32 1.0, %v2837_v48 }
 0x2e6   : > { %4328 = vrsqrt.f32 %v2869_v56  ;;  %vm2996_vm10 = vcmp.eq.f32.partialorder %v2869_v56, inf  ;;  %v2999_v21 = vand.u32 2147483648, %v2869_v56  ;;  %vm2998_vm11 = vcmp.eq.f32.partialorder %v2869_v56, 0.0 }
 0x2e7   : > { %v4325_v52 = vpop.eup %4324  ;;  %4330 = vrsqrt.f32 %v2398_v9 }
 0x2e8   : > { %v3342_v3 = vmul.f32 0.6931472, %v4325_v52  ;;  %v4327_v12 = vpop.eup %4326 }
 0x2ea   : > { %v3453_v61 = vmul.f32 %v4327_v12, %v3342_v3  ;;  %v8461_v3 = vld [vmem:[#allocation28_spill] sm:$0xff]  ;;  %v7281_v12 = vpop.xlane.xlu1 %2383 }
 0x2eb   : > { %vm2624_vm2 = vcmp.eq.f32.partialorder %v7281_v12, inf  ;;  %vm2626_vm3 = vcmp.eq.f32.partialorder %v7281_v12, 0.0 }
 0x2ec   : > { %v3485_v34 = vmul.f32 %v3453_v61, %v6807_v23  ;;  %v4329_v44 = vpop.eup %4328  ;;  %v7283_v61 = vpop.xlane.xlu2 %2367 }
 0x2ed   : > { %v2990_v31 = vmul.f32 %v4329_v44, %v2869_v56  ;;  %v4331_v15 = vpop.eup %4330  ;;  %vm2528_vm4 = vcmp.eq.f32.partialorder %v7283_v61, inf  ;;  %vm2530_vm5 = vcmp.eq.f32.partialorder %v7283_v61, 0.0 }
 0x2ee   : > { %3517 = vst [vmem:[%s7271_s18 + $0x80] sm:$0xff] %v3485_v34  ;;  %v2702_v45 = vmul.f32 %v4331_v15, %v2398_v9 }
 0x2ef   : > { %v2991_v22 = vmul.f32 %v4329_v44, %v2990_v31 }
 0x2f0   : > { %v2703_v40 = vmul.f32 %v4331_v15, %v2702_v45 }
 0x2f1   : > { %v2992_v20 = vmul.f32 0.5, %v2991_v22 }
 0x2f2   : > { %v2704_v58 = vmul.f32 0.5, %v2703_v40 }
 0x2f3   : > { %v2993_v16 = vsub.f32 1.5, %v2992_v20 }
 0x2f4   : > { %v2705_v35 = vsub.f32 1.5, %v2704_v58 }
 0x2f5   : > { %v2994_v57 = vmul.f32 %v4329_v44, %v2993_v16 }
 0x2f6   : > { %v2706_v49 = vmul.f32 %v4331_v15, %v2705_v35  ;;  %v7294_v35 = vpop.xlane.xlu2 %2385 }
 0x2f7   : > { %v2995_v41 = vmul.f32 %v2994_v57, %v2869_v56 }
 0x2f8   : > { %v2707_v11 = vmul.f32 %v2706_v49, %v2398_v9 }
 0x2f9   : > { %v2997_v37 = vsel %vm2996_vm10, %v2869_v56, %v2995_v41  ;;  %vm2636_vm10 = vcmp.eq.f32.partialorder %v7294_v35, inf }
 0x2fa   : > { %v3000_v23 = vsel %vm2998_vm11, %v2999_v21, %v2997_v37  ;;  %v2709_v62 = vsel %vm2708_vm12, %v2398_v9, %v2707_v11  ;;  %v7292_v21 = vpop.xlane.xlu1 %2353  ;;  %vm2638_vm11 = vcmp.eq.f32.partialorder %v7294_v35, 0.0 }
 0x2fb   : > { %v3285_v13 = vadd.f32 %v3000_v23, %v2805_v7  ;;  %v2712_v60 = vsel %vm2710_vm13, %v2711_v6, %v2709_v62  ;;  %v7277_v7 = vpop.xlane.xlu0 %2351  ;;  %vm2444_vm8 = vcmp.eq.f32.partialorder %v7292_v21, inf  ;;  %vm2446_vm9 = vcmp.eq.f32.partialorder %v7292_v21, 0.0 }
 0x2fc   : > { %v2821_v5 = vmax.f32 %v2712_v60, 1e-15  ;;  %vm2432_vm0 = vcmp.eq.f32.partialorder %v7277_v7, inf  ;;  %vm2434_vm1 = vcmp.eq.f32.partialorder %v7277_v7, 0.0 }
 0x2fd   : > { %4332 = vlog2.f32 %v3285_v13 }
 0x2fe   : > { %4334 = vrcp.f32 %v3381_v55  ;;  %v2853_v43 = vmul.f32 %v2821_v5, %v2821_v5  ;;  %v3397_v15 = vmul.f32 2.0, %v2821_v5 }
 0x300   : > { %v2885_v14 = vadd.f32 1.0, %v2853_v43 }
 0x302   : > { %4336 = vrsqrt.f32 %v2885_v14  ;;  %vm3188_vm14 = vcmp.eq.f32.partialorder %v2885_v14, inf  ;;  %vm3190_vm15 = vcmp.eq.f32.partialorder %v2885_v14, 0.0  ;;  %v3191_v55 = vand.u32 2147483648, %v2885_v14 }
 0x303   : > { %v4333_v26 = vpop.eup %4332  ;;  %4338 = vrsqrt.f32 %v7277_v7  ;;  %v7288_v45 = vpop.xlane.xlu0 %2399 }
 0x304   : > { %v3326_v30 = vmul.f32 0.6931472, %v4333_v26  ;;  %v4335_v48 = vpop.eup %4334  ;;  %4340 = vrsqrt.f32 %v7281_v12  ;;  %v2435_v26 = vand.u32 2147483648, %v7277_v7  ;;  %vm2720_vm6 = vcmp.eq.f32.partialorder %v7288_v45, inf }
 0x305   : > { %4342 = vrsqrt.f32 %v7283_v61  ;;  %vm2722_vm7 = vcmp.eq.f32.partialorder %v7288_v45, 0.0 }
 0x306   : > { %v3445_v52 = vmul.f32 %v4335_v48, %v3326_v30  ;;  %4344 = vrsqrt.f32 %v7288_v45 }
 0x307   : > { %4346 = vrsqrt.f32 %v7292_v21 }
 0x308   : > { %v3477_v56 = vmul.f32 %v3445_v52, %v8461_v3  ;;  %v4337_v34 = vpop.eup %4336  ;;  %4348 = vrcp.f32 %v3397_v15 }
 0x309   : > { %v3182_v9 = vmul.f32 %v4337_v34, %v2885_v14  ;;  %v4339_v31 = vpop.eup %4338  ;;  %4350 = vrsqrt.f32 %v7294_v35 }
 0x30a   : > { %3509 = vst [vmem:[%s7271_s18 + $0x40] sm:$0xff] %v3477_v56  ;;  %v2426_v20 = vmul.f32 %v4339_v31, %v7277_v7  ;;  %v4341_v16 = vpop.eup %4340 }
 0x30b   : > { %v3183_v44 = vmul.f32 %v4337_v34, %v3182_v9  ;;  %v4343_v40 = vpop.eup %4342  ;;  %v2618_v41 = vmul.f32 %v4341_v16, %v7281_v12 }
 0x30c   : > { %v2427_v58 = vmul.f32 %v4339_v31, %v2426_v20  ;;  %v2522_v37 = vmul.f32 %v4343_v40, %v7283_v61  ;;  %v4345_v43 = vpop.eup %4344 }
 0x30d   : > { %v3184_v22 = vmul.f32 0.5, %v3183_v44  ;;  %v2619_v13 = vmul.f32 %v4341_v16, %v2618_v41  ;;  %v2714_v56 = vmul.f32 %v4345_v43, %v7288_v45  ;;  %v2627_v44 = vand.u32 2147483648, %v7281_v12 }
 0x30e   : > { %v2428_v49 = vmul.f32 0.5, %v2427_v58  ;;  %v2523_v11 = vmul.f32 %v4343_v40, %v2522_v37 }
 0x30f   : > { %v3185_v57 = vsub.f32 1.5, %v3184_v22  ;;  %v2620_v60 = vmul.f32 0.5, %v2619_v13  ;;  %v2715_v41 = vmul.f32 %v4345_v43, %v2714_v56 }
 0x310   : > { %v2429_v62 = vsub.f32 1.5, %v2428_v49  ;;  %v2524_v30 = vmul.f32 0.5, %v2523_v11 }
 0x311   : > { %v3186_v23 = vmul.f32 %v4337_v34, %v3185_v57  ;;  %v2621_v3 = vsub.f32 1.5, %v2620_v60  ;;  %v4347_v34 = vpop.eup %4346 }
 0x312   : > { %v2430_v52 = vmul.f32 %v4339_v31, %v2429_v62  ;;  %v2525_v22 = vsub.f32 1.5, %v2524_v30  ;;  %v4349_v15 = vpop.eup %4348  ;;  %v2531_v62 = vand.u32 2147483648, %v7283_v61  ;;  %v7326_v30 = vpop.xlane.xlu1 %2401 }
 0x313   : > { %v3187_v6 = vmul.f32 %v3186_v23, %v2885_v14  ;;  %v2622_v58 = vmul.f32 %v4341_v16, %v2621_v3  ;;  %v4351_v37 = vpop.eup %4350 }
 0x314   : > { %v2431_v57 = vmul.f32 %v2430_v52, %v7277_v7  ;;  %v2526_v23 = vmul.f32 %v4343_v40, %v2525_v22 }
 0x315   : > { %v3189_v48 = vsel %vm3188_vm14, %v2885_v14, %v3187_v6  ;;  %v2438_v14 = vmul.f32 %v4347_v34, %v7292_v21  ;;  %v2623_v49 = vmul.f32 %v2622_v58, %v7281_v12 }
 0x316   : > { %v3192_v9 = vsel %vm3190_vm15, %v3191_v55, %v3189_v48  ;;  %v2433_v31 = vsel %vm2432_vm0, %v7277_v7, %v2431_v57  ;;  %v2527_v13 = vmul.f32 %v2526_v23, %v7283_v61  ;;  %v2630_v55 = vmul.f32 %v4351_v37, %v7294_v35 }
 0x317   : > { %v3301_v20 = vadd.f32 %v3192_v9, %v2821_v5  ;;  %v2716_v5 = vmul.f32 0.5, %v2715_v41  ;;  %v2436_v16 = vsel %vm2434_vm1, %v2435_v26, %v2433_v31  ;;  %v2439_v40 = vmul.f32 %v4347_v34, %v2438_v14 }
 0x318   : > { %v7320_v11 = vmax.f32 %v2436_v16, 1e-15  ;;  %v2625_v6 = vsel %vm2624_vm2, %v7281_v12, %v2623_v49  ;;  %v2529_v26 = vsel %vm2528_vm4, %v7283_v61, %v2527_v13  ;;  %v2631_v52 = vmul.f32 %v4351_v37, %v2630_v55 }
 0x319   : > { %4352 = vlog2.f32 %v3301_v20  ;;  %v2717_v60 = vsub.f32 1.5, %v2716_v5  ;;  %v2628_v7 = vsel %vm2626_vm3, %v2627_v44, %v2625_v6  ;;  %v2440_v48 = vmul.f32 0.5, %v2439_v40  ;;  %v8462_v6 = vld [vmem:[#allocation12_spill] sm:$0xff] }
 0x31a   : > { %v2830_v3 = vmul.f32 %v7320_v11, %v7320_v11  ;;  %v7335_v56 = vmax.f32 %v2628_v7, 1e-15  ;;  %v2532_v9 = vsel %vm2530_vm5, %v2531_v62, %v2529_v26  ;;  %4354 = vrsqrt.f32 %v7326_v30 }
 0x31b   : > { %v7339_v22 = vmax.f32 %v2532_v9, 1e-15  ;;  %v2718_v20 = vmul.f32 %v4345_v43, %v2717_v60  ;;  %v2441_v58 = vsub.f32 1.5, %v2440_v48  ;;  %v2632_v41 = vmul.f32 0.5, %v2631_v52 }
 0x31c   : > { %v7342_v44 = vadd.f32 1.0, %v2830_v3  ;;  %v2846_v57 = vmul.f32 %v7335_v56, %v7335_v56  ;;  %v2723_v16 = vand.u32 2147483648, %v7288_v45  ;;  %v3374_v60 = vmul.f32 2.0, %v7320_v11 }
 0x31d   : > { %v2838_v14 = vmul.f32 %v7339_v22, %v7339_v22  ;;  %v2719_v61 = vmul.f32 %v2718_v20, %v7288_v45  ;;  %v2442_v13 = vmul.f32 %v4347_v34, %v2441_v58  ;;  %v2633_v40 = vsub.f32 1.5, %v2632_v41 }
 0x31e   : > { %4356 = vrsqrt.f32 %v7342_v44  ;;  %v7351_v31 = vadd.f32 1.0, %v2846_v57  ;;  %v2447_v7 = vand.u32 2147483648, %v7292_v21  ;;  %v3382_v34 = vmul.f32 2.0, %v7339_v22 }
 0x31f   : > { %v4353_v12 = vpop.eup %4352  ;;  %v7353_v49 = vadd.f32 1.0, %v2838_v14  ;;  %v2721_v5 = vsel %vm2720_vm6, %v7288_v45, %v2719_v61  ;;  %v2443_v48 = vmul.f32 %v2442_v13, %v7292_v21  ;;  %v2634_v52 = vmul.f32 %v4351_v37, %v2633_v40  ;;  %v7384_v37 = vpop.xlane.xlu0 %2369 }
 0x320   : > { %v3358_v23 = vmul.f32 0.6931472, %v4353_v12  ;;  %v7358_v55 = vpop.eup %4354  ;;  %4358 = vrsqrt.f32 %v7351_v31  ;;  %v2724_v26 = vsel %vm2722_vm7, %v2723_v16, %v2721_v5  ;;  %vm2912_vm12 = vcmp.eq.f32.partialorder %v7342_v44, inf }
 0x321   : > { %4360 = vrsqrt.f32 %v7353_v49  ;;  %v7373_v9 = vmax.f32 %v2724_v26, 1e-15  ;;  %v2726_v20 = vmul.f32 %v7358_v55, %v7326_v30  ;;  %v2445_v45 = vsel %vm2444_vm8, %v7292_v21, %v2443_v48 }
 0x322   : > { %v3461_v43 = vmul.f32 %v4349_v15, %v3358_v23  ;;  %v3390_v15 = vmul.f32 2.0, %v7335_v56  ;;  %4362 = vrcp.f32 %v3374_v60  ;;  %v2635_v57 = vmul.f32 %v2634_v52, %v7294_v35 }
 0x323   : > { %v2854_v58 = vmul.f32 %v7373_v9, %v7373_v9  ;;  %v2448_v41 = vsel %vm2446_vm9, %v2447_v7, %v2445_v45  ;;  %v2639_v23 = vand.u32 2147483648, %v7294_v35  ;;  %v2727_v21 = vmul.f32 %v7358_v55, %v2726_v20 }
 0x324   : > { %v3493_v62 = vmul.f32 %v3461_v43, %v8462_v6  ;;  %v4357_v3 = vpop.eup %4356  ;;  %4364 = vrcp.f32 %v3390_v15  ;;  %v7391_v43 = vmax.f32 %v2448_v41, 1e-15  ;;  %v2637_v5 = vsel %vm2636_vm10, %v7294_v35, %v2635_v57 }
 0x325   : > { %v2906_v12 = vmul.f32 %v4357_v3, %v7342_v44  ;;  %4366 = vrcp.f32 %v3382_v34  ;;  %v7398_v40 = vadd.f32 1.0, %v2854_v58  ;;  %v2640_v15 = vsel %vm2638_vm11, %v2639_v23, %v2637_v5 }
 0x326   : > { %3525 = vst [vmem:[%s7271_s18 + $0xc0] sm:$0xff] %v3493_v62  ;;  %v4359_v14 = vpop.eup %4358  ;;  %4368 = vrsqrt.f32 %v7384_v37  ;;  %v2831_v60 = vmul.f32 %v7391_v43, %v7391_v43  ;;  %vm2914_vm13 = vcmp.eq.f32.partialorder %v7342_v44, 0.0  ;;  %v2915_v7 = vand.u32 2147483648, %v7342_v44 }
 0x327   : > { %v2907_v61 = vmul.f32 %v4357_v3, %v2906_v12  ;;  %v4361_v16 = vpop.eup %4360  ;;  %v3098_v13 = vmul.f32 %v4359_v14, %v7351_v31  ;;  %4370 = vrsqrt.f32 %v7398_v40  ;;  %vm3104_vm14 = vcmp.eq.f32.partialorder %v7351_v31, inf }
 0x328   : > { %v3002_v62 = vmul.f32 %v4361_v16, %v7353_v49  ;;  %v7410_v26 = vpop.eup %4362  ;;  %v7413_v20 = vadd.f32 1.0, %v2831_v60  ;;  %vm3106_vm15 = vcmp.eq.f32.partialorder %v7351_v31, 0.0  ;;  %v7418_v35 = vmax.f32 %v2640_v15, 1e-15 }
 0x329   : > { %v2908_v6 = vmul.f32 0.5, %v2907_v61  ;;  %v3099_v34 = vmul.f32 %v4359_v14, %v3098_v13  ;;  %v2728_v57 = vmul.f32 0.5, %v2727_v21  ;;  %v3398_v61 = vmul.f32 2.0, %v7373_v9 }
 0x32a   : > { %v3003_v52 = vmul.f32 %v4361_v16, %v3002_v62  ;;  %v7415_v12 = vpop.eup %4364  ;;  %4372 = vrsqrt.f32 %v7413_v20  ;;  %vm3008_vm0 = vcmp.eq.f32.partialorder %v7353_v49, inf  ;;  %v2847_v62 = vmul.f32 %v7418_v35, %v7418_v35 }
 0x32b   : > { %v2909_v48 = vsub.f32 1.5, %v2908_v6  ;;  %v3100_v45 = vmul.f32 0.5, %v3099_v34  ;;  %v7420_v58 = vpop.eup %4366  ;;  %v3107_v6 = vand.u32 2147483648, %v7351_v31  ;;  %vm3010_vm1 = vcmp.eq.f32.partialorder %v7353_v49, 0.0 }
 0x32c   : > { %v3004_v23 = vmul.f32 0.5, %v3003_v52  ;;  %v7424_v5 = vpop.eup %4368  ;;  %vm2732_vm2 = vcmp.eq.f32.partialorder %v7326_v30, inf  ;;  %v2729_v52 = vsub.f32 1.5, %v2728_v57  ;;  %vm2734_vm3 = vcmp.eq.f32.partialorder %v7326_v30, 0.0 }
 0x32d   : > { %v2910_v41 = vmul.f32 %v4357_v3, %v2909_v48  ;;  %v3101_v13 = vsub.f32 1.5, %v3100_v45  ;;  %v3011_v3 = vand.u32 2147483648, %v7353_v49  ;;  %v4371_v15 = vpop.eup %4370  ;;  %v7434_v48 = vadd.f32 1.0, %v2847_v62 }
 0x32e   : > { %v3005_v60 = vsub.f32 1.5, %v3004_v23  ;;  %v2735_v45 = vand.u32 2147483648, %v7326_v30  ;;  %v3194_v17 = vmul.f32 %v4371_v15, %v7398_v40  ;;  %4374 = vrcp.f32 %v3398_v61 }
 0x32f   : > { %v2911_v21 = vmul.f32 %v2910_v41, %v7342_v44  ;;  %v3102_v34 = vmul.f32 %v4359_v14, %v3101_v13  ;;  %v3375_v13 = vmul.f32 2.0, %v7391_v43  ;;  %4376 = vrsqrt.f32 %v7434_v48 }
 0x330   : > { %v3006_v23 = vmul.f32 %v4361_v16, %v3005_v60  ;;  %v4373_v57 = vpop.eup %4372  ;;  %v3195_v2 = vmul.f32 %v4371_v15, %v3194_v17  ;;  %v2534_v16 = vmul.f32 %v7424_v5, %v7384_v37  ;;  %vm3200_vm4 = vcmp.eq.f32.partialorder %v7398_v40, inf }
 0x331   : > { %v2913_v41 = vsel %vm2912_vm12, %v7342_v44, %v2911_v21  ;;  %v3103_v14 = vmul.f32 %v3102_v34, %v7351_v31  ;;  %v2730_v61 = vmul.f32 %v7358_v55, %v2729_v52  ;;  %vm3202_vm5 = vcmp.eq.f32.partialorder %v7398_v40, 0.0 }
 0x332   : > { %v2916_v47 = vsel %vm2914_vm13, %v2915_v7, %v2913_v41  ;;  %v3007_v59 = vmul.f32 %v3006_v23, %v7353_v49  ;;  %v2918_v7 = vmul.f32 %v4373_v57, %v7413_v20  ;;  %v2535_v52 = vmul.f32 %v7424_v5, %v2534_v16 }
 0x333   : > { %v3278_v62 = vadd.f32 %v2916_v47, %v7320_v11  ;;  %v3105_v44 = vsel %vm3104_vm14, %v7351_v31, %v3103_v14  ;;  %v3196_v11 = vmul.f32 0.5, %v3195_v2  ;;  %v2731_v41 = vmul.f32 %v2730_v61, %v7326_v30 }
 0x334   : > { %v3108_v47 = vsel %vm3106_vm15, %v3107_v6, %v3105_v44  ;;  %v3009_v17 = vsel %vm3008_vm0, %v7353_v49, %v3007_v59  ;;  %v2919_v34 = vmul.f32 %v4373_v57, %v2918_v7  ;;  %v7467_v55 = vpop.eup %4374  ;;  %v7471_v59 = vpop.xlane.xlu2 %2355  ;;  %vm2924_vm6 = vcmp.eq.f32.partialorder %v7413_v20, inf }
 0x335   : > { %4378 = vlog2.f32 %v3278_v62  ;;  %v3294_v21 = vadd.f32 %v3108_v47, %v7335_v56  ;;  %v3012_v60 = vsel %vm3010_vm1, %v3011_v3, %v3009_v17  ;;  %v3197_v6 = vsub.f32 1.5, %v3196_v11  ;;  %v4377_v2 = vpop.eup %4376  ;;  %v7477_v3 = vpop.xlane.xlu0 %2387 }
 0x336   : > { %v3286_v31 = vadd.f32 %v3012_v60, %v7339_v22  ;;  %4380 = vrcp.f32 %v3375_v13  ;;  %v3203_v56 = vand.u32 2147483648, %v7398_v40  ;;  %v2920_v23 = vmul.f32 0.5, %v2919_v34 }
 0x337   : > { %4382 = vlog2.f32 %v3294_v21  ;;  %v2733_v49 = vsel %vm2732_vm2, %v7326_v30, %v2731_v41  ;;  %v3198_v14 = vmul.f32 %v4371_v15, %v3197_v6  ;;  %v3110_v22 = vmul.f32 %v4377_v2, %v7434_v48 }
 0x338   : > { %4384 = vlog2.f32 %v3286_v31  ;;  %v2736_v13 = vsel %vm2734_vm3, %v2735_v45, %v2733_v49  ;;  %v2921_v62 = vsub.f32 1.5, %v2920_v23  ;;  %v2536_v47 = vmul.f32 0.5, %v2535_v52 }
 0x339   : > { %v7483_v16 = vmax.f32 %v2736_v13, 1e-15  ;;  %4386 = vrsqrt.f32 %v7471_v59  ;;  %v3199_v7 = vmul.f32 %v3198_v14, %v7398_v40  ;;  %v3111_v61 = vmul.f32 %v4377_v2, %v3110_v22 }
 0x33a   : > { %4388 = vrsqrt.f32 %v7477_v3  ;;  %v2922_v17 = vmul.f32 %v4373_v57, %v2921_v62  ;;  %vm2926_vm7 = vcmp.eq.f32.partialorder %v7413_v20, 0.0  ;;  %v2927_v21 = vand.u32 2147483648, %v7413_v20 }
 0x33b   : > { %v4379_v44 = vpop.eup %4378  ;;  %v2855_v30 = vmul.f32 %v7483_v16, %v7483_v16  ;;  %v3201_v11 = vsel %vm3200_vm4, %v7398_v40, %v3199_v7  ;;  %v3112_v60 = vmul.f32 0.5, %v3111_v61  ;;  %v3391_v34 = vmul.f32 2.0, %v7418_v35 }
 0x33c   : > { %v3312_v15 = vmul.f32 0.6931472, %v4379_v44  ;;  %v7491_v45 = vpop.eup %4380  ;;  %v3204_v57 = vsel %vm3202_vm5, %v3203_v56, %v3201_v11  ;;  %v2923_v6 = vmul.f32 %v2922_v17, %v7413_v20  ;;  %vm2540_vm8 = vcmp.eq.f32.partialorder %v7384_v37, inf  ;;  %v7524_v11 = vpop.xlane.xlu1 %2371 }
 0x33d   : > { %v4383_v41 = vpop.eup %4382  ;;  %v7502_v52 = vadd.f32 1.0, %v2855_v30  ;;  %v3302_v14 = vadd.f32 %v3204_v57, %v7373_v9  ;;  %v3113_v22 = vsub.f32 1.5, %v3112_v60  ;;  %v2537_v13 = vsub.f32 1.5, %v2536_v47 }
 0x33e   : > { %v3438_v31 = vmul.f32 %v7410_v26, %v3312_v15  ;;  %v4385_v23 = vpop.eup %4384  ;;  %v3344_v49 = vmul.f32 0.6931472, %v4383_v41  ;;  %vm2542_vm9 = vcmp.eq.f32.partialorder %v7384_v37, 0.0  ;;  %v2925_v56 = vsel %vm2924_vm6, %v7413_v20, %v2923_v6 }
 0x33f   : > { %v4387_v62 = vpop.eup %4386  ;;  %v3328_v40 = vmul.f32 0.6931472, %v4385_v23  ;;  %4390 = vrsqrt.f32 %v7502_v52  ;;  %v2928_v9 = vsel %vm2926_vm7, %v2927_v21, %v2925_v56  ;;  %v3114_v61 = vmul.f32 %v4377_v2, %v3113_v22 }
 0x340   : > { %v3470_v26 = vmul.f32 %v3438_v31, %v7059_v24  ;;  %v4389_v44 = vpop.eup %4388  ;;  %v3454_v7 = vmul.f32 %v7415_v12, %v3344_v49  ;;  %4392 = vlog2.f32 %v3302_v14  ;;  %v3279_v24 = vadd.f32 %v2928_v9, %v7391_v43 }
 0x341   : > { %v3446_v47 = vmul.f32 %v7420_v58, %v3328_v40  ;;  %vm3116_vm10 = vcmp.eq.f32.partialorder %v7434_v48, inf  ;;  %v2543_v15 = vand.u32 2147483648, %v7384_v37  ;;  %v3115_v12 = vmul.f32 %v3114_v61, %v7434_v48 }
 0x342   : > { %3502 = vst [vmem:[%s7271_s18 + $0x8] sm:$0xff] %v3470_v26  ;;  %v3486_v17 = vmul.f32 %v3454_v7, %v7066_v0  ;;  %v3119_v30 = vand.u32 2147483648, %v7434_v48  ;;  %v2538_v20 = vmul.f32 %v7424_v5, %v2537_v13  ;;  %4394 = vlog2.f32 %v3279_v24 }
 0x343   : > { %v3478_v2 = vmul.f32 %v3446_v47, %v7077_v50  ;;  %v2450_v43 = vmul.f32 %v4387_v62, %v7471_v59  ;;  %v2642_v58 = vmul.f32 %v4389_v44, %v7477_v3  ;;  %v3117_v21 = vsel %vm3116_vm10, %v7434_v48, %v3115_v12 }
 0x344   : > { %3518 = vst [vmem:[%s7271_s18 + $0x88] sm:$0xff] %v3486_v17  ;;  %vm3118_vm11 = vcmp.eq.f32.partialorder %v7434_v48, 0.0  ;;  %4396 = vrcp.f32 %v3391_v34  ;;  %v2539_v0 = vmul.f32 %v2538_v20, %v7384_v37  ;;  %vm2456_vm12 = vcmp.eq.f32.partialorder %v7471_v59, inf }
 0x345   : > { %v4391_v60 = vpop.eup %4390  ;;  %3510 = vst [vmem:[%s7271_s18 + $0x48] sm:$0xff] %v3478_v2  ;;  %v3120_v5 = vsel %vm3118_vm11, %v3119_v30, %v3117_v21  ;;  %v2451_v41 = vmul.f32 %v4387_v62, %v2450_v43  ;;  %v2643_v31 = vmul.f32 %v4389_v44, %v2642_v58  ;;  %4398 = vrsqrt.f32 %v7524_v11 }
 0x346   : > { %v4393_v50 = vpop.eup %4392  ;;  %v3295_v57 = vadd.f32 %v3120_v5, %v7418_v35  ;;  %v3206_v6 = vmul.f32 %v4391_v60, %v7502_v52  ;;  %v2541_v23 = vsel %vm2540_vm8, %v7384_v37, %v2539_v0  ;;  %vm2458_vm13 = vcmp.eq.f32.partialorder %v7471_v59, 0.0  ;;  %v7546_v35 = vpop.xlane.xlu2 %2403 }
 0x347   : > { %v3360_v48 = vmul.f32 0.6931472, %v4393_v50  ;;  %v2544_v34 = vsel %vm2542_vm9, %v2543_v15, %v2541_v23  ;;  %v2452_v49 = vmul.f32 0.5, %v2451_v41  ;;  %v2644_v14 = vmul.f32 0.5, %v2643_v31 }
 0x348   : > { %4400 = vlog2.f32 %v3295_v57  ;;  %v3207_v22 = vmul.f32 %v4391_v60, %v3206_v6  ;;  %v7543_v13 = vmax.f32 %v2544_v34, 1e-15  ;;  %v4395_v26 = vpop.eup %4394  ;;  %v2459_v7 = vand.u32 2147483648, %v7471_v59 }
 0x349   : > { %v3462_v40 = vmul.f32 %v7467_v55, %v3360_v48  ;;  %v2453_v56 = vsub.f32 1.5, %v2452_v49  ;;  %v2645_v9 = vsub.f32 1.5, %v2644_v14  ;;  %v3314_v61 = vmul.f32 0.6931472, %v4395_v26 }
 0x34a   : > { %v4397_v37 = vpop.eup %4396  ;;  %v3208_v47 = vmul.f32 0.5, %v3207_v22  ;;  %v3399_v24 = vmul.f32 2.0, %v7483_v16  ;;  %v2839_v15 = vmul.f32 %v7543_v13, %v7543_v13  ;;  %4402 = vrsqrt.f32 %v7546_v35 }
 0x34b   : > { %v4399_v17 = vpop.eup %4398  ;;  %v3494_v12 = vmul.f32 %v3462_v40, %v7084_v25  ;;  %v2454_v30 = vmul.f32 %v4387_v62, %v2453_v56  ;;  %v2646_v20 = vmul.f32 %v4389_v44, %v2645_v9  ;;  %v3439_v55 = vmul.f32 %v7491_v45, %v3314_v61 }
 0x34c   : > { %v3209_v2 = vsub.f32 1.5, %v3208_v47  ;;  %v7556_v43 = vadd.f32 1.0, %v2839_v15  ;;  %vm2648_vm14 = vcmp.eq.f32.partialorder %v7477_v3, inf  ;;  %vm3212_vm15 = vcmp.eq.f32.partialorder %v7502_v52, inf }
 0x34d   : > { %3526 = vst [vmem:[%s7271_s18 + $0xc8] sm:$0xff] %v3494_v12  ;;  %v2455_v58 = vmul.f32 %v2454_v30, %v7471_v59  ;;  %v2647_v21 = vmul.f32 %v2646_v20, %v7477_v3  ;;  %v2546_v25 = vmul.f32 %v4399_v17, %v7524_v11  ;;  %v3471_v44 = vmul.f32 %v3439_v55, %v7093_v63  ;;  %v7609_v55 = vpop.xlane.xlu1 %2389 }
 0x34e   : > { %v4401_v62 = vpop.eup %4400  ;;  %v3210_v0 = vmul.f32 %v4391_v60, %v3209_v2  ;;  %vm3214_vm0 = vcmp.eq.f32.partialorder %v7502_v52, 0.0  ;;  %4404 = vrsqrt.f32 %v7556_v43  ;;  %vm2650_vm1 = vcmp.eq.f32.partialorder %v7477_v3, 0.0  ;;  %v7614_v2 = vpop.xlane.xlu0 %2357 }
 0x34f   : > { %v3346_v45 = vmul.f32 0.6931472, %v4401_v62  ;;  %v2457_v5 = vsel %vm2456_vm12, %v7471_v59, %v2455_v58  ;;  %v2651_v41 = vand.u32 2147483648, %v7477_v3  ;;  %3503 = vst [vmem:[%s7271_s18 + $0x10] sm:$0xff] %v3471_v44  ;;  %v2649_v60 = vsel %vm2648_vm14, %v7477_v3, %v2647_v21  ;;  %v7619_v44 = vpop.xlane.xlu2 %2373 }
 0x350   : > { %v3211_v31 = vmul.f32 %v3210_v0, %v7502_v52  ;;  %v2460_v63 = vsel %vm2458_vm13, %v2459_v7, %v2457_v5  ;;  %v2547_v50 = vmul.f32 %v4399_v17, %v2546_v25  ;;  %v4403_v57 = vpop.eup %4402  ;;  %v3215_v23 = vand.u32 2147483648, %v7502_v52 }
 0x351   : > { %v3455_v6 = vmul.f32 %v4397_v37, %v3346_v45  ;;  %v7580_v48 = vmax.f32 %v2460_v63, 1e-15  ;;  %v2652_v34 = vsel %vm2650_vm1, %v2651_v41, %v2649_v60  ;;  %v2738_v22 = vmul.f32 %v4403_v57, %v7546_v35 }
 0x352   : > { %v3213_v49 = vsel %vm3212_vm15, %v7502_v52, %v3211_v31  ;;  %v7585_v14 = vmax.f32 %v2652_v34, 1e-15  ;;  %v2548_v59 = vmul.f32 0.5, %v2547_v50  ;;  %4406 = vrcp.f32 %v3399_v24 }
 0x353   : > { %v3487_v3 = vmul.f32 %v3455_v6, %v7102_v10  ;;  %v3216_v26 = vsel %vm3214_vm0, %v3215_v23, %v3213_v49  ;;  %v2832_v40 = vmul.f32 %v7580_v48, %v7580_v48  ;;  %v3383_v47 = vmul.f32 2.0, %v7543_v13 }
 0x354   : > { %v4405_v56 = vpop.eup %4404  ;;  %v3303_v7 = vadd.f32 %v3216_v26, %v7483_v16  ;;  %v2848_v9 = vmul.f32 %v7585_v14, %v7585_v14  ;;  %v2549_v37 = vsub.f32 1.5, %v2548_v59  ;;  %v2739_v12 = vmul.f32 %v4403_v57, %v2738_v22 }
 0x355   : > { %3519 = vst [vmem:[%s7271_s18 + $0x90] sm:$0xff] %v3487_v3  ;;  %v3014_v61 = vmul.f32 %v4405_v56, %v7556_v43  ;;  %v7599_v10 = vadd.f32 1.0, %v2832_v40  ;;  %vm2552_vm2 = vcmp.eq.f32.partialorder %v7524_v11, inf  ;;  %vm2554_vm3 = vcmp.eq.f32.partialorder %v7524_v11, 0.0 }
 0x356   : > { %4408 = vlog2.f32 %v3303_v7  ;;  %v7601_v52 = vadd.f32 1.0, %v2848_v9  ;;  %v2550_v15 = vmul.f32 %v4399_v17, %v2549_v37  ;;  %v2555_v20 = vand.u32 2147483648, %v7524_v11 }
 0x357   : > { %v3015_v30 = vmul.f32 %v4405_v56, %v3014_v61  ;;  %4410 = vrsqrt.f32 %v7599_v10  ;;  %vm3020_vm4 = vcmp.eq.f32.partialorder %v7556_v43, inf  ;;  %vm3022_vm5 = vcmp.eq.f32.partialorder %v7556_v43, 0.0 }
 0x358   : > { %4412 = vrsqrt.f32 %v7601_v52  ;;  %v2551_v24 = vmul.f32 %v2550_v15, %v7524_v11  ;;  %v2740_v17 = vmul.f32 0.5, %v2739_v12  ;;  %vm2744_vm6 = vcmp.eq.f32.partialorder %v7546_v35, inf  ;;  %v4407_v58 = vpop.eup %4406 }
 0x359   : > { %v3016_v16 = vmul.f32 0.5, %v3015_v30  ;;  %4414 = vrcp.f32 %v3383_v47  ;;  %v3023_v25 = vand.u32 2147483648, %v7556_v43  ;;  %vm2746_vm7 = vcmp.eq.f32.partialorder %v7546_v35, 0.0 }
 0x35a   : > { %v2553_v62 = vsel %vm2552_vm2, %v7524_v11, %v2551_v24  ;;  %v3376_v45 = vmul.f32 2.0, %v7580_v48  ;;  %v2741_v41 = vsub.f32 1.5, %v2740_v17  ;;  %4416 = vrsqrt.f32 %v7609_v55 }
 0x35b   : > { %v3017_v21 = vsub.f32 1.5, %v3016_v16  ;;  %v2556_v5 = vsel %vm2554_vm3, %v2555_v20, %v2553_v62  ;;  %4418 = vrsqrt.f32 %v7614_v2  ;;  %v3392_v34 = vmul.f32 2.0, %v7585_v14  ;;  %v7669_v62 = vpop.xlane.xlu0 %2405 }
 0x35c   : > { %v4409_v0 = vpop.eup %4408  ;;  %v7625_v50 = vmax.f32 %v2556_v5, 1e-15  ;;  %v2742_v49 = vmul.f32 %v4403_v57, %v2741_v41  ;;  %4420 = vrsqrt.f32 %v7619_v44  ;;  %v2747_v7 = vand.u32 2147483648, %v7546_v35 }
 0x35d   : > { %v4411_v31 = vpop.eup %4410  ;;  %v3362_v63 = vmul.f32 0.6931472, %v4409_v0  ;;  %v3018_v60 = vmul.f32 %v4405_v56, %v3017_v21  ;;  %4422 = vrcp.f32 %v3376_v45  ;;  %vm2936_vm8 = vcmp.eq.f32.partialorder %v7599_v10, inf }
 0x35e   : > { %v4413_v6 = vpop.eup %4412  ;;  %v2930_v23 = vmul.f32 %v4411_v31, %v7599_v10  ;;  %v2840_v26 = vmul.f32 %v7625_v50, %v7625_v50  ;;  %v2743_v56 = vmul.f32 %v2742_v49, %v7546_v35  ;;  %vm2938_vm9 = vcmp.eq.f32.partialorder %v7599_v10, 0.0 }
 0x35f   : > { %v7631_v11 = vpop.eup %4414  ;;  %v3463_v59 = vmul.f32 %v4407_v58, %v3362_v63  ;;  %v3019_v22 = vmul.f32 %v3018_v60, %v7556_v43  ;;  %v3122_v3 = vmul.f32 %v4413_v6, %v7601_v52  ;;  %v2939_v17 = vand.u32 2147483648, %v7599_v10 }
 0x360   : > { %v2931_v40 = vmul.f32 %v4411_v31, %v2930_v23  ;;  %v7643_v61 = vadd.f32 1.0, %v2840_v26  ;;  %v7645_v47 = vpop.eup %4416  ;;  %v2745_v30 = vsel %vm2744_vm6, %v7546_v35, %v2743_v56  ;;  %vm3128_vm10 = vcmp.eq.f32.partialorder %v7601_v52, inf }
 0x361   : > { %v3495_v57 = vmul.f32 %v3463_v59, %v7116_v8  ;;  %v3021_v9 = vsel %vm3020_vm4, %v7556_v43, %v3019_v22  ;;  %v3123_v37 = vmul.f32 %v4413_v6, %v3122_v3  ;;  %v7653_v8 = vpop.eup %4418  ;;  %v2748_v58 = vsel %vm2746_vm7, %v2747_v7, %v2745_v30 }
 0x362   : > { %v3024_v15 = vsel %vm3022_vm5, %v3023_v25, %v3021_v9  ;;  %v2932_v12 = vmul.f32 0.5, %v2931_v40  ;;  %4424 = vrsqrt.f32 %v7643_v61  ;;  %v7659_v20 = vpop.eup %4420  ;;  %v7665_v25 = vmax.f32 %v2748_v58, 1e-15 }
 0x363   : > { %3527 = vst [vmem:[%s7271_s18 + $0xd0] sm:$0xff] %v3495_v57  ;;  %v3287_v16 = vadd.f32 %v3024_v15, %v7543_v13  ;;  %v3124_v24 = vmul.f32 0.5, %v3123_v37  ;;  %v2654_v13 = vmul.f32 %v7645_v47, %v7609_v55  ;;  %v7671_v0 = vpop.eup %4422  ;;  %vm3130_vm11 = vcmp.eq.f32.partialorder %v7601_v52, 0.0 }
 0x364   : > { %v2933_v43 = vsub.f32 1.5, %v2932_v12  ;;  %v2462_v5 = vmul.f32 %v7653_v8, %v7614_v2  ;;  %v2558_v35 = vmul.f32 %v7659_v20, %v7619_v44  ;;  %v3131_v63 = vand.u32 2147483648, %v7601_v52 }
 0x365   : > { %4426 = vlog2.f32 %v3287_v16  ;;  %v3125_v21 = vsub.f32 1.5, %v3124_v24  ;;  %v2856_v60 = vmul.f32 %v7665_v25, %v7665_v25  ;;  %v2655_v23 = vmul.f32 %v7645_v47, %v2654_v13 }
 0x366   : > { %v2934_v45 = vmul.f32 %v4411_v31, %v2933_v43  ;;  %v2463_v31 = vmul.f32 %v7653_v8, %v2462_v5  ;;  %v2559_v59 = vmul.f32 %v7659_v20, %v2558_v35  ;;  %4428 = vrsqrt.f32 %v7669_v62 }
 0x367   : > { %v3126_v41 = vmul.f32 %v4413_v6, %v3125_v21  ;;  %4430 = vrcp.f32 %v3392_v34  ;;  %v7687_v6 = vadd.f32 1.0, %v2856_v60  ;;  %v2656_v26 = vmul.f32 0.5, %v2655_v23 }
 0x368   : > { %v2935_v49 = vmul.f32 %v2934_v45, %v7599_v10  ;;  %v4425_v22 = vpop.eup %4424  ;;  %vm2660_vm12 = vcmp.eq.f32.partialorder %v7609_v55, inf  ;;  %v2663_v7 = vand.u32 2147483648, %v7609_v55  ;;  %v2464_v57 = vmul.f32 0.5, %v2463_v31 }
 0x369   : > { %v3127_v3 = vmul.f32 %v3126_v41, %v7601_v52  ;;  %v3026_v56 = vmul.f32 %v4425_v22, %v7643_v61  ;;  %4432 = vrsqrt.f32 %v7687_v6  ;;  %vm2662_vm13 = vcmp.eq.f32.partialorder %v7609_v55, 0.0 }
 0x36a   : > { %v2937_v40 = vsel %vm2936_vm8, %v7599_v10, %v2935_v49  ;;  %vm2468_vm14 = vcmp.eq.f32.partialorder %v7614_v2, inf  ;;  %v2560_v15 = vmul.f32 0.5, %v2559_v59  ;;  %v2657_v43 = vsub.f32 1.5, %v2656_v26 }
 0x36b   : > { %v4427_v9 = vpop.eup %4426  ;;  %v2940_v37 = vsel %vm2938_vm9, %v2939_v17, %v2937_v40  ;;  %v3129_v34 = vsel %vm3128_vm10, %v7601_v52, %v3127_v3  ;;  %v3027_v24 = vmul.f32 %v4425_v22, %v3026_v56  ;;  %vm2470_vm15 = vcmp.eq.f32.partialorder %v7614_v2, 0.0 }
 0x36c   : > { %v3330_v12 = vmul.f32 0.6931472, %v4427_v9  ;;  %v3280_v30 = vadd.f32 %v2940_v37, %v7580_v48  ;;  %v3132_v16 = vsel %vm3130_vm11, %v3131_v63, %v3129_v34  ;;  %v2471_v17 = vand.u32 2147483648, %v7614_v2  ;;  %v7709_v58 = vpop.eup %4428 }
 0x36d   : > { %v3296_v10 = vadd.f32 %v3132_v16, %v7585_v14  ;;  %v3028_v13 = vmul.f32 0.5, %v3027_v24  ;;  %v2465_v45 = vsub.f32 1.5, %v2464_v57  ;;  %v4431_v48 = vpop.eup %4430  ;;  %v2658_v52 = vmul.f32 %v7645_v47, %v2657_v43 }
 0x36e   : > { %v3447_v21 = vmul.f32 %v7631_v11, %v3330_v12  ;;  %4434 = vlog2.f32 %v3280_v30  ;;  %v2561_v5 = vsub.f32 1.5, %v2560_v15  ;;  %v2750_v14 = vmul.f32 %v7709_v58, %v7669_v62 }
 0x36f   : > { %4436 = vlog2.f32 %v3296_v10  ;;  %v3029_v41 = vsub.f32 1.5, %v3028_v13  ;;  %v2466_v63 = vmul.f32 %v7653_v8, %v2465_v45  ;;  %vm2564_vm0 = vcmp.eq.f32.partialorder %v7619_v44, inf  ;;  %v4433_v11 = vpop.eup %4432  ;;  %v7726_v8 = vpop.xlane.xlu1 %2359 }
 0x370   : > { %v3479_v35 = vmul.f32 %v3447_v21, %v7131_v19  ;;  %vm3032_vm1 = vcmp.eq.f32.partialorder %v7643_v61, inf  ;;  %v3384_v60 = vmul.f32 2.0, %v7625_v50  ;;  %v2659_v23 = vmul.f32 %v2658_v52, %v7609_v55 }
 0x371   : > { %v2562_v47 = vmul.f32 %v7659_v20, %v2561_v5  ;;  %v3030_v49 = vmul.f32 %v4425_v22, %v3029_v41  ;;  %vm3034_vm2 = vcmp.eq.f32.partialorder %v7643_v61, 0.0  ;;  %v3218_v19 = vmul.f32 %v4433_v11, %v7687_v6 }
 0x372   : > { %3511 = vst [vmem:[%s7271_s18 + $0x50] sm:$0xff] %v3479_v35  ;;  %v2467_v31 = vmul.f32 %v2466_v63, %v7614_v2  ;;  %v3035_v59 = vand.u32 2147483648, %v7643_v61  ;;  %v2661_v3 = vsel %vm2660_vm12, %v7609_v55, %v2659_v23  ;;  %v2751_v20 = vmul.f32 %v7709_v58, %v2750_v14 }
 0x373   : > { %v2563_v26 = vmul.f32 %v2562_v47, %v7619_v44  ;;  %v3031_v22 = vmul.f32 %v3030_v49, %v7643_v61  ;;  %v3219_v56 = vmul.f32 %v4433_v11, %v3218_v19  ;;  %v2664_v57 = vsel %vm2662_vm13, %v2663_v7, %v2661_v3  ;;  %v7785_v19 = vpop.xlane.xlu2 %2391 }
 0x374   : > { %v4435_v40 = vpop.eup %4434  ;;  %v2469_v9 = vsel %vm2468_vm14, %v7614_v2, %v2467_v31  ;;  %v7740_v15 = vmax.f32 %v2664_v57, 1e-15  ;;  %4438 = vrsqrt.f32 %v7726_v8  ;;  %v3400_v35 = vmul.f32 2.0, %v7665_v25 }
 0x375   : > { %v4437_v37 = vpop.eup %4436  ;;  %v3316_v34 = vmul.f32 0.6931472, %v4435_v40  ;;  %v2472_v12 = vsel %vm2470_vm15, %v2471_v17, %v2469_v9  ;;  %v3033_v16 = vsel %vm3032_vm1, %v7643_v61, %v3031_v22  ;;  %v3220_v55 = vmul.f32 0.5, %v3219_v56 }
 0x376   : > { %v3348_v30 = vmul.f32 0.6931472, %v4437_v37  ;;  %v7748_v7 = vmax.f32 %v2472_v12, 1e-15  ;;  %v3036_v10 = vsel %vm3034_vm2, %v3035_v59, %v3033_v16  ;;  %4440 = vrcp.f32 %v3384_v60 }
 0x377   : > { %v3440_v24 = vmul.f32 %v7671_v0, %v3316_v34  ;;  %v2849_v2 = vmul.f32 %v7740_v15, %v7740_v15  ;;  %v3288_v17 = vadd.f32 %v3036_v10, %v7625_v50  ;;  %v3221_v21 = vsub.f32 1.5, %v3220_v55 }
 0x378   : > { %v3456_v43 = vmul.f32 %v4431_v48, %v3348_v30  ;;  %v2833_v13 = vmul.f32 %v7748_v7, %v7748_v7  ;;  %v2565_v61 = vsel %vm2564_vm0, %v7619_v44, %v2563_v26  ;;  %v2752_v0 = vmul.f32 0.5, %v2751_v20 }
 0x379   : > { %v3472_v45 = vmul.f32 %v3440_v24, %v7114_v27  ;;  %v7759_v52 = vadd.f32 1.0, %v2849_v2  ;;  %4442 = vlog2.f32 %v3288_v17  ;;  %v3222_v48 = vmul.f32 %v4433_v11, %v3221_v21  ;;  %v7805_v24 = vpop.xlane.xlu0 %2375 }
 0x37a   : > { %v3488_v5 = vmul.f32 %v3456_v43, %v7153_v1  ;;  %v7765_v14 = vadd.f32 1.0, %v2833_v13  ;;  %v7767_v50 = vpop.eup %4438  ;;  %v2567_v27 = vand.u32 2147483648, %v7619_v44  ;;  %vm2566_vm3 = vcmp.eq.f32.partialorder %v7619_v44, 0.0 }
 0x37b   : > { %3504 = vst [vmem:[%s7271_s18 + $0x18] sm:$0xff] %v3472_v45  ;;  %4444 = vrsqrt.f32 %v7759_v52  ;;  %v3223_v41 = vmul.f32 %v3222_v48, %v7687_v6  ;;  %vm3224_vm4 = vcmp.eq.f32.partialorder %v7687_v6, inf  ;;  %v3227_v63 = vand.u32 2147483648, %v7687_v6 }
 0x37c   : > { %3520 = vst [vmem:[%s7271_s18 + $0x98] sm:$0xff] %v3488_v5  ;;  %4446 = vrsqrt.f32 %v7765_v14  ;;  %v4441_v1 = vpop.eup %4440  ;;  %v2568_v11 = vsel %vm2566_vm3, %v2567_v27, %v2565_v61  ;;  %v2753_v60 = vsub.f32 1.5, %v2752_v0  ;;  %vm3226_vm5 = vcmp.eq.f32.partialorder %v7687_v6, 0.0 }
 0x37d   : > { %v3225_v23 = vsel %vm3224_vm4, %v7687_v6, %v3223_v41  ;;  %v7781_v47 = vmax.f32 %v2568_v11, 1e-15  ;;  %v2474_v49 = vmul.f32 %v7767_v50, %v7726_v8  ;;  %4448 = vrcp.f32 %v3400_v35 }
 0x37e   : > { %v3228_v31 = vsel %vm3226_vm5, %v3227_v63, %v3225_v23  ;;  %v3393_v44 = vmul.f32 2.0, %v7740_v15  ;;  %v2754_v59 = vmul.f32 %v7709_v58, %v2753_v60  ;;  %vm2756_vm6 = vcmp.eq.f32.partialorder %v7669_v62, inf }
 0x37f   : > { %v4443_v3 = vpop.eup %4442  ;;  %v3304_v26 = vadd.f32 %v3228_v31, %v7665_v25  ;;  %v2841_v20 = vmul.f32 %v7781_v47, %v7781_v47  ;;  %v2475_v6 = vmul.f32 %v7767_v50, %v2474_v49  ;;  %v2759_v57 = vand.u32 2147483648, %v7669_v62 }
 0x380   : > { %v3332_v22 = vmul.f32 0.6931472, %v4443_v3  ;;  %v2755_v56 = vmul.f32 %v2754_v59, %v7669_v62  ;;  %4450 = vrsqrt.f32 %v7785_v19  ;;  %v3377_v55 = vmul.f32 2.0, %v7748_v7 }
 0x381   : > { %v4445_v40 = vpop.eup %4444  ;;  %4452 = vlog2.f32 %v3304_v26  ;;  %v7798_v25 = vadd.f32 1.0, %v2841_v20  ;;  %v2476_v37 = vmul.f32 0.5, %v2475_v6  ;;  %vm2758_vm7 = vcmp.eq.f32.partialorder %v7669_v62, 0.0 }
 0x382   : > { %v4447_v9 = vpop.eup %4446  ;;  %v3134_v58 = vmul.f32 %v4445_v40, %v7759_v52  ;;  %v3448_v34 = vmul.f32 %v4441_v1, %v3332_v22  ;;  %4454 = vrcp.f32 %v3393_v44  ;;  %v2757_v30 = vsel %vm2756_vm6, %v7669_v62, %v2755_v56 }
 0x383   : > { %v2942_v12 = vmul.f32 %v4447_v9, %v7765_v14  ;;  %4456 = vrsqrt.f32 %v7798_v25  ;;  %v4449_v10 = vpop.eup %4448  ;;  %vm3140_vm8 = vcmp.eq.f32.partialorder %v7759_v52, inf  ;;  %v3143_v43 = vand.u32 2147483648, %v7759_v52 }
 0x384   : > { %v3135_v16 = vmul.f32 %v4445_v40, %v3134_v58  ;;  %v3480_v2 = vmul.f32 %v3448_v34, %v7155_v51  ;;  %v2760_v21 = vsel %vm2758_vm7, %v2759_v57, %v2757_v30  ;;  %vm3142_vm9 = vcmp.eq.f32.partialorder %v7759_v52, 0.0 }
 0x385   : > { %v2943_v17 = vmul.f32 %v4447_v9, %v2942_v12  ;;  %vm2948_vm10 = vcmp.eq.f32.partialorder %v7765_v14, inf  ;;  %v7812_v45 = vmax.f32 %v2760_v21, 1e-15  ;;  %v2477_v61 = vsub.f32 1.5, %v2476_v37 }
 0x386   : > { %v3136_v13 = vmul.f32 0.5, %v3135_v16  ;;  %v4451_v62 = vpop.eup %4450  ;;  %3512 = vst [vmem:[%s7271_s18 + $0x58] sm:$0xff] %v3480_v2  ;;  %vm2950_vm11 = vcmp.eq.f32.partialorder %v7765_v14, 0.0  ;;  %v2951_v51 = vand.u32 2147483648, %v7765_v14  ;;  %4458 = vrsqrt.f32 %v7805_v24 }
 0x387   : > { %v2944_v0 = vmul.f32 0.5, %v2943_v17  ;;  %v4453_v5 = vpop.eup %4452  ;;  %4460 = vrcp.f32 %v3377_v55  ;;  %v2857_v35 = vmul.f32 %v7812_v45, %v7812_v45  ;;  %v2478_v27 = vmul.f32 %v7767_v50, %v2477_v61 }
 0x388   : > { %v3137_v48 = vsub.f32 1.5, %v3136_v13  ;;  %v7821_v41 = vpop.eup %4454  ;;  %v3364_v1 = vmul.f32 0.6931472, %v4453_v5  ;;  %v3385_v11 = vmul.f32 2.0, %v7781_v47  ;;  %v2666_v60 = vmul.f32 %v4451_v62, %v7785_v19 }
 0x389   : > { %v2945_v63 = vsub.f32 1.5, %v2944_v0  ;;  %v4457_v23 = vpop.eup %4456  ;;  %v7825_v31 = vadd.f32 1.0, %v2857_v35  ;;  %v2479_v44 = vmul.f32 %v2478_v27, %v7726_v8  ;;  %vm2480_vm12 = vcmp.eq.f32.partialorder %v7726_v8, inf  ;;  %v7864_v0 = vpop.xlane.xlu2 %2361 }
 0x38a   : > { %v3138_v49 = vmul.f32 %v4445_v40, %v3137_v48  ;;  %v3464_v59 = vmul.f32 %v4449_v10, %v3364_v1  ;;  %v3038_v50 = vmul.f32 %v4457_v23, %v7798_v25  ;;  %v2667_v26 = vmul.f32 %v4451_v62, %v2666_v60 }
 0x38b   : > { %v2946_v3 = vmul.f32 %v4447_v9, %v2945_v63  ;;  %4462 = vrsqrt.f32 %v7825_v31  ;;  %vm2482_vm13 = vcmp.eq.f32.partialorder %v7726_v8, 0.0  ;;  %v2483_v6 = vand.u32 2147483648, %v7726_v8 }
 0x38c   : > { %v3139_v20 = vmul.f32 %v3138_v49, %v7759_v52  ;;  %v4459_v40 = vpop.eup %4458  ;;  %v3496_v22 = vmul.f32 %v3464_v59, %v7162_v4  ;;  %v3039_v57 = vmul.f32 %v4457_v23, %v3038_v50  ;;  %4464 = vrcp.f32 %v3385_v11 }
 0x38d   : > { %v2947_v56 = vmul.f32 %v2946_v3, %v7765_v14  ;;  %v7836_v9 = vpop.eup %4460  ;;  %v2481_v37 = vsel %vm2480_vm12, %v7726_v8, %v2479_v44  ;;  %v2668_v34 = vmul.f32 0.5, %v2667_v26  ;;  %vm2672_vm14 = vcmp.eq.f32.partialorder %v7785_v19, inf  ;;  %v7886_v3 = vpop.xlane.xlu0 %2393 }
 0x38e   : > { %v3141_v58 = vsel %vm3140_vm8, %v7759_v52, %v3139_v20  ;;  %v2570_v12 = vmul.f32 %v4459_v40, %v7805_v24  ;;  %3528 = vst [vmem:[%s7271_s18 + $0xd8] sm:$0xff] %v3496_v22  ;;  %v3040_v16 = vmul.f32 0.5, %v3039_v57  ;;  %v2484_v55 = vsel %vm2482_vm13, %v2483_v6, %v2481_v37 }
 0x38f   : > { %v3144_v4 = vsel %vm3142_vm9, %v3143_v43, %v3141_v58  ;;  %v2949_v30 = vsel %vm2948_vm10, %v7765_v14, %v2947_v56  ;;  %v7857_v17 = vmax.f32 %v2484_v55, 1e-15  ;;  %v2669_v21 = vsub.f32 1.5, %v2668_v34 }
 0x390   : > { %v3297_v10 = vadd.f32 %v3144_v4, %v7740_v15  ;;  %v2952_v2 = vsel %vm2950_vm11, %v2951_v51, %v2949_v30  ;;  %v3041_v52 = vsub.f32 1.5, %v3040_v16  ;;  %vm3044_vm15 = vcmp.eq.f32.partialorder %v7798_v25, inf }
 0x391   : > { %v3281_v13 = vadd.f32 %v2952_v2, %v7748_v7  ;;  %v2571_v43 = vmul.f32 %v4459_v40, %v2570_v12  ;;  %v4463_v61 = vpop.eup %4462  ;;  %vm3046_vm0 = vcmp.eq.f32.partialorder %v7798_v25, 0.0  ;;  %v2834_v8 = vmul.f32 %v7857_v17, %v7857_v17  ;;  %v7909_v2 = vpop.xlane.xlu1 %2377 }
 0x392   : > { %4466 = vlog2.f32 %v3297_v10  ;;  %v2670_v15 = vmul.f32 %v4451_v62, %v2669_v21  ;;  %v7866_v14 = vpop.eup %4464  ;;  %v3042_v51 = vmul.f32 %v4457_v23, %v3041_v52  ;;  %v3230_v7 = vmul.f32 %v4463_v61, %v7825_v31 }
 0x393   : > { %4468 = vlog2.f32 %v3281_v13  ;;  %v2572_v5 = vmul.f32 0.5, %v2571_v43  ;;  %v3047_v48 = vand.u32 2147483648, %v7798_v25  ;;  %v7870_v35 = vadd.f32 1.0, %v2834_v8 }
 0x394   : > { %v2671_v27 = vmul.f32 %v2670_v15, %v7785_v19  ;;  %vm2674_vm1 = vcmp.eq.f32.partialorder %v7785_v19, 0.0  ;;  %v3043_v1 = vmul.f32 %v3042_v51, %v7798_v25  ;;  %v3231_v62 = vmul.f32 %v4463_v61, %v3230_v7 }
 0x395   : > { %v2573_v63 = vsub.f32 1.5, %v2572_v5  ;;  %4470 = vrsqrt.f32 %v7864_v0  ;;  %v3401_v11 = vmul.f32 2.0, %v7812_v45  ;;  %v2675_v60 = vand.u32 2147483648, %v7785_v19 }
 0x396   : > { %4472 = vrsqrt.f32 %v7870_v35  ;;  %vm2576_vm2 = vcmp.eq.f32.partialorder %v7805_v24, inf  ;;  %v3045_v23 = vsel %vm3044_vm15, %v7798_v25, %v3043_v1  ;;  %v3232_v49 = vmul.f32 0.5, %v3231_v62 }
 0x397   : > { %v2673_v44 = vsel %vm2672_vm14, %v7785_v19, %v2671_v27  ;;  %v2574_v59 = vmul.f32 %v4459_v40, %v2573_v63  ;;  %v3048_v26 = vsel %vm3046_vm0, %v3047_v48, %v3045_v23  ;;  %vm3236_vm3 = vcmp.eq.f32.partialorder %v7825_v31, inf }
 0x398   : > { %v4467_v50 = vpop.eup %4466  ;;  %v2676_v20 = vsel %vm2674_vm1, %v2675_v60, %v2673_v44  ;;  %vm2578_vm4 = vcmp.eq.f32.partialorder %v7805_v24, 0.0  ;;  %v3289_v56 = vadd.f32 %v3048_v26, %v7781_v47  ;;  %v3233_v57 = vsub.f32 1.5, %v3232_v49 }
 0x399   : > { %v4469_v6 = vpop.eup %4468  ;;  %v3350_v22 = vmul.f32 0.6931472, %v4467_v50  ;;  %v7895_v58 = vmax.f32 %v2676_v20, 1e-15  ;;  %v3239_v37 = vand.u32 2147483648, %v7825_v31  ;;  %v2575_v25 = vmul.f32 %v2574_v59, %v7805_v24 }
 0x39a   : > { %v3318_v40 = vmul.f32 0.6931472, %v4469_v6  ;;  %4474 = vrsqrt.f32 %v7886_v3  ;;  %v3234_v12 = vmul.f32 %v4463_v61, %v3233_v57  ;;  %v2579_v55 = vand.u32 2147483648, %v7805_v24  ;;  %v7943_v6 = vpop.xlane.xlu1 %2395 }
 0x39b   : > { %v4471_v34 = vpop.eup %4470  ;;  %v3457_v19 = vmul.f32 %v7821_v41, %v3350_v22  ;;  %4476 = vlog2.f32 %v3289_v56  ;;  %v2850_v4 = vmul.f32 %v7895_v58, %v7895_v58  ;;  %v2577_v16 = vsel %vm2576_vm2, %v7805_v24, %v2575_v25 }
 0x39c   : > { %v4473_v47 = vpop.eup %4472  ;;  %v3441_v30 = vmul.f32 %v7836_v9, %v3318_v40  ;;  %v2486_v10 = vmul.f32 %v4471_v34, %v7864_v0  ;;  %v3235_v21 = vmul.f32 %v3234_v12, %v7825_v31  ;;  %v3378_v43 = vmul.f32 2.0, %v7857_v17 }
 0x39d   : > { %v3489_v41 = vmul.f32 %v3457_v19, %v7182_v42  ;;  %v2954_v13 = vmul.f32 %v4473_v47, %v7870_v35  ;;  %v7914_v52 = vadd.f32 1.0, %v2850_v4  ;;  %v2580_v61 = vsel %vm2578_vm4, %v2579_v55, %v2577_v16 }
 0x39e   : > { %v3473_v9 = vmul.f32 %v3441_v30, %v7177_v38  ;;  %v2487_v8 = vmul.f32 %v4471_v34, %v2486_v10  ;;  %v3237_v15 = vsel %vm3236_vm3, %v7825_v31, %v3235_v21  ;;  %vm3238_vm5 = vcmp.eq.f32.partialorder %v7825_v31, 0.0 }
 0x39f   : > { %3521 = vst [vmem:[%s7271_s18 + $0xa0] sm:$0xff] %v3489_v41  ;;  %v2955_v42 = vmul.f32 %v4473_v47, %v2954_v13  ;;  %4478 = vrsqrt.f32 %v7914_v52  ;;  %v3240_v7 = vsel %vm3238_vm5, %v3239_v37, %v3237_v15  ;;  %v7927_v38 = vmax.f32 %v2580_v61, 1e-15 }
 0x3a0   : > { %v4475_v51 = vpop.eup %4474  ;;  %3505 = vst [vmem:[%s7271_s18 + $0x20] sm:$0xff] %v3473_v9  ;;  %4480 = vrcp.f32 %v3401_v11  ;;  %v3305_v24 = vadd.f32 %v3240_v7, %v7812_v45  ;;  %v2488_v27 = vmul.f32 0.5, %v2487_v8  ;;  %vm2960_vm6 = vcmp.eq.f32.partialorder %v7870_v35, inf }
 0x3a1   : > { %v4477_v5 = vpop.eup %4476  ;;  %v2956_v48 = vmul.f32 0.5, %v2955_v42  ;;  %v2678_v1 = vmul.f32 %v4475_v51, %v7886_v3  ;;  %4482 = vrcp.f32 %v3378_v43  ;;  %v2842_v31 = vmul.f32 %v7927_v38, %v7927_v38 }
 0x3a2   : > { %v3334_v62 = vmul.f32 0.6931472, %v4477_v5  ;;  %4484 = vlog2.f32 %v3305_v24  ;;  %v2489_v60 = vsub.f32 1.5, %v2488_v27  ;;  %vm2492_vm7 = vcmp.eq.f32.partialorder %v7864_v0, inf }
 0x3a3   : > { %v2957_v63 = vsub.f32 1.5, %v2956_v48  ;;  %v2679_v23 = vmul.f32 %v4475_v51, %v2678_v1  ;;  %v7935_v49 = vadd.f32 1.0, %v2842_v31  ;;  %4486 = vrsqrt.f32 %v7909_v2 }
 0x3a4   : > { %v3449_v11 = vmul.f32 %v7866_v14, %v3334_v62  ;;  %v2490_v59 = vmul.f32 %v4471_v34, %v2489_v60  ;;  %vm2962_vm8 = vcmp.eq.f32.partialorder %v7870_v35, 0.0  ;;  %v2963_v56 = vand.u32 2147483648, %v7870_v35 }
 0x3a5   : > { %v4479_v45 = vpop.eup %4478  ;;  %v2958_v44 = vmul.f32 %v4473_v47, %v2957_v63  ;;  %v2680_v50 = vmul.f32 0.5, %v2679_v23  ;;  %4488 = vrsqrt.f32 %v7935_v49  ;;  %v3394_v57 = vmul.f32 2.0, %v7895_v58 }
 0x3a6   : > { %v4481_v26 = vpop.eup %4480  ;;  %v3481_v20 = vmul.f32 %v3449_v11, %v7184_v28  ;;  %v3146_v14 = vmul.f32 %v4479_v45, %v7914_v52  ;;  %v2491_v40 = vmul.f32 %v2490_v59, %v7864_v0  ;;  %vm2494_vm9 = vcmp.eq.f32.partialorder %v7864_v0, 0.0  ;;  %v7990_v11 = vpop.xlane.xlu0 %2363 }
 0x3a7   : > { %v2959_v22 = vmul.f32 %v2958_v44, %v7870_v35  ;;  %v7949_v37 = vpop.eup %4482  ;;  %v2495_v25 = vand.u32 2147483648, %v7864_v0  ;;  %v2681_v34 = vsub.f32 1.5, %v2680_v50  ;;  %vm2684_vm10 = vcmp.eq.f32.partialorder %v7886_v3, inf }
 0x3a8   : > { %3513 = vst [vmem:[%s7271_s18 + $0x60] sm:$0xff] %v3481_v20  ;;  %v3147_v28 = vmul.f32 %v4479_v45, %v3146_v14  ;;  %v4485_v19 = vpop.eup %4484  ;;  %v2493_v4 = vsel %vm2492_vm7, %v7864_v0, %v2491_v40  ;;  %4490 = vrsqrt.f32 %v7943_v6  ;;  %vm3152_vm11 = vcmp.eq.f32.partialorder %v7914_v52, inf }
 0x3a9   : > { %v2961_v12 = vsel %vm2960_vm6, %v7870_v35, %v2959_v22  ;;  %v3366_v47 = vmul.f32 0.6931472, %v4485_v19  ;;  %v2496_v55 = vsel %vm2494_vm9, %v2495_v25, %v2493_v4  ;;  %v4487_v10 = vpop.eup %4486  ;;  %4492 = vrcp.f32 %v3394_v57 }
 0x3aa   : > { %v2964_v30 = vsel %vm2962_vm8, %v2963_v56, %v2961_v12  ;;  %v3148_v16 = vmul.f32 0.5, %v3147_v28  ;;  %v7965_v21 = vmax.f32 %v2496_v55, 1e-15  ;;  %v2682_v13 = vmul.f32 %v4475_v51, %v2681_v34 }
 0x3ab   : > { %v3282_v41 = vadd.f32 %v2964_v30, %v7857_v17  ;;  %v4489_v9 = vpop.eup %4488  ;;  %v3465_v43 = vmul.f32 %v4481_v26, %v3366_v47  ;;  %v2582_v61 = vmul.f32 %v4487_v10, %v7909_v2  ;;  %v3386_v8 = vmul.f32 2.0, %v7927_v38 }
 0x3ac   : > { %v3149_v0 = vsub.f32 1.5, %v3148_v16  ;;  %v3050_v35 = vmul.f32 %v4489_v9, %v7935_v49  ;;  %v2835_v17 = vmul.f32 %v7965_v21, %v7965_v21  ;;  %v2683_v51 = vmul.f32 %v2682_v13, %v7886_v3  ;;  %v8023_v13 = vpop.xlane.xlu2 %2379 }
 0x3ad   : > { %4494 = vlog2.f32 %v3282_v41  ;;  %v3497_v15 = vmul.f32 %v3465_v43, %v7207_v39  ;;  %v2583_v7 = vmul.f32 %v4487_v10, %v2582_v61  ;;  %vm3154_vm12 = vcmp.eq.f32.partialorder %v7914_v52, 0.0 }
 0x3ae   : > { %v3150_v42 = vmul.f32 %v4479_v45, %v3149_v0  ;;  %v4491_v5 = vpop.eup %4490  ;;  %v3051_v24 = vmul.f32 %v4489_v9, %v3050_v35  ;;  %v7976_v48 = vadd.f32 1.0, %v2835_v17  ;;  %v2687_v27 = vand.u32 2147483648, %v7886_v3 }
 0x3af   : > { %3529 = vst [vmem:[%s7271_s18 + $0xe0] sm:$0xff] %v3497_v15  ;;  %v2685_v62 = vsel %vm2684_vm10, %v7886_v3, %v2683_v51  ;;  %v2584_v39 = vmul.f32 0.5, %v2583_v7  ;;  %v2690_v31 = vmul.f32 %v4491_v5, %v7943_v6  ;;  %v7985_v63 = vpop.eup %4492  ;;  %v3155_v60 = vand.u32 2147483648, %v7914_v52 }
 0x3b0   : > { %v3151_v1 = vmul.f32 %v3150_v42, %v7914_v52  ;;  %v3052_v23 = vmul.f32 0.5, %v3051_v24  ;;  %4496 = vrsqrt.f32 %v7976_v48  ;;  %vm2686_vm13 = vcmp.eq.f32.partialorder %v7886_v3, 0.0 }
 0x3b1   : > { %4498 = vrcp.f32 %v3386_v8  ;;  %v2688_v44 = vsel %vm2686_vm13, %v2687_v27, %v2685_v62  ;;  %v2585_v59 = vsub.f32 1.5, %v2584_v39  ;;  %v2691_v22 = vmul.f32 %v4491_v5, %v2690_v31 }
 0x3b2   : > { %v3153_v45 = vsel %vm3152_vm11, %v7914_v52, %v3151_v1  ;;  %v3053_v20 = vsub.f32 1.5, %v3052_v23  ;;  %v7997_v14 = vmax.f32 %v2688_v44, 1e-15  ;;  %4500 = vrsqrt.f32 %v7990_v11 }
 0x3b3   : > { %v4495_v50 = vpop.eup %4494  ;;  %v3156_v26 = vsel %vm3154_vm12, %v3155_v60, %v3153_v45  ;;  %v2586_v57 = vmul.f32 %v4487_v10, %v2585_v59  ;;  %vm3056_vm14 = vcmp.eq.f32.partialorder %v7935_v49, inf  ;;  %v2692_v25 = vmul.f32 0.5, %v2691_v22  ;;  %v8043_v45 = vpop.xlane.xlu1 %2407 }
 0x3b4   : > { %v3320_v56 = vmul.f32 0.6931472, %v4495_v50  ;;  %v3298_v3 = vadd.f32 %v3156_v26, %v7895_v58  ;;  %v3054_v40 = vmul.f32 %v4489_v9, %v3053_v20  ;;  %v2851_v28 = vmul.f32 %v7997_v14, %v7997_v14 }
 0x3b5   : > { %v3059_v34 = vand.u32 2147483648, %v7935_v49  ;;  %v2587_v19 = vmul.f32 %v2586_v57, %v7909_v2  ;;  %vm2588_vm15 = vcmp.eq.f32.partialorder %v7909_v2, inf  ;;  %v2693_v47 = vsub.f32 1.5, %v2692_v25 }
 0x3b6   : > { %v3442_v52 = vmul.f32 %v7949_v37, %v3320_v56  ;;  %4502 = vlog2.f32 %v3298_v3  ;;  %v4497_v12 = vpop.eup %4496  ;;  %v3055_v58 = vmul.f32 %v3054_v40, %v7935_v49  ;;  %v8008_v4 = vadd.f32 1.0, %v2851_v28 }
 0x3b7   : > { %v8011_v30 = vpop.eup %4498  ;;  %v2966_v37 = vmul.f32 %v4497_v12, %v7976_v48  ;;  %v2589_v55 = vsel %vm2588_vm15, %v7909_v2, %v2587_v19  ;;  %v2591_v10 = vand.u32 2147483648, %v7909_v2  ;;  %vm3058_vm0 = vcmp.eq.f32.partialorder %v7935_v49, 0.0 }
 0x3b8   : > { %v3474_v16 = vmul.f32 %v3442_v52, %v7201_v32  ;;  %v3057_v41 = vsel %vm3056_vm14, %v7935_v49, %v3055_v58  ;;  %4504 = vrsqrt.f32 %v8008_v4  ;;  %vm2590_vm1 = vcmp.eq.f32.partialorder %v7909_v2, 0.0  ;;  %v4501_v9 = vpop.eup %4500 }
 0x3b9   : > { %v3060_v32 = vsel %vm3058_vm0, %v3059_v34, %v3057_v41  ;;  %v2967_v43 = vmul.f32 %v4497_v12, %v2966_v37  ;;  %v3379_v0 = vmul.f32 2.0, %v7965_v21  ;;  %v2592_v61 = vsel %vm2590_vm1, %v2591_v10, %v2589_v55 }
 0x3ba   : > { %3506 = vst [vmem:[%s7271_s18 + $0x28] sm:$0xff] %v3474_v16  ;;  %v3290_v35 = vadd.f32 %v3060_v32, %v7927_v38  ;;  %v8028_v8 = vmax.f32 %v2592_v61, 1e-15  ;;  %v2694_v17 = vmul.f32 %v4491_v5, %v2693_v47  ;;  %v2498_v49 = vmul.f32 %v4501_v9, %v7990_v11 }
 0x3bb   : > { %v2968_v42 = vmul.f32 0.5, %v2967_v43  ;;  %4506 = vrsqrt.f32 %v8023_v13  ;;  %vm2696_vm2 = vcmp.eq.f32.partialorder %v7943_v6, inf  ;;  %vm2698_vm3 = vcmp.eq.f32.partialorder %v7943_v6, 0.0 }
 0x3bc   : > { %v4503_v15 = vpop.eup %4502  ;;  %4508 = vlog2.f32 %v3290_v35  ;;  %v2843_v51 = vmul.f32 %v8028_v8, %v8028_v8  ;;  %v2695_v24 = vmul.f32 %v2694_v17, %v7943_v6  ;;  %v2499_v38 = vmul.f32 %v4501_v9, %v2498_v49 }
 0x3bd   : > { %v3352_v2 = vmul.f32 0.6931472, %v4503_v15  ;;  %v2969_v7 = vsub.f32 1.5, %v2968_v42  ;;  %4510 = vrcp.f32 %v3379_v0  ;;  %v2699_v62 = vand.u32 2147483648, %v7943_v6 }
 0x3be   : > { %v4505_v5 = vpop.eup %4504  ;;  %v8038_v1 = vadd.f32 1.0, %v2843_v51  ;;  %v2697_v60 = vsel %vm2696_vm2, %v7943_v6, %v2695_v24  ;;  %v2500_v23 = vmul.f32 0.5, %v2499_v38  ;;  %vm2972_vm4 = vcmp.eq.f32.partialorder %v7976_v48, inf }
 0x3bf   : > { %v3458_v27 = vmul.f32 %v7985_v63, %v3352_v2  ;;  %v2970_v39 = vmul.f32 %v4497_v12, %v2969_v7  ;;  %v3158_v31 = vmul.f32 %v4505_v5, %v8008_v4  ;;  %vm2974_vm5 = vcmp.eq.f32.partialorder %v7976_v48, 0.0 }
 0x3c0   : > { %4512 = vrsqrt.f32 %v8038_v1  ;;  %v2975_v50 = vand.u32 2147483648, %v7976_v48  ;;  %v2700_v20 = vsel %vm2698_vm3, %v2699_v62, %v2697_v60  ;;  %v3395_v25 = vmul.f32 2.0, %v7997_v14 }
 0x3c1   : > { %v3490_v44 = vmul.f32 %v3458_v27, %v7211_v53  ;;  %v8049_v63 = vpop.eup %4506  ;;  %v2971_v59 = vmul.f32 %v2970_v39, %v7976_v48  ;;  %v3159_v26 = vmul.f32 %v4505_v5, %v3158_v31  ;;  %v8056_v56 = vmax.f32 %v2700_v20, 1e-15 }
 0x3c2   : > { %v4509_v22 = vpop.eup %4508  ;;  %v2501_v53 = vsub.f32 1.5, %v2500_v23  ;;  %v2594_v3 = vmul.f32 %v8049_v63, %v8023_v13  ;;  %4514 = vrsqrt.f32 %v8043_v45  ;;  %vm2504_vm6 = vcmp.eq.f32.partialorder %v7990_v11, inf }
 0x3c3   : > { %3522 = vst [vmem:[%s7271_s18 + $0xa8] sm:$0xff] %v3490_v44  ;;  %v3336_v57 = vmul.f32 0.6931472, %v4509_v22  ;;  %v2973_v40 = vsel %vm2972_vm4, %v7976_v48, %v2971_v59  ;;  %v3160_v28 = vmul.f32 0.5, %v3159_v26  ;;  %v4511_v52 = vpop.eup %4510  ;;  %v2852_v34 = vmul.f32 %v8056_v56, %v8056_v56 }
 0x3c4   : > { %v2976_v6 = vsel %vm2974_vm5, %v2975_v50, %v2973_v40  ;;  %v2502_v19 = vmul.f32 %v4501_v9, %v2501_v53  ;;  %v2595_v16 = vmul.f32 %v8049_v63, %v2594_v3  ;;  %vm3164_vm7 = vcmp.eq.f32.partialorder %v8008_v4, inf  ;;  %v8117_v3 = vpop.xlane.xlu2 %2409 }
 0x3c5   : > { %v3450_v12 = vmul.f32 %v8011_v30, %v3336_v57  ;;  %v3283_v58 = vadd.f32 %v2976_v6, %v7965_v21  ;;  %v3161_v47 = vsub.f32 1.5, %v3160_v28  ;;  %v8072_v55 = vadd.f32 1.0, %v2852_v34  ;;  %v8078_v21 = vpop.xlane.xlu0 %2411 }
 0x3c6   : > { %v4513_v37 = vpop.eup %4512  ;;  %v2503_v48 = vmul.f32 %v2502_v19, %v7990_v11  ;;  %vm2506_vm8 = vcmp.eq.f32.partialorder %v7990_v11, 0.0  ;;  %vm3166_vm9 = vcmp.eq.f32.partialorder %v8008_v4, 0.0  ;;  %v3167_v32 = vand.u32 2147483648, %v8008_v4 }
 0x3c7   : > { %v3482_v10 = vmul.f32 %v3450_v12, %v7218_v29  ;;  %4516 = vlog2.f32 %v3283_v58  ;;  %v3162_v41 = vmul.f32 %v4505_v5, %v3161_v47  ;;  %v3062_v30 = vmul.f32 %v4513_v37, %v8038_v1 }
 0x3c8   : > { %v4515_v9 = vpop.eup %4514  ;;  %4518 = vrsqrt.f32 %v8072_v55  ;;  %v2507_v43 = vand.u32 2147483648, %v7990_v11  ;;  %v2505_v29 = vsel %vm2504_vm6, %v7990_v11, %v2503_v48  ;;  %v2596_v35 = vmul.f32 0.5, %v2595_v16 }
 0x3c9   : > { %3514 = vst [vmem:[%s7271_s18 + $0x68] sm:$0xff] %v3482_v10  ;;  %v3163_v0 = vmul.f32 %v3162_v41, %v8008_v4  ;;  %v3063_v61 = vmul.f32 %v4513_v37, %v3062_v30  ;;  %v3387_v17 = vmul.f32 2.0, %v8028_v8  ;;  %v2762_v15 = vmul.f32 %v4515_v9, %v8043_v45 }
 0x3ca   : > { %v2508_v49 = vsel %vm2506_vm8, %v2507_v43, %v2505_v29  ;;  %4520 = vrsqrt.f32 %v8078_v21  ;;  %v2597_v7 = vsub.f32 1.5, %v2596_v35  ;;  %vm2600_vm10 = vcmp.eq.f32.partialorder %v8023_v13, inf }
 0x3cb   : > { %v3165_v42 = vsel %vm3164_vm7, %v8008_v4, %v3163_v0  ;;  %v3064_v2 = vmul.f32 0.5, %v3063_v61  ;;  %v8097_v51 = vmax.f32 %v2508_v49, 1e-15  ;;  %4522 = vrcp.f32 %v3395_v25 }
 0x3cc   : > { %v3168_v24 = vsel %vm3166_vm9, %v3167_v32, %v3165_v42  ;;  %v2763_v11 = vmul.f32 %v4515_v9, %v2762_v15  ;;  %vm2602_vm11 = vcmp.eq.f32.partialorder %v8023_v13, 0.0  ;;  %4524 = vrcp.f32 %v3387_v17 }
 0x3cd   : > { %v4517_v38 = vpop.eup %4516  ;;  %v3299_v5 = vadd.f32 %v3168_v24, %v7997_v14  ;;  %v3065_v27 = vsub.f32 1.5, %v3064_v2  ;;  %v2836_v62 = vmul.f32 %v8097_v51, %v8097_v51  ;;  %v2598_v60 = vmul.f32 %v8049_v63, %v2597_v7 }
 0x3ce   : > { %v4519_v39 = vpop.eup %4518  ;;  %v3322_v31 = vmul.f32 0.6931472, %v4517_v38  ;;  %v2764_v4 = vmul.f32 0.5, %v2763_v11  ;;  %v2603_v20 = vand.u32 2147483648, %v8023_v13  ;;  %vm3068_vm12 = vcmp.eq.f32.partialorder %v8038_v1, inf }
 0x3cf   : > { %4526 = vlog2.f32 %v3299_v5  ;;  %v3066_v23 = vmul.f32 %v4513_v37, %v3065_v27  ;;  %v3170_v44 = vmul.f32 %v4519_v39, %v8072_v55  ;;  %v8108_v59 = vadd.f32 1.0, %v2836_v62 }
 0x3d0   : > { %v8110_v50 = vpop.eup %4520  ;;  %v3443_v14 = vmul.f32 %v4511_v52, %v3322_v31  ;;  %v2599_v26 = vmul.f32 %v2598_v60, %v8023_v13  ;;  %v2765_v22 = vsub.f32 1.5, %v2764_v4  ;;  %vm3070_vm13 = vcmp.eq.f32.partialorder %v8038_v1, 0.0 }
 0x3d1   : > { %v3067_v53 = vmul.f32 %v3066_v23, %v8038_v1  ;;  %v3171_v63 = vmul.f32 %v4519_v39, %v3170_v44  ;;  %4528 = vrsqrt.f32 %v8108_v59  ;;  %v4523_v57 = vpop.eup %4522  ;;  %v3071_v28 = vand.u32 2147483648, %v8038_v1 }
 0x3d2   : > { %v3475_v40 = vmul.f32 %v3443_v14, %v7225_v18  ;;  %v2601_v25 = vsel %vm2600_vm10, %v8023_v13, %v2599_v26  ;;  %v2766_v19 = vmul.f32 %v4515_v9, %v2765_v22  ;;  %v4525_v12 = vpop.eup %4524  ;;  %v2786_v18 = vmul.f32 %v8110_v50, %v8078_v21 }
 0x3d3   : > { %v3069_v52 = vsel %vm3068_vm12, %v8038_v1, %v3067_v53  ;;  %v3172_v6 = vmul.f32 0.5, %v3171_v63  ;;  %v2604_v34 = vsel %vm2602_vm11, %v2603_v20, %v2601_v25  ;;  %4530 = vrsqrt.f32 %v8117_v3 }
 0x3d4   : > { %3507 = vst [vmem:[%s7271_s18 + $0x30] sm:$0xff] %v3475_v40  ;;  %v3072_v58 = vsel %vm3070_vm13, %v3071_v28, %v3069_v52  ;;  %v8129_v47 = vmax.f32 %v2604_v34, 1e-15  ;;  %v2767_v1 = vmul.f32 %v2766_v19, %v8043_v45  ;;  %vm2768_vm14 = vcmp.eq.f32.partialorder %v8043_v45, inf }
 0x3d5   : > { %v4527_v16 = vpop.eup %4526  ;;  %v3291_v37 = vadd.f32 %v3072_v58, %v8028_v8  ;;  %v3173_v48 = vsub.f32 1.5, %v3172_v6  ;;  %v3396_v10 = vmul.f32 2.0, %v8056_v56  ;;  %v2787_v30 = vmul.f32 %v8110_v50, %v2786_v18 }
 0x3d6   : > { %v3354_v13 = vmul.f32 0.6931472, %v4527_v16  ;;  %v2844_v41 = vmul.f32 %v8129_v47, %v8129_v47  ;;  %v2769_v43 = vsel %vm2768_vm14, %v8043_v45, %v2767_v1  ;;  %v2771_v8 = vand.u32 2147483648, %v8043_v45 }
 0x3d7   : > { %v4529_v9 = vpop.eup %4528  ;;  %4532 = vlog2.f32 %v3291_v37  ;;  %v3174_v32 = vmul.f32 %v4519_v39, %v3173_v48  ;;  %vm2770_vm15 = vcmp.eq.f32.partialorder %v8043_v45, 0.0  ;;  %vm3176_vm0 = vcmp.eq.f32.partialorder %v8072_v55, inf }
 0x3d8   : > { %v3459_v0 = vmul.f32 %v4523_v57, %v3354_v13  ;;  %v2978_v61 = vmul.f32 %v4529_v9, %v8108_v59  ;;  %v8144_v29 = vadd.f32 1.0, %v2844_v41  ;;  %v2772_v17 = vsel %vm2770_vm15, %v2771_v8, %v2769_v43 }
 0x3d9   : > { %v3175_v35 = vmul.f32 %v3174_v32, %v8072_v55  ;;  %v2788_v49 = vmul.f32 0.5, %v2787_v30  ;;  %v4531_v15 = vpop.eup %4530  ;;  %v3179_v2 = vand.u32 2147483648, %v8072_v55  ;;  %vm3178_vm1 = vcmp.eq.f32.partialorder %v8072_v55, 0.0 }
 0x3da   : > { %v3491_v42 = vmul.f32 %v3459_v0, %v7234_v46  ;;  %v2979_v7 = vmul.f32 %v4529_v9, %v2978_v61  ;;  %4534 = vrsqrt.f32 %v8144_v29  ;;  %v8154_v11 = vmax.f32 %v2772_v17, 1e-15 }
 0x3db   : > { %v3177_v24 = vsel %vm3176_vm0, %v8072_v55, %v3175_v35  ;;  %v2789_v5 = vsub.f32 1.5, %v2788_v49  ;;  %v2774_v27 = vmul.f32 %v4531_v15, %v8117_v3  ;;  %4536 = vrcp.f32 %v3396_v10 }
 0x3dc   : > { %3523 = vst [vmem:[%s7271_s18 + $0xb0] sm:$0xff] %v3491_v42  ;;  %v3180_v45 = vsel %vm3178_vm1, %v3179_v2, %v3177_v24  ;;  %v2980_v38 = vmul.f32 0.5, %v2979_v7  ;;  %v2858_v39 = vmul.f32 %v8154_v11, %v8154_v11  ;;  %vm2792_vm2 = vcmp.eq.f32.partialorder %v8078_v21, inf }
 0x3dd   : > { %v4533_v62 = vpop.eup %4532  ;;  %v3300_v46 = vadd.f32 %v3180_v45, %v8056_v56  ;;  %v2790_v4 = vmul.f32 %v8110_v50, %v2789_v5  ;;  %v2775_v23 = vmul.f32 %v4531_v15, %v2774_v27  ;;  %vm2794_vm3 = vcmp.eq.f32.partialorder %v8078_v21, 0.0 }
 0x3de   : > { %v3338_v31 = vmul.f32 0.6931472, %v4533_v62  ;;  %v2981_v60 = vsub.f32 1.5, %v2980_v38  ;;  %v8162_v55 = vadd.f32 1.0, %v2858_v39  ;;  %v2795_v50 = vand.u32 2147483648, %v8078_v21 }
 0x3df   : > { %4538 = vlog2.f32 %v3300_v46  ;;  %v2791_v20 = vmul.f32 %v2790_v4, %v8078_v21  ;;  %vm2984_vm4 = vcmp.eq.f32.partialorder %v8108_v59, inf  ;;  %v2987_v57 = vand.u32 2147483648, %v8108_v59 }
 0x3e0   : > { %v4535_v44 = vpop.eup %4534  ;;  %v3451_v14 = vmul.f32 %v4525_v12, %v3338_v31  ;;  %v2982_v26 = vmul.f32 %v4529_v9, %v2981_v60  ;;  %4540 = vrsqrt.f32 %v8162_v55  ;;  %v2776_v25 = vmul.f32 0.5, %v2775_v23 }
 0x3e1   : > { %v3074_v56 = vmul.f32 %v4535_v44, %v8144_v29  ;;  %v2793_v63 = vsel %vm2792_vm2, %v8078_v21, %v2791_v20  ;;  %v4537_v52 = vpop.eup %4536  ;;  %vm2986_vm5 = vcmp.eq.f32.partialorder %v8108_v59, 0.0  ;;  %v3380_v12 = vmul.f32 2.0, %v8097_v51 }
 0x3e2   : > { %v3483_v22 = vmul.f32 %v3451_v14, %v7220_v33  ;;  %v2983_v53 = vmul.f32 %v2982_v26, %v8108_v59  ;;  %v2796_v28 = vsel %vm2794_vm3, %v2795_v50, %v2793_v63  ;;  %v2777_v18 = vsub.f32 1.5, %v2776_v25 }
 0x3e3   : > { %v3075_v40 = vmul.f32 %v4535_v44, %v3074_v56  ;;  %v8178_v34 = vmax.f32 %v2796_v28, 1e-15  ;;  %vm2780_vm6 = vcmp.eq.f32.partialorder %v8117_v3, inf  ;;  %v2783_v43 = vand.u32 2147483648, %v8117_v3 }
 0x3e4   : > { %3515 = vst [vmem:[%s7271_s18 + $0x70] sm:$0xff] %v3483_v22  ;;  %v2985_v6 = vsel %vm2984_vm4, %v8108_v59, %v2983_v53  ;;  %v2778_v13 = vmul.f32 %v4531_v15, %v2777_v18  ;;  %vm2782_vm7 = vcmp.eq.f32.partialorder %v8117_v3, 0.0  ;;  %vm3080_vm8 = vcmp.eq.f32.partialorder %v8144_v29, inf }
 0x3e5   : > { %v4539_v33 = vpop.eup %4538  ;;  %v2988_v19 = vsel %vm2986_vm5, %v2987_v57, %v2985_v6  ;;  %v3076_v58 = vmul.f32 0.5, %v3075_v40  ;;  %v2860_v37 = vmul.f32 %v8178_v34, %v8178_v34  ;;  %v3083_v61 = vand.u32 2147483648, %v8144_v29  ;;  %v8463_v40 = vld [vmem:[#allocation13_spill] sm:$0xff] }
 0x3e6   : > { %v3356_v21 = vmul.f32 0.6931472, %v4539_v33  ;;  %v3284_v16 = vadd.f32 %v2988_v19, %v8097_v51  ;;  %v4541_v48 = vpop.eup %4540  ;;  %v2779_v9 = vmul.f32 %v2778_v13, %v8117_v3  ;;  %vm3082_vm9 = vcmp.eq.f32.partialorder %v8144_v29, 0.0 }
 0x3e7   : > { %v3077_v1 = vsub.f32 1.5, %v3076_v58  ;;  %v3242_v59 = vmul.f32 %v4541_v48, %v8162_v55  ;;  %v8185_v41 = vadd.f32 1.0, %v2860_v37  ;;  %v3388_v2 = vmul.f32 2.0, %v8129_v47 }
 0x3e8   : > { %v3460_v10 = vmul.f32 %v4537_v52, %v3356_v21  ;;  %4542 = vlog2.f32 %v3284_v16  ;;  %v2781_v0 = vsel %vm2780_vm6, %v8117_v3, %v2779_v9  ;;  %vm3248_vm10 = vcmp.eq.f32.partialorder %v8162_v55, inf }
 0x3e9   : > { %4544 = vrcp.f32 %v3380_v12  ;;  %v3078_v30 = vmul.f32 %v4535_v44, %v3077_v1  ;;  %v3243_v32 = vmul.f32 %v4541_v48, %v3242_v59  ;;  %v2784_v17 = vsel %vm2782_vm7, %v2783_v43, %v2781_v0  ;;  %v8464_v1 = vld [vmem:[#allocation26_spill] sm:$0xff]  ;;  %v8465_v0 = vld [vmem:[#allocation29_spill] sm:$0xff] }
 0x3ea   : > { %v3492_v51 = vmul.f32 %v3460_v10, %v7237_v54  ;;  %4546 = vrsqrt.f32 %v8185_v41  ;;  %v8200_v49 = vmax.f32 %v2784_v17, 1e-15  ;;  %vm3250_vm11 = vcmp.eq.f32.partialorder %v8162_v55, 0.0 }
 0x3eb   : > { %v3079_v8 = vmul.f32 %v3078_v30, %v8144_v29  ;;  %v3244_v35 = vmul.f32 0.5, %v3243_v32  ;;  %v3402_v26 = vmul.f32 2.0, %v8154_v11  ;;  %vm3272_vm12 = vcmp.eq.f32.partialorder %v8185_v41, inf }
 0x3ec   : > { %3524 = vst [vmem:[%s7271_s18 + $0xb8] sm:$0xff] %v3492_v51  ;;  %v2859_v38 = vmul.f32 %v8200_v49, %v8200_v49  ;;  %v3275_v25 = vand.u32 2147483648, %v8185_v41  ;;  %vm3274_vm13 = vcmp.eq.f32.partialorder %v8185_v41, 0.0  ;;  %v3404_v18 = vmul.f32 2.0, %v8178_v34 }
 0x3ed   : > { %v3081_v54 = vsel %vm3080_vm8, %v8144_v29, %v3079_v8  ;;  %v3245_v7 = vsub.f32 1.5, %v3244_v35  ;;  %v3403_v32 = vmul.f32 2.0, %v8200_v49 }
 0x3ee   : > { %v4543_v15 = vpop.eup %4542  ;;  %v3084_v42 = vsel %vm3082_vm9, %v3083_v61, %v3081_v54  ;;  %v2891_v46 = vadd.f32 1.0, %v2859_v38 }
 0x3ef   : > { %v4545_v24 = vpop.eup %4544  ;;  %v3324_v3 = vmul.f32 0.6931472, %v4543_v15  ;;  %v3292_v45 = vadd.f32 %v3084_v42, %v8129_v47  ;;  %v3246_v27 = vmul.f32 %v4541_v48, %v3245_v7  ;;  %v3251_v47 = vand.u32 2147483648, %v8162_v55  ;;  %v8466_v15 = vld [vmem:[#allocation27_spill] sm:$0xff] }
 0x3f0   : > { %v4547_v5 = vpop.eup %4546  ;;  %vm3260_vm14 = vcmp.eq.f32.partialorder %v2891_v46, inf  ;;  %v3263_v59 = vand.u32 2147483648, %v2891_v46  ;;  %vm3262_vm15 = vcmp.eq.f32.partialorder %v2891_v46, 0.0 }
 0x3f1   : > { %v3444_v62 = vmul.f32 %v4545_v24, %v3324_v3  ;;  %4548 = vlog2.f32 %v3292_v45  ;;  %v3266_v29 = vmul.f32 %v4547_v5, %v8185_v41  ;;  %v3247_v39 = vmul.f32 %v3246_v27, %v8162_v55 }
 0x3f2   : > { %4550 = vrcp.f32 %v3388_v2 }
 0x3f3   : > { %v3476_v31 = vmul.f32 %v3444_v62, %v7247_v36  ;;  %v3267_v60 = vmul.f32 %v4547_v5, %v3266_v29  ;;  %4552 = vrsqrt.f32 %v2891_v46  ;;  %v3249_v4 = vsel %vm3248_vm10, %v8162_v55, %v3247_v39 }
 0x3f4   : > { %v3252_v23 = vsel %vm3250_vm11, %v3251_v47, %v3249_v4 }
 0x3f5   : > { %3508 = vst [vmem:[%s7271_s18 + $0x38] sm:$0xff] %v3476_v31  ;;  %v3268_v44 = vmul.f32 0.5, %v3267_v60  ;;  %v3306_v14 = vadd.f32 %v3252_v23, %v8154_v11 }
 0x3f7   : > { %v4549_v20 = vpop.eup %4548  ;;  %v3269_v56 = vsub.f32 1.5, %v3268_v44  ;;  %4554 = vlog2.f32 %v3306_v14 }
 0x3f8   : > { %v4551_v50 = vpop.eup %4550  ;;  %v3340_v36 = vmul.f32 0.6931472, %v4549_v20  ;;  %4556 = vrcp.f32 %v3402_v26 }
 0x3f9   : > { %v4553_v22 = vpop.eup %4552  ;;  %v3270_v53 = vmul.f32 %v4547_v5, %v3269_v56 }
 0x3fa   : > { %v3452_v63 = vmul.f32 %v4551_v50, %v3340_v36  ;;  %v3254_v57 = vmul.f32 %v4553_v22, %v2891_v46 }
 0x3fb   : > { %v3271_v55 = vmul.f32 %v3270_v53, %v8185_v41 }
 0x3fc   : > { %v3484_v28 = vmul.f32 %v3452_v63, %v8463_v40  ;;  %v3255_v11 = vmul.f32 %v4553_v22, %v3254_v57 }
 0x3fd   : > { %v3273_v52 = vsel %vm3272_vm12, %v8185_v41, %v3271_v55  ;;  %v4555_v6 = vpop.eup %4554 }
 0x3fe   : > { %3516 = vst [vmem:[%s7271_s18 + $0x78] sm:$0xff] %v3484_v28  ;;  %v3276_v33 = vsel %vm3274_vm13, %v3275_v25, %v3273_v52  ;;  %v3256_v19 = vmul.f32 0.5, %v3255_v11  ;;  %v3368_v12 = vmul.f32 0.6931472, %v4555_v6  ;;  %v4557_v21 = vpop.eup %4556 }
 0x3ff   : > { %v3308_v58 = vadd.f32 %v3276_v33, %v8178_v34 }
 0x400   : > { %v3257_v16 = vsub.f32 1.5, %v3256_v19  ;;  %v3466_v37 = vmul.f32 %v4557_v21, %v3368_v12 }
 0x401   : > { %4558 = vlog2.f32 %v3308_v58 }
 0x402   : > { %v3258_v48 = vmul.f32 %v4553_v22, %v3257_v16  ;;  %v3498_v13 = vmul.f32 %v3466_v37, %v8464_v1  ;;  %4560 = vrcp.f32 %v3404_v18 }
 0x404   : > { %v3259_v10 = vmul.f32 %v3258_v48, %v2891_v46  ;;  %3530 = vst [vmem:[%s7271_s18 + $0xe8] sm:$0xff] %v3498_v13 }
 0x406   : > { %v3261_v41 = vsel %vm3260_vm14, %v2891_v46, %v3259_v10 }
 0x407   : > { %v4559_v30 = vpop.eup %4558  ;;  %v3264_v9 = vsel %vm3262_vm15, %v3263_v59, %v3261_v41 }
 0x408   : > { %v3372_v34 = vmul.f32 0.6931472, %v4559_v30  ;;  %v3307_v51 = vadd.f32 %v3264_v9, %v8200_v49  ;;  %v4561_v43 = vpop.eup %4560 }
 0x40a   : > { %v3468_v8 = vmul.f32 %v4561_v43, %v3372_v34  ;;  %4562 = vlog2.f32 %v3307_v51 }
 0x40b   : > { %4564 = vrcp.f32 %v3403_v32 }
 0x40c   : > { %v3500_v61 = vmul.f32 %v3468_v8, %v8465_v0 }
 0x40e   : > { %3532 = vst [vmem:[%s7271_s18 + $0xf8] sm:$0xff] %v3500_v61 }
 0x410   : > { %v4563_v35 = vpop.eup %4562 }
 0x411   : > { %v3370_v17 = vmul.f32 0.6931472, %v4563_v35  ;;  %v4565_v54 = vpop.eup %4564 }
 0x413   : > { %v3467_v49 = vmul.f32 %v4565_v54, %v3370_v17 }
 0x415   : > { %v3499_v42 = vmul.f32 %v3467_v49, %v8466_v15 }
 0x417   : > { %3531 = vst [vmem:[%s7271_s18 + $0xf0] sm:$0xff] %v3499_v42 }
 0x418   : > { %4683 = shalt.err (!%p4680_p10)
}
 0x419   : > { %s4734_s22 = smov 128   ;;  %s4735_s24 = smov 8  }
 0x41a   : > { %3735 = dma.vmem_to_hbm [thread:$0]  (%p4822_p3), %s3547_s29, 4096, %s3549_s4, %s3534_s16, %s4734_s22, %s4734_s22, %s4735_s24  }
 0x41b PF: > { %s3563_s25 = sand.u32 1, %s4714_s12   ;;  %p8467_p12 = scmp.ge.s32.totalorder %s4726_s15, 2 }
 0x41c   : > { %s3564_s30 = scalar_lea.sflag [#allocation4], %s3563_s25 }
 0x41d   : > { %p3749_p13 = pnand %p8467_p12, %p4791_p6 }
 0x41f   : > { %p3750_p0 = pneg %p3749_p13 }
 0x421   : > { %4709 = dma.done.wait (%p3750_p0), %s3564_s30, 4096  }
 0x422   : > { %4711 = vsyncadd (%p3750_p0), %s3564_s30, 4294963200  ;;  %p17_p5 = scmp.ge.s32.totalorder %s4812_s6, 4   ;;  %s8468_s12 = smov %s4718_s13 }
 0x423   : > { %s8469_s13 = smov %s4722_s14  ;;  %s8470_s14 = smov %s4828_s10 }
 0x424   : > { %s8471_s15 = smov %s4812_s6  ;;  %19 = sbr.rel (!%p17_p5) target bundleno = 6 (0x6), region = 85 }
 0x429   :  { %3570 = vsyncpa [#allocation3], 1 }
 0x42a   :  { %3572 = vsyncpa [#allocation3 + $0x1], 1 }
 0x42b   :  { %3573 = vsyncpa [#allocation6], 1 }
 0x42c   :  { %3574 = vsyncpa [#allocation4], 1 }
 0x42d   :  { %3576 = vsyncpa [#allocation4 + $0x1], 1 }

</bundles_post_ra>
